<compile_context>
chip_gen: v7x
topology: tpu7x:2x2x1
jax: 0.10.0
libtpu: 0.0.40
codegen_flags: <defaults>
</compile_context>

<pallas_src>
import functools
import math

import jax
import jax.numpy as jnp
from jax import lax
from jax.experimental import pallas as pl
from jax.experimental.pallas import tpu as pltpu


# ----------------------------- fused kernel ---------------------------------
def _transformer_block_kernel(use_conv, num_layers, num_heads, *refs):
    if use_conv:
        (x_ref, cw_ref, cb_ref,
         linw_ref, linb_ref,
         ln1w_ref, ln1b_ref,
         wq_ref, bq_ref, wk_ref, bk_ref, wv_ref, bv_ref,
         wo_ref, bo_ref,
         ln2w_ref, ln2b_ref, w1_ref, w2_ref,
         o_ref) = refs
    else:
        (x_ref,
         linw_ref, linb_ref,
         ln1w_ref, ln1b_ref,
         wq_ref, bq_ref, wk_ref, bk_ref, wv_ref, bv_ref,
         wo_ref, bo_ref,
         ln2w_ref, ln2b_ref, w1_ref, w2_ref,
         o_ref) = refs

    # x block: (1, C_in, S)  ->  sequence-major (S, C_in) for the matmuls.
    x_cs = x_ref[0]                                   # (C_in, S)
    p = x_cs.T.astype(jnp.float32)                    # (S, C_in)

    if use_conv:
        # Conv2d(c1, c2, k=1, bias=False) + BatchNorm(eval) + SiLU, folded into
        # one matmul + bias.
        z = jnp.dot(p, cw_ref[...], preferred_element_type=jnp.float32) + cb_ref[...]
        p = z * jax.nn.sigmoid(z)                     # SiLU

    # Learned positional embedding:  p + Linear(p)
    x = p + jnp.dot(p, linw_ref[...], preferred_element_type=jnp.float32) + linb_ref[...]

    C = x.shape[-1]
    D = C // num_heads
    scale = 1.0 / math.sqrt(D)

    def layer_norm(v, w, b):                          # LayerNorm over channels
        mu = jnp.mean(v, axis=-1, keepdims=True)
        vc = v - mu
        var = jnp.mean(vc * vc, axis=-1, keepdims=True)
        return vc * lax.rsqrt(var + 1e-5) * w + b

    for l in range(num_layers):                       # static unroll (small L)
        # --- multi-head self-attention block (pre-LN residual) --------------
        xn = layer_norm(x, ln1w_ref[l], ln1b_ref[l])
        # q/k/v Linear folded with MHA in-projection in the wrapper.
        q = jnp.dot(xn, wq_ref[l], preferred_element_type=jnp.float32) + bq_ref[l]
        k = jnp.dot(xn, wk_ref[l], preferred_element_type=jnp.float32) + bk_ref[l]
        v = jnp.dot(xn, wv_ref[l], preferred_element_type=jnp.float32) + bv_ref[l]

        heads = []
        for h in range(num_heads):                    # static unroll (small nh)
            sl = slice(h * D, (h + 1) * D)
            qh = q[:, sl] * scale                     # (S, D)
            kh = k[:, sl]
            vh = v[:, sl]
            # scores = qh @ kh.T  (contract over head dim, no explicit transpose)
            s = lax.dot_general(qh, kh, (((1,), (1,)), ((), ())),
                                preferred_element_type=jnp.float32)   # (S, S)
            s = s - jnp.max(s, axis=-1, keepdims=True)
            e = jnp.exp(s)
            pr = e / jnp.sum(e, axis=-1, keepdims=True)
            heads.append(jnp.dot(pr, vh, preferred_element_type=jnp.float32))
        attn = jnp.concatenate(heads, axis=-1)        # (S, C)
        x = x + jnp.dot(attn, wo_ref[l], preferred_element_type=jnp.float32) + bo_ref[l]

        # --- feed-forward block (pre-LN residual) ----------------------------
        xn = layer_norm(x, ln2w_ref[l], ln2b_ref[l])
        hdn = jnp.maximum(
            jnp.dot(xn, w1_ref[l], preferred_element_type=jnp.float32), 0.0)
        x = x + jnp.dot(hdn, w2_ref[l], preferred_element_type=jnp.float32)

    # Store back in channel-major layout -> output array is (B, C2, S), which
    # reshapes to NCHW for free in the wrapper.
    o_ref[0] = x.T.astype(o_ref.dtype)


# ----------------------------- parameter packing ----------------------------
def pack_params(p):
    """Fold/stack raw params into the layout consumed by the kernel."""
    eps = 1e-5
    packed = {}
    if p["conv_w"] is not None:
        inv = lax.rsqrt(p["bn_var"] + eps)
        scale = p["bn_gamma"] * inv                                  # (c2,)
        packed["conv_w"] = (p["conv_w"] * scale[:, None]).T          # (c1, c2)
        packed["conv_b"] = (p["bn_beta"] - p["bn_mean"] * scale)[None, :]
    packed["lin_w"] = p["lin_w"]                                     # (c2, c2)
    packed["lin_b"] = p["lin_b"][None, :]                            # (1, c2)

    layers = p["layers"]
    st = lambda name: jnp.stack([lp[name] for lp in layers])
    packed["ln1_w"] = st("ln1_w")[:, None, :]                        # (L,1,C)
    packed["ln1_b"] = st("ln1_b")[:, None, :]
    # Fold TransformerLayer q/k/v Linears into the MHA in-projection.
    packed["wq"] = jnp.stack([lp["q_w"] @ lp["in_q_w"] for lp in layers])
    packed["wk"] = jnp.stack([lp["k_w"] @ lp["in_k_w"] for lp in layers])
    packed["wv"] = jnp.stack([lp["v_w"] @ lp["in_v_w"] for lp in layers])
    packed["bq"] = st("in_q_b")[:, None, :]
    packed["bk"] = st("in_k_b")[:, None, :]
    packed["bv"] = st("in_v_b")[:, None, :]
    packed["wo"] = st("out_w")                                       # (L,C,C)
    packed["bo"] = st("out_b")[:, None, :]
    packed["ln2_w"] = st("ln2_w")[:, None, :]
    packed["ln2_b"] = st("ln2_b")[:, None, :]
    packed["w1"] = st("fc1_w")                                       # (L,C,4C)
    packed["w2"] = st("fc2_w")                                       # (L,4C,C)
    return packed


def _const_spec(arr):
    zeros = (0,) * arr.ndim
    return pl.BlockSpec(arr.shape, lambda b, _z=zeros: _z)


# ----------------------------------- wrapper --------------------------------
def transformer_block_forward(x, raw_params, num_heads):
    pk = pack_params(raw_params)
    num_layers = pk["wq"].shape[0]
    use_conv = "conv_w" in pk

    B, C1, H, W = x.shape
    S = H * W
    C2 = pk["lin_w"].shape[0]

    x_flat = x.reshape(B, C1, S)        # metadata-only reshape (no HBM traffic)

    inputs = [x_flat]
    in_specs = [pl.BlockSpec((1, C1, S), lambda b: (b, 0, 0))]
    if use_conv:
        inputs += [pk["conv_w"], pk["conv_b"]]
        in_specs += [_const_spec(pk["conv_w"]), _const_spec(pk["conv_b"])]
    for name in ("lin_w", "lin_b", "ln1_w", "ln1_b", "wq", "bq", "wk", "bk",
                 "wv", "bv", "wo", "bo", "ln2_w", "ln2_b", "w1", "w2"):
        inputs.append(pk[name])
        in_specs.append(_const_spec(pk[name]))

    out = pl.pallas_call(
        functools.partial(_transformer_block_kernel, use_conv, num_layers, num_heads),
        out_shape=jax.ShapeDtypeStruct((B, C2, S), jnp.float32),
        grid=(B,),
        in_specs=in_specs,
        out_specs=pl.BlockSpec((1, C2, S), lambda b: (b, 0, 0)),
        compiler_params=pltpu.CompilerParams(dimension_semantics=("parallel",)),
    )(*inputs)

    return out.reshape(B, C2, H, W)


# ------------------------------ pure-JAX reference ---------------------------
def _ln_ref(v, w, b, eps=1e-5):
    mu = v.mean(axis=-1, keepdims=True)
    d = v - mu
    var = (d * d).mean(axis=-1, keepdims=True)
    return d * lax.rsqrt(var + eps) * w + b


def transformer_block_reference(x, p, num_heads):
    eps = 1e-5
    if p["conv_w"] is not None:
        # Conv1x1 (no bias) + BatchNorm (eval, running stats) + SiLU
        y = jnp.einsum("oc,bchw->bohw", p["conv_w"], x)
        inv = lax.rsqrt(p["bn_var"] + eps)
        y = (y - p["bn_mean"][None, :, None, None]) * (p["bn_gamma"] * inv)[None, :, None, None] \
            + p["bn_beta"][None, :, None, None]
        x = y * jax.nn.sigmoid(y)

    B, C, H, W = x.shape
    S = H * W
    D = C // num_heads
    z = jnp.transpose(x.reshape(B, C, S), (2, 0, 1))        # (S, B, C)
    z = z + (z @ p["lin_w"] + p["lin_b"])                   # p + linear(p)

    for lp in p["layers"]:
        zn = _ln_ref(z, lp["ln1_w"], lp["ln1_b"])
        q = (zn @ lp["q_w"]) @ lp["in_q_w"] + lp["in_q_b"]
        k = (zn @ lp["k_w"]) @ lp["in_k_w"] + lp["in_k_b"]
        v = (zn @ lp["v_w"]) @ lp["in_v_w"] + lp["in_v_b"]
        qh = q.reshape(S, B, num_heads, D)
        kh = k.reshape(S, B, num_heads, D)
        vh = v.reshape(S, B, num_heads, D)
        sc = jnp.einsum("sbhd,tbhd->bhst", qh, kh) / math.sqrt(D)
        pr = jax.nn.softmax(sc, axis=-1)
        at = jnp.einsum("bhst,tbhd->sbhd", pr, vh).reshape(S, B, C)
        z = z + (at @ lp["out_w"] + lp["out_b"])
        zn = _ln_ref(z, lp["ln2_w"], lp["ln2_b"])
        z = z + jnp.maximum(zn @ lp["fc1_w"], 0.0) @ lp["fc2_w"]

    return jnp.transpose(z, (1, 2, 0)).reshape(B, C, H, W)


# ------------------------------ parameter init -------------------------------
def init_params(key, c1, c2, num_layers):
    keys = iter(jax.random.split(key, 8 + 20 * num_layers))

    def nrm(shape, s=0.1):
        return jax.random.normal(next(keys), shape, jnp.float32) * s

    p = {}
    if c1 != c2:                                   # Conv(c1, c2, k=1) + BN + SiLU
        p["conv_w"] = nrm((c2, c1))
        p["bn_gamma"] = 1.0 + nrm((c2,))
        p["bn_beta"] = nrm((c2,))
        p["bn_mean"] = nrm((c2,))
        p["bn_var"] = jax.random.uniform(next(keys), (c2,), jnp.float32, 0.5, 1.5)
    else:
        p["conv_w"] = None
    # weights are stored in "y = x @ W" orientation (transpose of torch storage)
    p["lin_w"] = nrm((c2, c2))
    p["lin_b"] = nrm((c2,))
    layers = []
    for _ in range(num_layers):
        layers.append({
            "ln1_w": 1.0 + nrm((c2,)), "ln1_b": nrm((c2,)),
            "q_w": nrm((c2, c2)), "k_w": nrm((c2, c2)), "v_w": nrm((c2, c2)),
            "in_q_w": nrm((c2, c2)), "in_k_w": nrm((c2, c2)), "in_v_w": nrm((c2, c2)),
            "in_q_b": nrm((c2,)), "in_k_b": nrm((c2,)), "in_v_b": nrm((c2,)),
            "out_w": nrm((c2, c2)), "out_b": nrm((c2,)),
            "ln2_w": 1.0 + nrm((c2,)), "ln2_b": nrm((c2,)),
            "fc1_w": nrm((c2, 4 * c2)), "fc2_w": nrm((4 * c2, c2)),
        })
    p["layers"] = layers
    return p


if __name__ == "__main__":
    num_heads, num_layers = 4, 2
    B, H, W = 2, 8, 8

    key = jax.random.PRNGKey(0)
    k_p1, k_x1, k_p2, k_x2 = jax.random.split(key, 4)

    # Config 1: c1 != c2  ->  Conv(c1, c2, 1)+BN+SiLU path is exercised.
    c1, c2 = 16, 32
    params1 = init_params(k_p1, c1, c2, num_layers)
    x1 = jax.random.normal(k_x1, (B, c1, H, W), jnp.float32)
    out1 = jax.block_until_ready(transformer_block_forward(x1, params1, num_heads))
    ref1 = jax.block_until_ready(transformer_block_reference(x1, params1, num_heads))
    assert out1.shape == (B, c2, H, W)
    assert jnp.allclose(out1, ref1, atol=1e-4, rtol=1e-4), "mismatch (conv path)"

    # Config 2: c1 == c2  ->  conv is None.
    c1 = c2 = 32
    params2 = init_params(k_p2, c1, c2, num_layers)
    x2 = jax.random.normal(k_x2, (B, c1, H, W), jnp.float32)
    out2 = jax.block_until_ready(transformer_block_forward(x2, params2, num_heads))
    ref2 = jax.block_until_ready(transformer_block_reference(x2, params2, num_heads))
    assert out2.shape == (B, c2, H, W)
    assert jnp.allclose(out2, ref2, atol=1e-4, rtol=1e-4), "mismatch (no-conv path)"

    print("KERNEL_OK")
</pallas_src>

<mosaic_0001>
module attributes {stable_mosaic.version = 11 : i64} {
  func.func @_transformer_block_kernel(%arg0: i32, %arg1: memref<1x16x64xf32, #tpu.memory_space<vmem>>, %arg2: memref<16x32xf32, #tpu.memory_space<vmem>>, %arg3: memref<1x32xf32, #tpu.memory_space<vmem>>, %arg4: memref<32x32xf32, #tpu.memory_space<vmem>>, %arg5: memref<1x32xf32, #tpu.memory_space<vmem>>, %arg6: memref<2x1x32xf32, #tpu.memory_space<vmem>>, %arg7: memref<2x1x32xf32, #tpu.memory_space<vmem>>, %arg8: memref<2x32x32xf32, #tpu.memory_space<vmem>>, %arg9: memref<2x1x32xf32, #tpu.memory_space<vmem>>, %arg10: memref<2x32x32xf32, #tpu.memory_space<vmem>>, %arg11: memref<2x1x32xf32, #tpu.memory_space<vmem>>, %arg12: memref<2x32x32xf32, #tpu.memory_space<vmem>>, %arg13: memref<2x1x32xf32, #tpu.memory_space<vmem>>, %arg14: memref<2x32x32xf32, #tpu.memory_space<vmem>>, %arg15: memref<2x1x32xf32, #tpu.memory_space<vmem>>, %arg16: memref<2x1x32xf32, #tpu.memory_space<vmem>>, %arg17: memref<2x1x32xf32, #tpu.memory_space<vmem>>, %arg18: memref<2x32x128xf32, #tpu.memory_space<vmem>>, %arg19: memref<2x128x32xf32, #tpu.memory_space<vmem>>, %arg20: memref<1x32x64xf32, #tpu.memory_space<vmem>>) attributes {dimension_semantics = [#tpu.dimension_semantics<parallel>], iteration_bounds = array<i64: 2>, scalar_prefetch = 0 : i64, scratch_operands = 0 : i64, tpu.core_type = #tpu.core_type<tc>, window_params = [{transform_indices = @transform_0, window_bounds = array<i64: 1, 16, 64>}, {pipeline_mode = #tpu.pipeline_mode<synchronous>, transform_indices = @transform_1, window_bounds = array<i64: 16, 32>}, {pipeline_mode = #tpu.pipeline_mode<synchronous>, transform_indices = @transform_2, window_bounds = array<i64: 1, 32>}, {pipeline_mode = #tpu.pipeline_mode<synchronous>, transform_indices = @transform_3, window_bounds = array<i64: 32, 32>}, {pipeline_mode = #tpu.pipeline_mode<synchronous>, transform_indices = @transform_4, window_bounds = array<i64: 1, 32>}, {pipeline_mode = #tpu.pipeline_mode<synchronous>, transform_indices = @transform_5, window_bounds = array<i64: 2, 1, 32>}, {pipeline_mode = #tpu.pipeline_mode<synchronous>, transform_indices = @transform_6, window_bounds = array<i64: 2, 1, 32>}, {pipeline_mode = #tpu.pipeline_mode<synchronous>, transform_indices = @transform_7, window_bounds = array<i64: 2, 32, 32>}, {pipeline_mode = #tpu.pipeline_mode<synchronous>, transform_indices = @transform_8, window_bounds = array<i64: 2, 1, 32>}, {pipeline_mode = #tpu.pipeline_mode<synchronous>, transform_indices = @transform_9, window_bounds = array<i64: 2, 32, 32>}, {pipeline_mode = #tpu.pipeline_mode<synchronous>, transform_indices = @transform_10, window_bounds = array<i64: 2, 1, 32>}, {pipeline_mode = #tpu.pipeline_mode<synchronous>, transform_indices = @transform_11, window_bounds = array<i64: 2, 32, 32>}, {pipeline_mode = #tpu.pipeline_mode<synchronous>, transform_indices = @transform_12, window_bounds = array<i64: 2, 1, 32>}, {pipeline_mode = #tpu.pipeline_mode<synchronous>, transform_indices = @transform_13, window_bounds = array<i64: 2, 32, 32>}, {pipeline_mode = #tpu.pipeline_mode<synchronous>, transform_indices = @transform_14, window_bounds = array<i64: 2, 1, 32>}, {pipeline_mode = #tpu.pipeline_mode<synchronous>, transform_indices = @transform_15, window_bounds = array<i64: 2, 1, 32>}, {pipeline_mode = #tpu.pipeline_mode<synchronous>, transform_indices = @transform_16, window_bounds = array<i64: 2, 1, 32>}, {pipeline_mode = #tpu.pipeline_mode<synchronous>, transform_indices = @transform_17, window_bounds = array<i64: 2, 32, 128>}, {pipeline_mode = #tpu.pipeline_mode<synchronous>, transform_indices = @transform_18, window_bounds = array<i64: 2, 128, 32>}, {transform_indices = @transform_19, window_bounds = array<i64: 1, 32, 64>}]} {
    %c0 = arith.constant 0 : index
    %c0_0 = arith.constant 0 : index
    %c0_1 = arith.constant 0 : index
    %0 = vector.load %arg1[%c0, %c0_0, %c0_1] : memref<1x16x64xf32, #tpu.memory_space<vmem>>, vector<1x16x64xf32>
    %1 = vector.shape_cast %0 : vector<1x16x64xf32> to vector<16x64xf32>
    %2 = tpu.transpose %1, [1, 0] : vector<16x64xf32> -> vector<64x16xf32>
    %c0_2 = arith.constant 0 : index
    %c0_3 = arith.constant 0 : index
    %3 = vector.load %arg2[%c0_2, %c0_3] : memref<16x32xf32, #tpu.memory_space<vmem>>, vector<16x32xf32>
    %cst = arith.constant dense<0.000000e+00> : vector<64x32xf32>
    %4 = tpu.matmul %2, %3, %cst {dimension_numbers = #tpu.dot_dimension_numbers<[1], [0], [0], [1], [0, 0, 1, 1], [], []>} : vector<64x16xf32>, vector<16x32xf32>, vector<64x32xf32> -> vector<64x32xf32>
    %c0_4 = arith.constant 0 : index
    %c0_5 = arith.constant 0 : index
    %5 = vector.load %arg3[%c0_4, %c0_5] : memref<1x32xf32, #tpu.memory_space<vmem>>, vector<1x32xf32>
    %6 = vector.broadcast %5 : vector<1x32xf32> to vector<64x32xf32>
    %7 = arith.addf %4, %6 : vector<64x32xf32>
    %8 = arith.negf %7 : vector<64x32xf32>
    %9 = math.exp %8 : vector<64x32xf32>
    %cst_6 = arith.constant 1.000000e+00 : f32
    %10 = vector.broadcast %cst_6 : f32 to vector<64x32xf32>
    %11 = arith.addf %10, %9 : vector<64x32xf32>
    %12 = arith.divf %10, %11 : vector<64x32xf32>
    %13 = arith.mulf %7, %12 : vector<64x32xf32>
    %c0_7 = arith.constant 0 : index
    %c0_8 = arith.constant 0 : index
    %14 = vector.load %arg4[%c0_7, %c0_8] : memref<32x32xf32, #tpu.memory_space<vmem>>, vector<32x32xf32>
    %cst_9 = arith.constant dense<0.000000e+00> : vector<64x32xf32>
    %15 = tpu.matmul %13, %14, %cst_9 {dimension_numbers = #tpu.dot_dimension_numbers<[1], [0], [0], [1], [0, 0, 1, 1], [], []>} : vector<64x32xf32>, vector<32x32xf32>, vector<64x32xf32> -> vector<64x32xf32>
    %16 = arith.addf %13, %15 : vector<64x32xf32>
    %c0_10 = arith.constant 0 : index
    %c0_11 = arith.constant 0 : index
    %17 = vector.load %arg5[%c0_10, %c0_11] : memref<1x32xf32, #tpu.memory_space<vmem>>, vector<1x32xf32>
    %18 = vector.broadcast %17 : vector<1x32xf32> to vector<64x32xf32>
    %19 = arith.addf %16, %18 : vector<64x32xf32>
    %c0_12 = arith.constant 0 : index
    %c0_13 = arith.constant 0 : index
    %c0_14 = arith.constant 0 : index
    %20 = vector.load %arg6[%c0_12, %c0_13, %c0_14] : memref<2x1x32xf32, #tpu.memory_space<vmem>>, vector<1x1x32xf32>
    %21 = vector.shape_cast %20 : vector<1x1x32xf32> to vector<1x32xf32>
    %c0_15 = arith.constant 0 : index
    %c0_16 = arith.constant 0 : index
    %c0_17 = arith.constant 0 : index
    %22 = vector.load %arg7[%c0_15, %c0_16, %c0_17] : memref<2x1x32xf32, #tpu.memory_space<vmem>>, vector<1x1x32xf32>
    %23 = vector.shape_cast %22 : vector<1x1x32xf32> to vector<1x32xf32>
    %cst_18 = arith.constant dense<0.000000e+00> : vector<64xf32>
    %24 = vector.multi_reduction <add>, %19, %cst_18 [1] : vector<64x32xf32> to vector<64xf32>
    %25 = vector.shape_cast %24 : vector<64xf32> to vector<64x1xf32>
    %cst_19 = arith.constant 3.200000e+01 : f32
    %26 = vector.broadcast %cst_19 : f32 to vector<64x1xf32>
    %27 = arith.divf %25, %26 : vector<64x1xf32>
    %28 = vector.broadcast %27 : vector<64x1xf32> to vector<64x32xf32>
    %29 = arith.subf %19, %28 : vector<64x32xf32>
    %30 = arith.mulf %29, %29 : vector<64x32xf32>
    %cst_20 = arith.constant dense<0.000000e+00> : vector<64xf32>
    %31 = vector.multi_reduction <add>, %30, %cst_20 [1] : vector<64x32xf32> to vector<64xf32>
    %32 = vector.shape_cast %31 : vector<64xf32> to vector<64x1xf32>
    %cst_21 = arith.constant 3.200000e+01 : f32
    %33 = vector.broadcast %cst_21 : f32 to vector<64x1xf32>
    %34 = arith.divf %32, %33 : vector<64x1xf32>
    %cst_22 = arith.constant 9.99999974E-6 : f32
    %35 = vector.broadcast %cst_22 : f32 to vector<64x1xf32>
    %36 = arith.addf %34, %35 : vector<64x1xf32>
    %37 = math.rsqrt %36 : vector<64x1xf32>
    %38 = vector.broadcast %37 : vector<64x1xf32> to vector<64x32xf32>
    %39 = arith.mulf %29, %38 : vector<64x32xf32>
    %40 = vector.broadcast %21 : vector<1x32xf32> to vector<64x32xf32>
    %41 = arith.mulf %39, %40 : vector<64x32xf32>
    %42 = vector.broadcast %23 : vector<1x32xf32> to vector<64x32xf32>
    %43 = arith.addf %41, %42 : vector<64x32xf32>
    %c0_23 = arith.constant 0 : index
    %c0_24 = arith.constant 0 : index
    %c0_25 = arith.constant 0 : index
    %44 = vector.load %arg8[%c0_23, %c0_24, %c0_25] : memref<2x32x32xf32, #tpu.memory_space<vmem>>, vector<1x32x32xf32>
    %45 = vector.shape_cast %44 : vector<1x32x32xf32> to vector<32x32xf32>
    %cst_26 = arith.constant dense<0.000000e+00> : vector<64x32xf32>
    %46 = tpu.matmul %43, %45, %cst_26 {dimension_numbers = #tpu.dot_dimension_numbers<[1], [0], [0], [1], [0, 0, 1, 1], [], []>} : vector<64x32xf32>, vector<32x32xf32>, vector<64x32xf32> -> vector<64x32xf32>
    %c0_27 = arith.constant 0 : index
    %c0_28 = arith.constant 0 : index
    %c0_29 = arith.constant 0 : index
    %47 = vector.load %arg9[%c0_27, %c0_28, %c0_29] : memref<2x1x32xf32, #tpu.memory_space<vmem>>, vector<1x1x32xf32>
    %48 = vector.shape_cast %47 : vector<1x1x32xf32> to vector<1x32xf32>
    %49 = vector.broadcast %48 : vector<1x32xf32> to vector<64x32xf32>
    %50 = arith.addf %46, %49 : vector<64x32xf32>
    %c0_30 = arith.constant 0 : index
    %c0_31 = arith.constant 0 : index
    %c0_32 = arith.constant 0 : index
    %51 = vector.load %arg10[%c0_30, %c0_31, %c0_32] : memref<2x32x32xf32, #tpu.memory_space<vmem>>, vector<1x32x32xf32>
    %52 = vector.shape_cast %51 : vector<1x32x32xf32> to vector<32x32xf32>
    %cst_33 = arith.constant dense<0.000000e+00> : vector<64x32xf32>
    %53 = tpu.matmul %43, %52, %cst_33 {dimension_numbers = #tpu.dot_dimension_numbers<[1], [0], [0], [1], [0, 0, 1, 1], [], []>} : vector<64x32xf32>, vector<32x32xf32>, vector<64x32xf32> -> vector<64x32xf32>
    %c0_34 = arith.constant 0 : index
    %c0_35 = arith.constant 0 : index
    %c0_36 = arith.constant 0 : index
    %54 = vector.load %arg11[%c0_34, %c0_35, %c0_36] : memref<2x1x32xf32, #tpu.memory_space<vmem>>, vector<1x1x32xf32>
    %55 = vector.shape_cast %54 : vector<1x1x32xf32> to vector<1x32xf32>
    %56 = vector.broadcast %55 : vector<1x32xf32> to vector<64x32xf32>
    %57 = arith.addf %53, %56 : vector<64x32xf32>
    %c0_37 = arith.constant 0 : index
    %c0_38 = arith.constant 0 : index
    %c0_39 = arith.constant 0 : index
    %58 = vector.load %arg12[%c0_37, %c0_38, %c0_39] : memref<2x32x32xf32, #tpu.memory_space<vmem>>, vector<1x32x32xf32>
    %59 = vector.shape_cast %58 : vector<1x32x32xf32> to vector<32x32xf32>
    %cst_40 = arith.constant dense<0.000000e+00> : vector<64x32xf32>
    %60 = tpu.matmul %43, %59, %cst_40 {dimension_numbers = #tpu.dot_dimension_numbers<[1], [0], [0], [1], [0, 0, 1, 1], [], []>} : vector<64x32xf32>, vector<32x32xf32>, vector<64x32xf32> -> vector<64x32xf32>
    %c0_41 = arith.constant 0 : index
    %c0_42 = arith.constant 0 : index
    %c0_43 = arith.constant 0 : index
    %61 = vector.load %arg13[%c0_41, %c0_42, %c0_43] : memref<2x1x32xf32, #tpu.memory_space<vmem>>, vector<1x1x32xf32>
    %62 = vector.shape_cast %61 : vector<1x1x32xf32> to vector<1x32xf32>
    %63 = vector.broadcast %62 : vector<1x32xf32> to vector<64x32xf32>
    %64 = arith.addf %60, %63 : vector<64x32xf32>
    %65 = vector.extract_strided_slice %50 {offsets = [0, 0], sizes = [64, 8], strides = [1, 1]} : vector<64x32xf32> to vector<64x8xf32>
    %cst_44 = arith.constant 0.353553385 : f32
    %66 = vector.broadcast %cst_44 : f32 to vector<64x8xf32>
    %67 = arith.mulf %65, %66 : vector<64x8xf32>
    %68 = vector.extract_strided_slice %57 {offsets = [0, 0], sizes = [64, 8], strides = [1, 1]} : vector<64x32xf32> to vector<64x8xf32>
    %69 = vector.extract_strided_slice %64 {offsets = [0, 0], sizes = [64, 8], strides = [1, 1]} : vector<64x32xf32> to vector<64x8xf32>
    %cst_45 = arith.constant dense<0.000000e+00> : vector<64x64xf32>
    %70 = tpu.matmul %67, %68, %cst_45 {dimension_numbers = #tpu.dot_dimension_numbers<[1], [1], [0], [0], [0, 0, 1, 0], [], []>} : vector<64x8xf32>, vector<64x8xf32>, vector<64x64xf32> -> vector<64x64xf32>
    %cst_46 = arith.constant dense<0xFF800000> : vector<64xf32>
    %71 = vector.multi_reduction <maximumf>, %70, %cst_46 [1] : vector<64x64xf32> to vector<64xf32>
    %72 = vector.shape_cast %71 : vector<64xf32> to vector<64x1xf32>
    %73 = vector.broadcast %72 : vector<64x1xf32> to vector<64x64xf32>
    %74 = arith.subf %70, %73 : vector<64x64xf32>
    %75 = math.exp %74 : vector<64x64xf32>
    %cst_47 = arith.constant dense<0.000000e+00> : vector<64xf32>
    %76 = vector.multi_reduction <add>, %75, %cst_47 [1] : vector<64x64xf32> to vector<64xf32>
    %77 = vector.shape_cast %76 : vector<64xf32> to vector<64x1xf32>
    %78 = vector.broadcast %77 : vector<64x1xf32> to vector<64x64xf32>
    %79 = arith.divf %75, %78 : vector<64x64xf32>
    %cst_48 = arith.constant dense<0.000000e+00> : vector<64x8xf32>
    %80 = tpu.matmul %79, %69, %cst_48 {dimension_numbers = #tpu.dot_dimension_numbers<[1], [0], [0], [1], [0, 0, 1, 1], [], []>} : vector<64x64xf32>, vector<64x8xf32>, vector<64x8xf32> -> vector<64x8xf32>
    %81 = vector.extract_strided_slice %50 {offsets = [0, 8], sizes = [64, 8], strides = [1, 1]} : vector<64x32xf32> to vector<64x8xf32>
    %cst_49 = arith.constant 0.353553385 : f32
    %82 = vector.broadcast %cst_49 : f32 to vector<64x8xf32>
    %83 = arith.mulf %81, %82 : vector<64x8xf32>
    %84 = vector.extract_strided_slice %57 {offsets = [0, 8], sizes = [64, 8], strides = [1, 1]} : vector<64x32xf32> to vector<64x8xf32>
    %85 = vector.extract_strided_slice %64 {offsets = [0, 8], sizes = [64, 8], strides = [1, 1]} : vector<64x32xf32> to vector<64x8xf32>
    %cst_50 = arith.constant dense<0.000000e+00> : vector<64x64xf32>
    %86 = tpu.matmul %83, %84, %cst_50 {dimension_numbers = #tpu.dot_dimension_numbers<[1], [1], [0], [0], [0, 0, 1, 0], [], []>} : vector<64x8xf32>, vector<64x8xf32>, vector<64x64xf32> -> vector<64x64xf32>
    %cst_51 = arith.constant dense<0xFF800000> : vector<64xf32>
    %87 = vector.multi_reduction <maximumf>, %86, %cst_51 [1] : vector<64x64xf32> to vector<64xf32>
    %88 = vector.shape_cast %87 : vector<64xf32> to vector<64x1xf32>
    %89 = vector.broadcast %88 : vector<64x1xf32> to vector<64x64xf32>
    %90 = arith.subf %86, %89 : vector<64x64xf32>
    %91 = math.exp %90 : vector<64x64xf32>
    %cst_52 = arith.constant dense<0.000000e+00> : vector<64xf32>
    %92 = vector.multi_reduction <add>, %91, %cst_52 [1] : vector<64x64xf32> to vector<64xf32>
    %93 = vector.shape_cast %92 : vector<64xf32> to vector<64x1xf32>
    %94 = vector.broadcast %93 : vector<64x1xf32> to vector<64x64xf32>
    %95 = arith.divf %91, %94 : vector<64x64xf32>
    %cst_53 = arith.constant dense<0.000000e+00> : vector<64x8xf32>
    %96 = tpu.matmul %95, %85, %cst_53 {dimension_numbers = #tpu.dot_dimension_numbers<[1], [0], [0], [1], [0, 0, 1, 1], [], []>} : vector<64x64xf32>, vector<64x8xf32>, vector<64x8xf32> -> vector<64x8xf32>
    %97 = vector.extract_strided_slice %50 {offsets = [0, 16], sizes = [64, 8], strides = [1, 1]} : vector<64x32xf32> to vector<64x8xf32>
    %cst_54 = arith.constant 0.353553385 : f32
    %98 = vector.broadcast %cst_54 : f32 to vector<64x8xf32>
    %99 = arith.mulf %97, %98 : vector<64x8xf32>
    %100 = vector.extract_strided_slice %57 {offsets = [0, 16], sizes = [64, 8], strides = [1, 1]} : vector<64x32xf32> to vector<64x8xf32>
    %101 = vector.extract_strided_slice %64 {offsets = [0, 16], sizes = [64, 8], strides = [1, 1]} : vector<64x32xf32> to vector<64x8xf32>
    %cst_55 = arith.constant dense<0.000000e+00> : vector<64x64xf32>
    %102 = tpu.matmul %99, %100, %cst_55 {dimension_numbers = #tpu.dot_dimension_numbers<[1], [1], [0], [0], [0, 0, 1, 0], [], []>} : vector<64x8xf32>, vector<64x8xf32>, vector<64x64xf32> -> vector<64x64xf32>
    %cst_56 = arith.constant dense<0xFF800000> : vector<64xf32>
    %103 = vector.multi_reduction <maximumf>, %102, %cst_56 [1] : vector<64x64xf32> to vector<64xf32>
    %104 = vector.shape_cast %103 : vector<64xf32> to vector<64x1xf32>
    %105 = vector.broadcast %104 : vector<64x1xf32> to vector<64x64xf32>
    %106 = arith.subf %102, %105 : vector<64x64xf32>
    %107 = math.exp %106 : vector<64x64xf32>
    %cst_57 = arith.constant dense<0.000000e+00> : vector<64xf32>
    %108 = vector.multi_reduction <add>, %107, %cst_57 [1] : vector<64x64xf32> to vector<64xf32>
    %109 = vector.shape_cast %108 : vector<64xf32> to vector<64x1xf32>
    %110 = vector.broadcast %109 : vector<64x1xf32> to vector<64x64xf32>
    %111 = arith.divf %107, %110 : vector<64x64xf32>
    %cst_58 = arith.constant dense<0.000000e+00> : vector<64x8xf32>
    %112 = tpu.matmul %111, %101, %cst_58 {dimension_numbers = #tpu.dot_dimension_numbers<[1], [0], [0], [1], [0, 0, 1, 1], [], []>} : vector<64x64xf32>, vector<64x8xf32>, vector<64x8xf32> -> vector<64x8xf32>
    %113 = vector.extract_strided_slice %50 {offsets = [0, 24], sizes = [64, 8], strides = [1, 1]} : vector<64x32xf32> to vector<64x8xf32>
    %cst_59 = arith.constant 0.353553385 : f32
    %114 = vector.broadcast %cst_59 : f32 to vector<64x8xf32>
    %115 = arith.mulf %113, %114 : vector<64x8xf32>
    %116 = vector.extract_strided_slice %57 {offsets = [0, 24], sizes = [64, 8], strides = [1, 1]} : vector<64x32xf32> to vector<64x8xf32>
    %117 = vector.extract_strided_slice %64 {offsets = [0, 24], sizes = [64, 8], strides = [1, 1]} : vector<64x32xf32> to vector<64x8xf32>
    %cst_60 = arith.constant dense<0.000000e+00> : vector<64x64xf32>
    %118 = tpu.matmul %115, %116, %cst_60 {dimension_numbers = #tpu.dot_dimension_numbers<[1], [1], [0], [0], [0, 0, 1, 0], [], []>} : vector<64x8xf32>, vector<64x8xf32>, vector<64x64xf32> -> vector<64x64xf32>
    %cst_61 = arith.constant dense<0xFF800000> : vector<64xf32>
    %119 = vector.multi_reduction <maximumf>, %118, %cst_61 [1] : vector<64x64xf32> to vector<64xf32>
    %120 = vector.shape_cast %119 : vector<64xf32> to vector<64x1xf32>
    %121 = vector.broadcast %120 : vector<64x1xf32> to vector<64x64xf32>
    %122 = arith.subf %118, %121 : vector<64x64xf32>
    %123 = math.exp %122 : vector<64x64xf32>
    %cst_62 = arith.constant dense<0.000000e+00> : vector<64xf32>
    %124 = vector.multi_reduction <add>, %123, %cst_62 [1] : vector<64x64xf32> to vector<64xf32>
    %125 = vector.shape_cast %124 : vector<64xf32> to vector<64x1xf32>
    %126 = vector.broadcast %125 : vector<64x1xf32> to vector<64x64xf32>
    %127 = arith.divf %123, %126 : vector<64x64xf32>
    %cst_63 = arith.constant dense<0.000000e+00> : vector<64x8xf32>
    %128 = tpu.matmul %127, %117, %cst_63 {dimension_numbers = #tpu.dot_dimension_numbers<[1], [0], [0], [1], [0, 0, 1, 1], [], []>} : vector<64x64xf32>, vector<64x8xf32>, vector<64x8xf32> -> vector<64x8xf32>
    %129 = tpu.concatenate %80, %96, %112, %128 in 1 : vector<64x8xf32>, vector<64x8xf32>, vector<64x8xf32>, vector<64x8xf32> -> vector<64x32xf32>
    %c0_64 = arith.constant 0 : index
    %c0_65 = arith.constant 0 : index
    %c0_66 = arith.constant 0 : index
    %130 = vector.load %arg14[%c0_64, %c0_65, %c0_66] : memref<2x32x32xf32, #tpu.memory_space<vmem>>, vector<1x32x32xf32>
    %131 = vector.shape_cast %130 : vector<1x32x32xf32> to vector<32x32xf32>
    %cst_67 = arith.constant dense<0.000000e+00> : vector<64x32xf32>
    %132 = tpu.matmul %129, %131, %cst_67 {dimension_numbers = #tpu.dot_dimension_numbers<[1], [0], [0], [1], [0, 0, 1, 1], [], []>} : vector<64x32xf32>, vector<32x32xf32>, vector<64x32xf32> -> vector<64x32xf32>
    %133 = arith.addf %19, %132 : vector<64x32xf32>
    %c0_68 = arith.constant 0 : index
    %c0_69 = arith.constant 0 : index
    %c0_70 = arith.constant 0 : index
    %134 = vector.load %arg15[%c0_68, %c0_69, %c0_70] : memref<2x1x32xf32, #tpu.memory_space<vmem>>, vector<1x1x32xf32>
    %135 = vector.shape_cast %134 : vector<1x1x32xf32> to vector<1x32xf32>
    %136 = vector.broadcast %135 : vector<1x32xf32> to vector<64x32xf32>
    %137 = arith.addf %133, %136 : vector<64x32xf32>
    %c0_71 = arith.constant 0 : index
    %c0_72 = arith.constant 0 : index
    %c0_73 = arith.constant 0 : index
    %138 = vector.load %arg16[%c0_71, %c0_72, %c0_73] : memref<2x1x32xf32, #tpu.memory_space<vmem>>, vector<1x1x32xf32>
    %139 = vector.shape_cast %138 : vector<1x1x32xf32> to vector<1x32xf32>
    %c0_74 = arith.constant 0 : index
    %c0_75 = arith.constant 0 : index
    %c0_76 = arith.constant 0 : index
    %140 = vector.load %arg17[%c0_74, %c0_75, %c0_76] : memref<2x1x32xf32, #tpu.memory_space<vmem>>, vector<1x1x32xf32>
    %141 = vector.shape_cast %140 : vector<1x1x32xf32> to vector<1x32xf32>
    %cst_77 = arith.constant dense<0.000000e+00> : vector<64xf32>
    %142 = vector.multi_reduction <add>, %137, %cst_77 [1] : vector<64x32xf32> to vector<64xf32>
    %143 = vector.shape_cast %142 : vector<64xf32> to vector<64x1xf32>
    %cst_78 = arith.constant 3.200000e+01 : f32
    %144 = vector.broadcast %cst_78 : f32 to vector<64x1xf32>
    %145 = arith.divf %143, %144 : vector<64x1xf32>
    %146 = vector.broadcast %145 : vector<64x1xf32> to vector<64x32xf32>
    %147 = arith.subf %137, %146 : vector<64x32xf32>
    %148 = arith.mulf %147, %147 : vector<64x32xf32>
    %cst_79 = arith.constant dense<0.000000e+00> : vector<64xf32>
    %149 = vector.multi_reduction <add>, %148, %cst_79 [1] : vector<64x32xf32> to vector<64xf32>
    %150 = vector.shape_cast %149 : vector<64xf32> to vector<64x1xf32>
    %cst_80 = arith.constant 3.200000e+01 : f32
    %151 = vector.broadcast %cst_80 : f32 to vector<64x1xf32>
    %152 = arith.divf %150, %151 : vector<64x1xf32>
    %cst_81 = arith.constant 9.99999974E-6 : f32
    %153 = vector.broadcast %cst_81 : f32 to vector<64x1xf32>
    %154 = arith.addf %152, %153 : vector<64x1xf32>
    %155 = math.rsqrt %154 : vector<64x1xf32>
    %156 = vector.broadcast %155 : vector<64x1xf32> to vector<64x32xf32>
    %157 = arith.mulf %147, %156 : vector<64x32xf32>
    %158 = vector.broadcast %139 : vector<1x32xf32> to vector<64x32xf32>
    %159 = arith.mulf %157, %158 : vector<64x32xf32>
    %160 = vector.broadcast %141 : vector<1x32xf32> to vector<64x32xf32>
    %161 = arith.addf %159, %160 : vector<64x32xf32>
    %c0_82 = arith.constant 0 : index
    %c0_83 = arith.constant 0 : index
    %c0_84 = arith.constant 0 : index
    %162 = vector.load %arg18[%c0_82, %c0_83, %c0_84] : memref<2x32x128xf32, #tpu.memory_space<vmem>>, vector<1x32x128xf32>
    %163 = vector.shape_cast %162 : vector<1x32x128xf32> to vector<32x128xf32>
    %cst_85 = arith.constant dense<0.000000e+00> : vector<64x128xf32>
    %164 = tpu.matmul %161, %163, %cst_85 {dimension_numbers = #tpu.dot_dimension_numbers<[1], [0], [0], [1], [0, 0, 1, 1], [], []>} : vector<64x32xf32>, vector<32x128xf32>, vector<64x128xf32> -> vector<64x128xf32>
    %cst_86 = arith.constant 0.000000e+00 : f32
    %165 = vector.broadcast %cst_86 : f32 to vector<64x128xf32>
    %166 = arith.maximumf %164, %165 : vector<64x128xf32>
    %c0_87 = arith.constant 0 : index
    %c0_88 = arith.constant 0 : index
    %c0_89 = arith.constant 0 : index
    %167 = vector.load %arg19[%c0_87, %c0_88, %c0_89] : memref<2x128x32xf32, #tpu.memory_space<vmem>>, vector<1x128x32xf32>
    %168 = vector.shape_cast %167 : vector<1x128x32xf32> to vector<128x32xf32>
    %cst_90 = arith.constant dense<0.000000e+00> : vector<64x32xf32>
    %169 = tpu.matmul %166, %168, %cst_90 {dimension_numbers = #tpu.dot_dimension_numbers<[1], [0], [0], [1], [0, 0, 1, 1], [], []>} : vector<64x128xf32>, vector<128x32xf32>, vector<64x32xf32> -> vector<64x32xf32>
    %170 = arith.addf %137, %169 : vector<64x32xf32>
    %c1 = arith.constant 1 : index
    %c0_91 = arith.constant 0 : index
    %c0_92 = arith.constant 0 : index
    %171 = vector.load %arg6[%c1, %c0_91, %c0_92] : memref<2x1x32xf32, #tpu.memory_space<vmem>>, vector<1x1x32xf32>
    %172 = vector.shape_cast %171 : vector<1x1x32xf32> to vector<1x32xf32>
    %c1_93 = arith.constant 1 : index
    %c0_94 = arith.constant 0 : index
    %c0_95 = arith.constant 0 : index
    %173 = vector.load %arg7[%c1_93, %c0_94, %c0_95] : memref<2x1x32xf32, #tpu.memory_space<vmem>>, vector<1x1x32xf32>
    %174 = vector.shape_cast %173 : vector<1x1x32xf32> to vector<1x32xf32>
    %cst_96 = arith.constant dense<0.000000e+00> : vector<64xf32>
    %175 = vector.multi_reduction <add>, %170, %cst_96 [1] : vector<64x32xf32> to vector<64xf32>
    %176 = vector.shape_cast %175 : vector<64xf32> to vector<64x1xf32>
    %cst_97 = arith.constant 3.200000e+01 : f32
    %177 = vector.broadcast %cst_97 : f32 to vector<64x1xf32>
    %178 = arith.divf %176, %177 : vector<64x1xf32>
    %179 = vector.broadcast %178 : vector<64x1xf32> to vector<64x32xf32>
    %180 = arith.subf %170, %179 : vector<64x32xf32>
    %181 = arith.mulf %180, %180 : vector<64x32xf32>
    %cst_98 = arith.constant dense<0.000000e+00> : vector<64xf32>
    %182 = vector.multi_reduction <add>, %181, %cst_98 [1] : vector<64x32xf32> to vector<64xf32>
    %183 = vector.shape_cast %182 : vector<64xf32> to vector<64x1xf32>
    %cst_99 = arith.constant 3.200000e+01 : f32
    %184 = vector.broadcast %cst_99 : f32 to vector<64x1xf32>
    %185 = arith.divf %183, %184 : vector<64x1xf32>
    %cst_100 = arith.constant 9.99999974E-6 : f32
    %186 = vector.broadcast %cst_100 : f32 to vector<64x1xf32>
    %187 = arith.addf %185, %186 : vector<64x1xf32>
    %188 = math.rsqrt %187 : vector<64x1xf32>
    %189 = vector.broadcast %188 : vector<64x1xf32> to vector<64x32xf32>
    %190 = arith.mulf %180, %189 : vector<64x32xf32>
    %191 = vector.broadcast %172 : vector<1x32xf32> to vector<64x32xf32>
    %192 = arith.mulf %190, %191 : vector<64x32xf32>
    %193 = vector.broadcast %174 : vector<1x32xf32> to vector<64x32xf32>
    %194 = arith.addf %192, %193 : vector<64x32xf32>
    %c1_101 = arith.constant 1 : index
    %c0_102 = arith.constant 0 : index
    %c0_103 = arith.constant 0 : index
    %195 = vector.load %arg8[%c1_101, %c0_102, %c0_103] : memref<2x32x32xf32, #tpu.memory_space<vmem>>, vector<1x32x32xf32>
    %196 = vector.shape_cast %195 : vector<1x32x32xf32> to vector<32x32xf32>
    %cst_104 = arith.constant dense<0.000000e+00> : vector<64x32xf32>
    %197 = tpu.matmul %194, %196, %cst_104 {dimension_numbers = #tpu.dot_dimension_numbers<[1], [0], [0], [1], [0, 0, 1, 1], [], []>} : vector<64x32xf32>, vector<32x32xf32>, vector<64x32xf32> -> vector<64x32xf32>
    %c1_105 = arith.constant 1 : index
    %c0_106 = arith.constant 0 : index
    %c0_107 = arith.constant 0 : index
    %198 = vector.load %arg9[%c1_105, %c0_106, %c0_107] : memref<2x1x32xf32, #tpu.memory_space<vmem>>, vector<1x1x32xf32>
    %199 = vector.shape_cast %198 : vector<1x1x32xf32> to vector<1x32xf32>
    %200 = vector.broadcast %199 : vector<1x32xf32> to vector<64x32xf32>
    %201 = arith.addf %197, %200 : vector<64x32xf32>
    %c1_108 = arith.constant 1 : index
    %c0_109 = arith.constant 0 : index
    %c0_110 = arith.constant 0 : index
    %202 = vector.load %arg10[%c1_108, %c0_109, %c0_110] : memref<2x32x32xf32, #tpu.memory_space<vmem>>, vector<1x32x32xf32>
    %203 = vector.shape_cast %202 : vector<1x32x32xf32> to vector<32x32xf32>
    %cst_111 = arith.constant dense<0.000000e+00> : vector<64x32xf32>
    %204 = tpu.matmul %194, %203, %cst_111 {dimension_numbers = #tpu.dot_dimension_numbers<[1], [0], [0], [1], [0, 0, 1, 1], [], []>} : vector<64x32xf32>, vector<32x32xf32>, vector<64x32xf32> -> vector<64x32xf32>
    %c1_112 = arith.constant 1 : index
    %c0_113 = arith.constant 0 : index
    %c0_114 = arith.constant 0 : index
    %205 = vector.load %arg11[%c1_112, %c0_113, %c0_114] : memref<2x1x32xf32, #tpu.memory_space<vmem>>, vector<1x1x32xf32>
    %206 = vector.shape_cast %205 : vector<1x1x32xf32> to vector<1x32xf32>
    %207 = vector.broadcast %206 : vector<1x32xf32> to vector<64x32xf32>
    %208 = arith.addf %204, %207 : vector<64x32xf32>
    %c1_115 = arith.constant 1 : index
    %c0_116 = arith.constant 0 : index
    %c0_117 = arith.constant 0 : index
    %209 = vector.load %arg12[%c1_115, %c0_116, %c0_117] : memref<2x32x32xf32, #tpu.memory_space<vmem>>, vector<1x32x32xf32>
    %210 = vector.shape_cast %209 : vector<1x32x32xf32> to vector<32x32xf32>
    %cst_118 = arith.constant dense<0.000000e+00> : vector<64x32xf32>
    %211 = tpu.matmul %194, %210, %cst_118 {dimension_numbers = #tpu.dot_dimension_numbers<[1], [0], [0], [1], [0, 0, 1, 1], [], []>} : vector<64x32xf32>, vector<32x32xf32>, vector<64x32xf32> -> vector<64x32xf32>
    %c1_119 = arith.constant 1 : index
    %c0_120 = arith.constant 0 : index
    %c0_121 = arith.constant 0 : index
    %212 = vector.load %arg13[%c1_119, %c0_120, %c0_121] : memref<2x1x32xf32, #tpu.memory_space<vmem>>, vector<1x1x32xf32>
    %213 = vector.shape_cast %212 : vector<1x1x32xf32> to vector<1x32xf32>
    %214 = vector.broadcast %213 : vector<1x32xf32> to vector<64x32xf32>
    %215 = arith.addf %211, %214 : vector<64x32xf32>
    %216 = vector.extract_strided_slice %201 {offsets = [0, 0], sizes = [64, 8], strides = [1, 1]} : vector<64x32xf32> to vector<64x8xf32>
    %cst_122 = arith.constant 0.353553385 : f32
    %217 = vector.broadcast %cst_122 : f32 to vector<64x8xf32>
    %218 = arith.mulf %216, %217 : vector<64x8xf32>
    %219 = vector.extract_strided_slice %208 {offsets = [0, 0], sizes = [64, 8], strides = [1, 1]} : vector<64x32xf32> to vector<64x8xf32>
    %220 = vector.extract_strided_slice %215 {offsets = [0, 0], sizes = [64, 8], strides = [1, 1]} : vector<64x32xf32> to vector<64x8xf32>
    %cst_123 = arith.constant dense<0.000000e+00> : vector<64x64xf32>
    %221 = tpu.matmul %218, %219, %cst_123 {dimension_numbers = #tpu.dot_dimension_numbers<[1], [1], [0], [0], [0, 0, 1, 0], [], []>} : vector<64x8xf32>, vector<64x8xf32>, vector<64x64xf32> -> vector<64x64xf32>
    %cst_124 = arith.constant dense<0xFF800000> : vector<64xf32>
    %222 = vector.multi_reduction <maximumf>, %221, %cst_124 [1] : vector<64x64xf32> to vector<64xf32>
    %223 = vector.shape_cast %222 : vector<64xf32> to vector<64x1xf32>
    %224 = vector.broadcast %223 : vector<64x1xf32> to vector<64x64xf32>
    %225 = arith.subf %221, %224 : vector<64x64xf32>
    %226 = math.exp %225 : vector<64x64xf32>
    %cst_125 = arith.constant dense<0.000000e+00> : vector<64xf32>
    %227 = vector.multi_reduction <add>, %226, %cst_125 [1] : vector<64x64xf32> to vector<64xf32>
    %228 = vector.shape_cast %227 : vector<64xf32> to vector<64x1xf32>
    %229 = vector.broadcast %228 : vector<64x1xf32> to vector<64x64xf32>
    %230 = arith.divf %226, %229 : vector<64x64xf32>
    %cst_126 = arith.constant dense<0.000000e+00> : vector<64x8xf32>
    %231 = tpu.matmul %230, %220, %cst_126 {dimension_numbers = #tpu.dot_dimension_numbers<[1], [0], [0], [1], [0, 0, 1, 1], [], []>} : vector<64x64xf32>, vector<64x8xf32>, vector<64x8xf32> -> vector<64x8xf32>
    %232 = vector.extract_strided_slice %201 {offsets = [0, 8], sizes = [64, 8], strides = [1, 1]} : vector<64x32xf32> to vector<64x8xf32>
    %cst_127 = arith.constant 0.353553385 : f32
    %233 = vector.broadcast %cst_127 : f32 to vector<64x8xf32>
    %234 = arith.mulf %232, %233 : vector<64x8xf32>
    %235 = vector.extract_strided_slice %208 {offsets = [0, 8], sizes = [64, 8], strides = [1, 1]} : vector<64x32xf32> to vector<64x8xf32>
    %236 = vector.extract_strided_slice %215 {offsets = [0, 8], sizes = [64, 8], strides = [1, 1]} : vector<64x32xf32> to vector<64x8xf32>
    %cst_128 = arith.constant dense<0.000000e+00> : vector<64x64xf32>
    %237 = tpu.matmul %234, %235, %cst_128 {dimension_numbers = #tpu.dot_dimension_numbers<[1], [1], [0], [0], [0, 0, 1, 0], [], []>} : vector<64x8xf32>, vector<64x8xf32>, vector<64x64xf32> -> vector<64x64xf32>
    %cst_129 = arith.constant dense<0xFF800000> : vector<64xf32>
    %238 = vector.multi_reduction <maximumf>, %237, %cst_129 [1] : vector<64x64xf32> to vector<64xf32>
    %239 = vector.shape_cast %238 : vector<64xf32> to vector<64x1xf32>
    %240 = vector.broadcast %239 : vector<64x1xf32> to vector<64x64xf32>
    %241 = arith.subf %237, %240 : vector<64x64xf32>
    %242 = math.exp %241 : vector<64x64xf32>
    %cst_130 = arith.constant dense<0.000000e+00> : vector<64xf32>
    %243 = vector.multi_reduction <add>, %242, %cst_130 [1] : vector<64x64xf32> to vector<64xf32>
    %244 = vector.shape_cast %243 : vector<64xf32> to vector<64x1xf32>
    %245 = vector.broadcast %244 : vector<64x1xf32> to vector<64x64xf32>
    %246 = arith.divf %242, %245 : vector<64x64xf32>
    %cst_131 = arith.constant dense<0.000000e+00> : vector<64x8xf32>
    %247 = tpu.matmul %246, %236, %cst_131 {dimension_numbers = #tpu.dot_dimension_numbers<[1], [0], [0], [1], [0, 0, 1, 1], [], []>} : vector<64x64xf32>, vector<64x8xf32>, vector<64x8xf32> -> vector<64x8xf32>
    %248 = vector.extract_strided_slice %201 {offsets = [0, 16], sizes = [64, 8], strides = [1, 1]} : vector<64x32xf32> to vector<64x8xf32>
    %cst_132 = arith.constant 0.353553385 : f32
    %249 = vector.broadcast %cst_132 : f32 to vector<64x8xf32>
    %250 = arith.mulf %248, %249 : vector<64x8xf32>
    %251 = vector.extract_strided_slice %208 {offsets = [0, 16], sizes = [64, 8], strides = [1, 1]} : vector<64x32xf32> to vector<64x8xf32>
    %252 = vector.extract_strided_slice %215 {offsets = [0, 16], sizes = [64, 8], strides = [1, 1]} : vector<64x32xf32> to vector<64x8xf32>
    %cst_133 = arith.constant dense<0.000000e+00> : vector<64x64xf32>
    %253 = tpu.matmul %250, %251, %cst_133 {dimension_numbers = #tpu.dot_dimension_numbers<[1], [1], [0], [0], [0, 0, 1, 0], [], []>} : vector<64x8xf32>, vector<64x8xf32>, vector<64x64xf32> -> vector<64x64xf32>
    %cst_134 = arith.constant dense<0xFF800000> : vector<64xf32>
    %254 = vector.multi_reduction <maximumf>, %253, %cst_134 [1] : vector<64x64xf32> to vector<64xf32>
    %255 = vector.shape_cast %254 : vector<64xf32> to vector<64x1xf32>
    %256 = vector.broadcast %255 : vector<64x1xf32> to vector<64x64xf32>
    %257 = arith.subf %253, %256 : vector<64x64xf32>
    %258 = math.exp %257 : vector<64x64xf32>
    %cst_135 = arith.constant dense<0.000000e+00> : vector<64xf32>
    %259 = vector.multi_reduction <add>, %258, %cst_135 [1] : vector<64x64xf32> to vector<64xf32>
    %260 = vector.shape_cast %259 : vector<64xf32> to vector<64x1xf32>
    %261 = vector.broadcast %260 : vector<64x1xf32> to vector<64x64xf32>
    %262 = arith.divf %258, %261 : vector<64x64xf32>
    %cst_136 = arith.constant dense<0.000000e+00> : vector<64x8xf32>
    %263 = tpu.matmul %262, %252, %cst_136 {dimension_numbers = #tpu.dot_dimension_numbers<[1], [0], [0], [1], [0, 0, 1, 1], [], []>} : vector<64x64xf32>, vector<64x8xf32>, vector<64x8xf32> -> vector<64x8xf32>
    %264 = vector.extract_strided_slice %201 {offsets = [0, 24], sizes = [64, 8], strides = [1, 1]} : vector<64x32xf32> to vector<64x8xf32>
    %cst_137 = arith.constant 0.353553385 : f32
    %265 = vector.broadcast %cst_137 : f32 to vector<64x8xf32>
    %266 = arith.mulf %264, %265 : vector<64x8xf32>
    %267 = vector.extract_strided_slice %208 {offsets = [0, 24], sizes = [64, 8], strides = [1, 1]} : vector<64x32xf32> to vector<64x8xf32>
    %268 = vector.extract_strided_slice %215 {offsets = [0, 24], sizes = [64, 8], strides = [1, 1]} : vector<64x32xf32> to vector<64x8xf32>
    %cst_138 = arith.constant dense<0.000000e+00> : vector<64x64xf32>
    %269 = tpu.matmul %266, %267, %cst_138 {dimension_numbers = #tpu.dot_dimension_numbers<[1], [1], [0], [0], [0, 0, 1, 0], [], []>} : vector<64x8xf32>, vector<64x8xf32>, vector<64x64xf32> -> vector<64x64xf32>
    %cst_139 = arith.constant dense<0xFF800000> : vector<64xf32>
    %270 = vector.multi_reduction <maximumf>, %269, %cst_139 [1] : vector<64x64xf32> to vector<64xf32>
    %271 = vector.shape_cast %270 : vector<64xf32> to vector<64x1xf32>
    %272 = vector.broadcast %271 : vector<64x1xf32> to vector<64x64xf32>
    %273 = arith.subf %269, %272 : vector<64x64xf32>
    %274 = math.exp %273 : vector<64x64xf32>
    %cst_140 = arith.constant dense<0.000000e+00> : vector<64xf32>
    %275 = vector.multi_reduction <add>, %274, %cst_140 [1] : vector<64x64xf32> to vector<64xf32>
    %276 = vector.shape_cast %275 : vector<64xf32> to vector<64x1xf32>
    %277 = vector.broadcast %276 : vector<64x1xf32> to vector<64x64xf32>
    %278 = arith.divf %274, %277 : vector<64x64xf32>
    %cst_141 = arith.constant dense<0.000000e+00> : vector<64x8xf32>
    %279 = tpu.matmul %278, %268, %cst_141 {dimension_numbers = #tpu.dot_dimension_numbers<[1], [0], [0], [1], [0, 0, 1, 1], [], []>} : vector<64x64xf32>, vector<64x8xf32>, vector<64x8xf32> -> vector<64x8xf32>
    %280 = tpu.concatenate %231, %247, %263, %279 in 1 : vector<64x8xf32>, vector<64x8xf32>, vector<64x8xf32>, vector<64x8xf32> -> vector<64x32xf32>
    %c1_142 = arith.constant 1 : index
    %c0_143 = arith.constant 0 : index
    %c0_144 = arith.constant 0 : index
    %281 = vector.load %arg14[%c1_142, %c0_143, %c0_144] : memref<2x32x32xf32, #tpu.memory_space<vmem>>, vector<1x32x32xf32>
    %282 = vector.shape_cast %281 : vector<1x32x32xf32> to vector<32x32xf32>
    %cst_145 = arith.constant dense<0.000000e+00> : vector<64x32xf32>
    %283 = tpu.matmul %280, %282, %cst_145 {dimension_numbers = #tpu.dot_dimension_numbers<[1], [0], [0], [1], [0, 0, 1, 1], [], []>} : vector<64x32xf32>, vector<32x32xf32>, vector<64x32xf32> -> vector<64x32xf32>
    %284 = arith.addf %170, %283 : vector<64x32xf32>
    %c1_146 = arith.constant 1 : index
    %c0_147 = arith.constant 0 : index
    %c0_148 = arith.constant 0 : index
    %285 = vector.load %arg15[%c1_146, %c0_147, %c0_148] : memref<2x1x32xf32, #tpu.memory_space<vmem>>, vector<1x1x32xf32>
    %286 = vector.shape_cast %285 : vector<1x1x32xf32> to vector<1x32xf32>
    %287 = vector.broadcast %286 : vector<1x32xf32> to vector<64x32xf32>
    %288 = arith.addf %284, %287 : vector<64x32xf32>
    %c1_149 = arith.constant 1 : index
    %c0_150 = arith.constant 0 : index
    %c0_151 = arith.constant 0 : index
    %289 = vector.load %arg16[%c1_149, %c0_150, %c0_151] : memref<2x1x32xf32, #tpu.memory_space<vmem>>, vector<1x1x32xf32>
    %290 = vector.shape_cast %289 : vector<1x1x32xf32> to vector<1x32xf32>
    %c1_152 = arith.constant 1 : index
    %c0_153 = arith.constant 0 : index
    %c0_154 = arith.constant 0 : index
    %291 = vector.load %arg17[%c1_152, %c0_153, %c0_154] : memref<2x1x32xf32, #tpu.memory_space<vmem>>, vector<1x1x32xf32>
    %292 = vector.shape_cast %291 : vector<1x1x32xf32> to vector<1x32xf32>
    %cst_155 = arith.constant dense<0.000000e+00> : vector<64xf32>
    %293 = vector.multi_reduction <add>, %288, %cst_155 [1] : vector<64x32xf32> to vector<64xf32>
    %294 = vector.shape_cast %293 : vector<64xf32> to vector<64x1xf32>
    %cst_156 = arith.constant 3.200000e+01 : f32
    %295 = vector.broadcast %cst_156 : f32 to vector<64x1xf32>
    %296 = arith.divf %294, %295 : vector<64x1xf32>
    %297 = vector.broadcast %296 : vector<64x1xf32> to vector<64x32xf32>
    %298 = arith.subf %288, %297 : vector<64x32xf32>
    %299 = arith.mulf %298, %298 : vector<64x32xf32>
    %cst_157 = arith.constant dense<0.000000e+00> : vector<64xf32>
    %300 = vector.multi_reduction <add>, %299, %cst_157 [1] : vector<64x32xf32> to vector<64xf32>
    %301 = vector.shape_cast %300 : vector<64xf32> to vector<64x1xf32>
    %cst_158 = arith.constant 3.200000e+01 : f32
    %302 = vector.broadcast %cst_158 : f32 to vector<64x1xf32>
    %303 = arith.divf %301, %302 : vector<64x1xf32>
    %cst_159 = arith.constant 9.99999974E-6 : f32
    %304 = vector.broadcast %cst_159 : f32 to vector<64x1xf32>
    %305 = arith.addf %303, %304 : vector<64x1xf32>
    %306 = math.rsqrt %305 : vector<64x1xf32>
    %307 = vector.broadcast %306 : vector<64x1xf32> to vector<64x32xf32>
    %308 = arith.mulf %298, %307 : vector<64x32xf32>
    %309 = vector.broadcast %290 : vector<1x32xf32> to vector<64x32xf32>
    %310 = arith.mulf %308, %309 : vector<64x32xf32>
    %311 = vector.broadcast %292 : vector<1x32xf32> to vector<64x32xf32>
    %312 = arith.addf %310, %311 : vector<64x32xf32>
    %c1_160 = arith.constant 1 : index
    %c0_161 = arith.constant 0 : index
    %c0_162 = arith.constant 0 : index
    %313 = vector.load %arg18[%c1_160, %c0_161, %c0_162] : memref<2x32x128xf32, #tpu.memory_space<vmem>>, vector<1x32x128xf32>
    %314 = vector.shape_cast %313 : vector<1x32x128xf32> to vector<32x128xf32>
    %cst_163 = arith.constant dense<0.000000e+00> : vector<64x128xf32>
    %315 = tpu.matmul %312, %314, %cst_163 {dimension_numbers = #tpu.dot_dimension_numbers<[1], [0], [0], [1], [0, 0, 1, 1], [], []>} : vector<64x32xf32>, vector<32x128xf32>, vector<64x128xf32> -> vector<64x128xf32>
    %cst_164 = arith.constant 0.000000e+00 : f32
    %316 = vector.broadcast %cst_164 : f32 to vector<64x128xf32>
    %317 = arith.maximumf %315, %316 : vector<64x128xf32>
    %c1_165 = arith.constant 1 : index
    %c0_166 = arith.constant 0 : index
    %c0_167 = arith.constant 0 : index
    %318 = vector.load %arg19[%c1_165, %c0_166, %c0_167] : memref<2x128x32xf32, #tpu.memory_space<vmem>>, vector<1x128x32xf32>
    %319 = vector.shape_cast %318 : vector<1x128x32xf32> to vector<128x32xf32>
    %cst_168 = arith.constant dense<0.000000e+00> : vector<64x32xf32>
    %320 = tpu.matmul %317, %319, %cst_168 {dimension_numbers = #tpu.dot_dimension_numbers<[1], [0], [0], [1], [0, 0, 1, 1], [], []>} : vector<64x128xf32>, vector<128x32xf32>, vector<64x32xf32> -> vector<64x32xf32>
    %321 = arith.addf %288, %320 : vector<64x32xf32>
    %322 = tpu.transpose %321, [1, 0] : vector<64x32xf32> -> vector<32x64xf32>
    %c0_169 = arith.constant 0 : index
    %c0_170 = arith.constant 0 : index
    %c0_171 = arith.constant 0 : index
    %323 = vector.load %arg20[%c0_169, %c0_170, %c0_171] : memref<1x32x64xf32, #tpu.memory_space<vmem>>, vector<1x32x64xf32>
    %324 = vector.shape_cast %323 : vector<1x32x64xf32> to vector<32x64xf32>
    %325 = vector.shape_cast %322 : vector<32x64xf32> to vector<1x32x64xf32>
    tpu.vector_store %arg20[%c0_169, %c0_170, %c0_171], %325 {strides = array<i32>} : memref<1x32x64xf32, #tpu.memory_space<vmem>>, vector<1x32x64xf32>,
    return
  }
  func.func @transform_0(%arg0: i32) -> (i32, i32, i32) {
    %c0_i32 = arith.constant 0 : i32
    %c0_i32_0 = arith.constant 0 : i32
    %c0_i32_1 = arith.constant 0 : i32
    return %arg0, %c0_i32, %c0_i32_0 : i32, i32, i32
  }
  func.func @transform_1(%arg0: i32) -> (i32, i32) {
    %c0_i32 = arith.constant 0 : i32
    %c0_i32_0 = arith.constant 0 : i32
    %c0_i32_1 = arith.constant 0 : i32
    return %c0_i32, %c0_i32_0 : i32, i32
  }
  func.func @transform_2(%arg0: i32) -> (i32, i32) {
    %c0_i32 = arith.constant 0 : i32
    %c0_i32_0 = arith.constant 0 : i32
    %c0_i32_1 = arith.constant 0 : i32
    return %c0_i32, %c0_i32_0 : i32, i32
  }
  func.func @transform_3(%arg0: i32) -> (i32, i32) {
    %c0_i32 = arith.constant 0 : i32
    %c0_i32_0 = arith.constant 0 : i32
    %c0_i32_1 = arith.constant 0 : i32
    return %c0_i32, %c0_i32_0 : i32, i32
  }
  func.func @transform_4(%arg0: i32) -> (i32, i32) {
    %c0_i32 = arith.constant 0 : i32
    %c0_i32_0 = arith.constant 0 : i32
    %c0_i32_1 = arith.constant 0 : i32
    return %c0_i32, %c0_i32_0 : i32, i32
  }
  func.func @transform_5(%arg0: i32) -> (i32, i32, i32) {
    %c0_i32 = arith.constant 0 : i32
    %c0_i32_0 = arith.constant 0 : i32
    %c0_i32_1 = arith.constant 0 : i32
    %c0_i32_2 = arith.constant 0 : i32
    return %c0_i32, %c0_i32_0, %c0_i32_1 : i32, i32, i32
  }
  func.func @transform_6(%arg0: i32) -> (i32, i32, i32) {
    %c0_i32 = arith.constant 0 : i32
    %c0_i32_0 = arith.constant 0 : i32
    %c0_i32_1 = arith.constant 0 : i32
    %c0_i32_2 = arith.constant 0 : i32
    return %c0_i32, %c0_i32_0, %c0_i32_1 : i32, i32, i32
  }
  func.func @transform_7(%arg0: i32) -> (i32, i32, i32) {
    %c0_i32 = arith.constant 0 : i32
    %c0_i32_0 = arith.constant 0 : i32
    %c0_i32_1 = arith.constant 0 : i32
    %c0_i32_2 = arith.constant 0 : i32
    return %c0_i32, %c0_i32_0, %c0_i32_1 : i32, i32, i32
  }
  func.func @transform_8(%arg0: i32) -> (i32, i32, i32) {
    %c0_i32 = arith.constant 0 : i32
    %c0_i32_0 = arith.constant 0 : i32
    %c0_i32_1 = arith.constant 0 : i32
    %c0_i32_2 = arith.constant 0 : i32
    return %c0_i32, %c0_i32_0, %c0_i32_1 : i32, i32, i32
  }
  func.func @transform_9(%arg0: i32) -> (i32, i32, i32) {
    %c0_i32 = arith.constant 0 : i32
    %c0_i32_0 = arith.constant 0 : i32
    %c0_i32_1 = arith.constant 0 : i32
    %c0_i32_2 = arith.constant 0 : i32
    return %c0_i32, %c0_i32_0, %c0_i32_1 : i32, i32, i32
  }
  func.func @transform_10(%arg0: i32) -> (i32, i32, i32) {
    %c0_i32 = arith.constant 0 : i32
    %c0_i32_0 = arith.constant 0 : i32
    %c0_i32_1 = arith.constant 0 : i32
    %c0_i32_2 = arith.constant 0 : i32
    return %c0_i32, %c0_i32_0, %c0_i32_1 : i32, i32, i32
  }
  func.func @transform_11(%arg0: i32) -> (i32, i32, i32) {
    %c0_i32 = arith.constant 0 : i32
    %c0_i32_0 = arith.constant 0 : i32
    %c0_i32_1 = arith.constant 0 : i32
    %c0_i32_2 = arith.constant 0 : i32
    return %c0_i32, %c0_i32_0, %c0_i32_1 : i32, i32, i32
  }
  func.func @transform_12(%arg0: i32) -> (i32, i32, i32) {
    %c0_i32 = arith.constant 0 : i32
    %c0_i32_0 = arith.constant 0 : i32
    %c0_i32_1 = arith.constant 0 : i32
    %c0_i32_2 = arith.constant 0 : i32
    return %c0_i32, %c0_i32_0, %c0_i32_1 : i32, i32, i32
  }
  func.func @transform_13(%arg0: i32) -> (i32, i32, i32) {
    %c0_i32 = arith.constant 0 : i32
    %c0_i32_0 = arith.constant 0 : i32
    %c0_i32_1 = arith.constant 0 : i32
    %c0_i32_2 = arith.constant 0 : i32
    return %c0_i32, %c0_i32_0, %c0_i32_1 : i32, i32, i32
  }
  func.func @transform_14(%arg0: i32) -> (i32, i32, i32) {
    %c0_i32 = arith.constant 0 : i32
    %c0_i32_0 = arith.constant 0 : i32
    %c0_i32_1 = arith.constant 0 : i32
    %c0_i32_2 = arith.constant 0 : i32
    return %c0_i32, %c0_i32_0, %c0_i32_1 : i32, i32, i32
  }
  func.func @transform_15(%arg0: i32) -> (i32, i32, i32) {
    %c0_i32 = arith.constant 0 : i32
    %c0_i32_0 = arith.constant 0 : i32
    %c0_i32_1 = arith.constant 0 : i32
    %c0_i32_2 = arith.constant 0 : i32
    return %c0_i32, %c0_i32_0, %c0_i32_1 : i32, i32, i32
  }
  func.func @transform_16(%arg0: i32) -> (i32, i32, i32) {
    %c0_i32 = arith.constant 0 : i32
    %c0_i32_0 = arith.constant 0 : i32
    %c0_i32_1 = arith.constant 0 : i32
    %c0_i32_2 = arith.constant 0 : i32
    return %c0_i32, %c0_i32_0, %c0_i32_1 : i32, i32, i32
  }
  func.func @transform_17(%arg0: i32) -> (i32, i32, i32) {
    %c0_i32 = arith.constant 0 : i32
    %c0_i32_0 = arith.constant 0 : i32
    %c0_i32_1 = arith.constant 0 : i32
    %c0_i32_2 = arith.constant 0 : i32
    return %c0_i32, %c0_i32_0, %c0_i32_1 : i32, i32, i32
  }
  func.func @transform_18(%arg0: i32) -> (i32, i32, i32) {
    %c0_i32 = arith.constant 0 : i32
    %c0_i32_0 = arith.constant 0 : i32
    %c0_i32_1 = arith.constant 0 : i32
    %c0_i32_2 = arith.constant 0 : i32
    return %c0_i32, %c0_i32_0, %c0_i32_1 : i32, i32, i32
  }
  func.func @transform_19(%arg0: i32) -> (i32, i32, i32) {
    %c0_i32 = arith.constant 0 : i32
    %c0_i32_0 = arith.constant 0 : i32
    %c0_i32_1 = arith.constant 0 : i32
    return %arg0, %c0_i32, %c0_i32_0 : i32, i32, i32
  }
}

</mosaic_0001>

<bundles_post_ra>
// kernel: tpu_custom_call.1
= control target key start
LH: loop header
LB: loop body
LE: loop exit
PB: predicated region body
PF: predicated region fallthrough
CT: control target
= control target key end

     0   :  { %s12675_s0 = inlined_call_operand.hbm [shape: f32[2,16,64], index: 0, kind: input, shape index: {}]   ;;  %s12676_s1 = inlined_call_operand.hbm [shape: f32[16,32], index: 1, kind: input, shape index: {}]   ;;  %s12677_s2 = inlined_call_operand.hbm [shape: f32[1,32], index: 2, kind: input, shape index: {}]   ;;  %s12678_s3 = inlined_call_operand.hbm [shape: f32[32,32], index: 3, kind: input, shape index: {}]   ;;  %s12679_s4 = inlined_call_operand.hbm [shape: f32[1,32], index: 4, kind: input, shape index: {}]   ;;  %s12680_s5 = inlined_call_operand.vmem [shape: f32[2,1,32], index: 5, kind: input, shape index: {}]   ;;  %s12681_s6 = inlined_call_operand.vmem [shape: f32[2,1,32], index: 6, kind: input, shape index: {}]   ;;  %s12682_s7 = inlined_call_operand.vmem [shape: f32[2,32,32], index: 7, kind: input, shape index: {}]   ;;  %s12683_s8 = inlined_call_operand.hbm [shape: f32[2,1,32], index: 8, kind: input, shape index: {}]   ;;  %s12684_s9 = inlined_call_operand.vmem [shape: f32[2,32,32], index: 9, kind: input, shape index: {}]   ;;  %s12685_s10 = inlined_call_operand.hbm [shape: f32[2,1,32], index: 10, kind: input, shape index: {}]   ;;  %s12686_s11 = inlined_call_operand.vmem [shape: f32[2,32,32], index: 11, kind: input, shape index: {}]   ;;  %s12687_s12 = inlined_call_operand.hbm [shape: f32[2,1,32], index: 12, kind: input, shape index: {}]   ;;  %s12688_s13 = inlined_call_operand.vmem [shape: f32[2,32,32], index: 13, kind: input, shape index: {}]   ;;  %s12689_s14 = inlined_call_operand.hbm [shape: f32[2,1,32], index: 14, kind: input, shape index: {}]   ;;  %s12690_s15 = inlined_call_operand.hbm [shape: f32[2,1,32], index: 15, kind: input, shape index: {}]   ;;  %s12691_s16 = inlined_call_operand.hbm [shape: f32[2,1,32], index: 16, kind: input, shape index: {}]   ;;  %s12692_s17 = inlined_call_operand.vmem [shape: f32[2,32,128], index: 17, kind: input, shape index: {}]   ;;  %s12693_s18 = inlined_call_operand.vmem [shape: f32[2,128,32], index: 18, kind: input, shape index: {}]   ;;  %s12694_s19 = inlined_call_operand.hbm [shape: f32[2,32,64], index: 19, kind: output, shape index: {}]  }
   0x1   :  { %12732 = sst [smem:[#allocation29_spill]] %s12675_s0 }
   0x2   :  { %12733 = sst [smem:[#allocation30_spill]] %s12676_s1 }
   0x3   :  { %12734 = sst [smem:[#allocation31_spill]] %s12677_s2 }
   0x4   :  { %12735 = sst [smem:[#allocation32_spill]] %s12678_s3 }
   0x5   :  { %12736 = sst [smem:[#allocation33_spill]] %s12679_s4 }
   0x6   :  { %12737 = sst [smem:[#allocation34_spill]] %s12680_s5 }
   0x7   :  { %12738 = sst [smem:[#allocation35_spill]] %s12681_s6 }
   0x8   :  { %12739 = sst [smem:[#allocation36_spill]] %s12682_s7 }
   0x9   :  { %12740 = sst [smem:[#allocation37_spill]] %s12683_s8 }
   0xa   :  { %12741 = sst [smem:[#allocation38_spill]] %s12684_s9 }
   0xb   :  { %12742 = sst [smem:[#allocation39_spill]] %s12685_s10 }
   0xc   :  { %12743 = sst [smem:[#allocation40_spill]] %s12686_s11 }
   0xd   :  { %12744 = sst [smem:[#allocation41_spill]] %s12687_s12 }
   0xe   :  { %12745 = sst [smem:[#allocation42_spill]] %s12688_s13 }
   0xf   :  { %12746 = sst [smem:[#allocation43_spill]] %s12689_s14 }
  0x10   :  { %12747 = sst [smem:[#allocation44_spill]] %s12692_s17 }
  0x11   :  { %12748 = sst [smem:[#allocation45_spill]] %s12693_s18 }
  0x12   :  { %12749 = sst [smem:[#allocation46_spill]] %s12694_s19 }
  0x13   :  { %24 = vsyncpa [#allocation3], 0 }
  0x14   :  { %26 = vsyncpa [#allocation3 + $0x1], 0 }
  0x15   :  { %27 = vsyncpa [#allocation6], 0 }
  0x16   :  { %28 = vsyncpa [#allocation9], 0 }
  0x17   :  { %29 = vsyncpa [#allocation12], 0 }
  0x18   :  { %30 = vsyncpa [#allocation15], 0 }
  0x19   :  { %31 = vsyncpa [#allocation18], 0 }
  0x1a   :  { %32 = vsyncpa [#allocation4], 0 }
  0x1b   :  { %34 = vsyncpa [#allocation4 + $0x1], 0  ;;  %s10342_s0 = smov 0   ;;  %s10344_s30 = smov 0  }
  0x1c   :  { %s10346_s20 = smov 0   ;;  %s10348_s21 = smov 0  }
  0x1d LB: > { %s10219_s1 = smov [#allocation5]   ;;  %s10363_s2 = sadd.s32 4294967295, %s10217_s21   ;;  %s10217_s21 = sphi %s10348_s21, %s12808_s21   ;;  %s10213_s20 = sphi %s10346_s20, %s12807_s20   ;;  %s10209_s30 = sphi %s10344_s30, %s12806_s30   ;;  %s10205_s0 = sphi %s10342_s0, %s12805_s0  }
  0x1e   : > { %s487_s22 = sshll.u32 %s10219_s1, 4  ;;  %p6989_p0 = scmp.ge.s32.totalorder %s10217_s21, 1  ;;  %s10368_s22 = int_to_ptr.vmem [resolvable:$true] %s487_s22 }
  0x1f   : > { %p12712_p1 = scmp.eq.s32.totalorder %s10363_s2, 0  ;;  %p475_p2 = scmp.lt.s32.totalorder %s10217_s21, 3 }
  0x20   : > { %s10220_s24 = smov [#allocation8]   ;;  %s10221_s26 = smov [#allocation11]  }
  0x21   : > { %p10370_p3 = pnand %p6989_p0, %p475_p2  ;;  %s511_s25 = sshll.u32 %s10220_s24, 4  ;;  %s10383_s25 = int_to_ptr.vmem [resolvable:$true] %s511_s25 }
  0x22   : > { %s544_s27 = sshll.u32 %s10221_s26, 4  ;;  %s12752_s1 = sld [smem:[#allocation30_spill]]  ;;  %s10385_s27 = int_to_ptr.vmem [resolvable:$true] %s544_s27 }
  0x23   : > { %s12750_s23 = scalar_select %p10370_p3, 1, 0 }
  0x24   : > { %p9114_p5 = pneg %p10370_p3 }
  0x26   : > { %p10379_p6 = pnand %p9114_p5, %p12712_p1 }
  0x28   : > { %s9821_s19 = scalar_lea.hbm %s12752_s1, 256  ;;  %p10395_p8 = pneg %p10379_p6 }
  0x29   : > { %p9822_p7 = scmp.ne.s32.totalorder %s12752_s1, %s9821_s19  ;;  %p9828_p11 = scmp.lt.u32.totalorder %s9821_s19, %s12752_s1 }
  0x2b   : > { %p9824_p9 = pnand %p10395_p8, %p9822_p7 }
  0x2d   : > { %p9825_p10 = pneg %p9824_p9 }
  0x2f   : > { %p9830_p12 = pnand %p9828_p11, %p9825_p10 }
  0x31   : > { %9833 = shalt.err (!%p9830_p12)
}
  0x32   : > { %s9834_s17 = scalar_lea.vmem %s10368_s22, 256  ;;  %p9842_p5 = scmp.lt.s32.totalorder %s10368_s22, %s10368_s22 }
  0x33   : > { %p9835_p13 = scmp.ne.s32.totalorder %s10368_s22, %s9834_s17  ;;  %p9843_p4 = scmp.lt.s32.totalorder %s9834_s17, %s9834_s17 }
  0x35   : > { %p9837_p0 = pnand %p9835_p13, %p10395_p8  ;;  %p9844_p7 = por %p9843_p4, %p9842_p5 }
  0x37   : > { %p9838_p2 = pneg %p9837_p0 }
  0x39   : > { %p9845_p9 = pnand %p9844_p7, %p9838_p2 }
  0x3b   : > { %9848 = shalt.err (!%p9845_p9)
}
  0x3c   : > { %s12708_s18 = smov 128   ;;  %s12709_s13 = smov 8  }
  0x3d   : > { %9117 = dma.hbm_to_vmem [thread:$0]  (!%p10379_p6), %s12752_s1, 256, %s10368_s22, [#allocation6], %s12708_s18, %s12708_s18, %s12709_s13  }
  0x3e   : > { %s12754_s6 = sld [smem:[#allocation32_spill]] }
  0x44   : > { %s9849_s17 = scalar_lea.hbm %s12754_s6, 512 }
  0x45   : > { %p9850_p4 = scmp.ne.s32.totalorder %s12754_s6, %s9849_s17  ;;  %p9856_p12 = scmp.lt.u32.totalorder %s9849_s17, %s12754_s6 }
  0x47   : > { %p9852_p10 = pnand %p9850_p4, %p10395_p8 }
  0x49   : > { %p9853_p11 = pneg %p9852_p10 }
  0x4b   : > { %p9858_p13 = pnand %p9856_p12, %p9853_p11 }
  0x4d   : > { %9861 = shalt.err (!%p9858_p13)
}
  0x4e   : > { %s9862_s22 = scalar_lea.vmem %s10383_s25, 512  ;;  %p9870_p7 = scmp.lt.s32.totalorder %s10383_s25, %s10383_s25 }
  0x4f   : > { %p9863_p0 = scmp.ne.s32.totalorder %s10383_s25, %s9862_s22  ;;  %p9871_p9 = scmp.lt.s32.totalorder %s9862_s22, %s9862_s22 }
  0x51   : > { %p9865_p2 = pnand %p9863_p0, %p10395_p8  ;;  %p9872_p4 = por %p9871_p9, %p9870_p7 }
  0x53   : > { %p9866_p5 = pneg %p9865_p2 }
  0x55   : > { %p9873_p10 = pnand %p9872_p4, %p9866_p5 }
  0x57   : > { %9876 = shalt.err (!%p9873_p10)
}
  0x58   : > { %9123 = dma.hbm_to_vmem [thread:$0]  (!%p10379_p6), %s12754_s6, 512, %s10383_s25, [#allocation9], %s12708_s18, %s12708_s18, %s12709_s13  }
  0x59   : > { %s12755_s8 = sld [smem:[#allocation37_spill]] }
  0x5f   : > { %s9877_s19 = scalar_lea.hbm %s12755_s8, 32 }
  0x60   : > { %p9878_p11 = scmp.ne.s32.totalorder %s12755_s8, %s9877_s19  ;;  %p9884_p0 = scmp.lt.u32.totalorder %s9877_s19, %s12755_s8 }
  0x62   : > { %p9880_p12 = pnand %p9878_p11, %p10395_p8 }
  0x64   : > { %p9881_p13 = pneg %p9880_p12 }
  0x66   : > { %p9886_p2 = pnand %p9884_p0, %p9881_p13 }
  0x68   : > { %9889 = shalt.err (!%p9886_p2)
}
  0x69   : > { %s9890_s25 = scalar_lea.vmem %s10385_s27, 32  ;;  %p9898_p4 = scmp.lt.s32.totalorder %s10385_s27, %s10385_s27 }
  0x6a   : > { %p9891_p5 = scmp.ne.s32.totalorder %s10385_s27, %s9890_s25  ;;  %p9899_p10 = scmp.lt.s32.totalorder %s9890_s25, %s9890_s25 }
  0x6c   : > { %p9893_p7 = pnand %p9891_p5, %p10395_p8  ;;  %p9900_p11 = por %p9899_p10, %p9898_p4 }
  0x6e   : > { %p9894_p9 = pneg %p9893_p7 }
  0x70   : > { %p9901_p12 = pnand %p9900_p11, %p9894_p9 }
  0x72   : > { %9904 = shalt.err (!%p9901_p12)
}
  0x73   : > { %s10224_s22 = smov 16   ;;  %s10225_s5 = smov 1  }
  0x74   : > { %9129 = dma.hbm_to_vmem [thread:$0]  (!%p10379_p6), %s12755_s8, 32, %s10385_s27, [#allocation12], %s10224_s22, %s10224_s22, %s10225_s5  }
  0x75   : > { %s10226_s11 = smov [#allocation14]   ;;  %s10227_s28 = smov [#allocation17]  }
  0x76   : > { %s576_s19 = sshll.u32 %s10226_s11, 4  ;;  %s605_s29 = sshll.u32 %s10227_s28, 4  ;;  %s577_s19 = int_to_ptr.vmem [resolvable:$true] %s576_s19  ;;  %s606_s29 = int_to_ptr.vmem [resolvable:$true] %s605_s29 }
  0x77   : > { %s12756_s12 = sld [smem:[#allocation41_spill]] }
  0x7d   : > { %s9905_s25 = scalar_lea.hbm %s12756_s12, 32 }
  0x7e   : > { %p9906_p13 = scmp.ne.s32.totalorder %s12756_s12, %s9905_s25  ;;  %p9912_p5 = scmp.lt.u32.totalorder %s9905_s25, %s12756_s12 }
  0x80   : > { %p9908_p0 = pnand %p9906_p13, %p10395_p8 }
  0x82   : > { %p9909_p2 = pneg %p9908_p0 }
  0x84   : > { %p9914_p7 = pnand %p9912_p5, %p9909_p2 }
  0x86   : > { %9917 = shalt.err (!%p9914_p7)
}
  0x87   : > { %s9918_s27 = scalar_lea.vmem %s577_s19, 32  ;;  %p9926_p11 = scmp.lt.s32.totalorder %s577_s19, %s577_s19 }
  0x88   : > { %p9919_p9 = scmp.ne.s32.totalorder %s577_s19, %s9918_s27  ;;  %p9927_p12 = scmp.lt.s32.totalorder %s9918_s27, %s9918_s27 }
  0x8a   : > { %p9921_p4 = pnand %p9919_p9, %p10395_p8  ;;  %p9928_p1 = por %p9927_p12, %p9926_p11 }
  0x8c   : > { %p9922_p10 = pneg %p9921_p4 }
  0x8e   : > { %p9929_p3 = pnand %p9928_p1, %p9922_p10 }
  0x90   : > { %9932 = shalt.err (!%p9929_p3)
}
  0x91   : > { %9135 = dma.hbm_to_vmem [thread:$0]  (!%p10379_p6), %s12756_s12, 32, %s577_s19, [#allocation15], %s10224_s22, %s10224_s22, %s10225_s5  }
  0x92   : > { %s9933_s7 = scalar_lea.hbm %s12690_s15, 32 }
  0x93   : > { %p9934_p1 = scmp.ne.s32.totalorder %s12690_s15, %s9933_s7  ;;  %p9940_p0 = scmp.lt.u32.totalorder %s9933_s7, %s12690_s15 }
  0x95   : > { %p9936_p3 = pnand %p9934_p1, %p10395_p8 }
  0x97   : > { %p9937_p13 = pneg %p9936_p3 }
  0x99   : > { %p9942_p2 = pnand %p9940_p0, %p9937_p13 }
  0x9b   : > { %9945 = shalt.err (!%p9942_p2)
}
  0x9c   : > { %s9946_s17 = scalar_lea.vmem %s606_s29, 32  ;;  %p9954_p4 = scmp.lt.s32.totalorder %s606_s29, %s606_s29 }
  0x9d   : > { %p9947_p5 = scmp.ne.s32.totalorder %s606_s29, %s9946_s17  ;;  %p9955_p10 = scmp.lt.s32.totalorder %s9946_s17, %s9946_s17 }
  0x9f   : > { %p9949_p7 = pnand %p9947_p5, %p10395_p8  ;;  %p9956_p11 = por %p9955_p10, %p9954_p4 }
  0xa1   : > { %p9950_p9 = pneg %p9949_p7 }
  0xa3   : > { %p9957_p12 = pnand %p9956_p11, %p9950_p9 }
  0xa5   : > { %9960 = shalt.err (!%p9957_p12)
}
  0xa6   : > { %9141 = dma.hbm_to_vmem [thread:$0]  (!%p10379_p6), %s12690_s15, 32, %s606_s29, [#allocation18], %s10224_s22, %s10224_s22, %s10225_s5  }
  0xa7   : > { %s10228_s27 = smov [#allocation7]   ;;  %s10229_s1 = smov [#allocation10]  }
  0xa8   : > { %s501_s6 = sshll.u32 %s10228_s27, 4  ;;  %s525_s18 = sshll.u32 %s10229_s1, 4  ;;  %s502_s6 = int_to_ptr.vmem [resolvable:$true] %s501_s6  ;;  %s526_s18 = int_to_ptr.vmem [resolvable:$true] %s525_s18 }
  0xa9   : > { %s12757_s9 = sld [smem:[#allocation31_spill]] }
  0xaf   : > { %s9961_s11 = scalar_lea.hbm %s12757_s9, 16 }
  0xb0   : > { %p9962_p1 = scmp.ne.s32.totalorder %s12757_s9, %s9961_s11  ;;  %p9968_p0 = scmp.lt.u32.totalorder %s9961_s11, %s12757_s9 }
  0xb2   : > { %p9964_p3 = pnand %p9962_p1, %p10395_p8 }
  0xb4   : > { %p9965_p13 = pneg %p9964_p3 }
  0xb6   : > { %p9970_p2 = pnand %p9968_p0, %p9965_p13 }
  0xb8   : > { %9973 = shalt.err (!%p9970_p2)
}
  0xb9   : > { %s9974_s29 = scalar_lea.vmem %s502_s6, 16  ;;  %s9981_s25 = scalar_lea.vmem %s502_s6, 32 }
  0xba   : > { %p9975_p5 = scmp.ne.s32.totalorder %s502_s6, %s9974_s29  ;;  %p9982_p4 = scmp.lt.s32.totalorder %s502_s6, %s502_s6 }
  0xbb   : > { %p9983_p10 = scmp.lt.s32.totalorder %s9981_s25, %s9974_s29 }
  0xbc   : > { %p9977_p7 = pnand %p9975_p5, %p10395_p8 }
  0xbd   : > { %p9984_p11 = por %p9983_p10, %p9982_p4 }
  0xbe   : > { %p9978_p9 = pneg %p9977_p7 }
  0xc0   : > { %p9985_p12 = pnand %p9984_p11, %p9978_p9 }
  0xc2   : > { %9988 = shalt.err (!%p9985_p12)
}
  0xc3   : > { %9120 = dma.hbm_to_vmem [thread:$0]  (!%p10379_p6), %s12757_s9, 16, %s502_s6, [#allocation6]  }
  0xc4   : > { %s12758_s4 = sld [smem:[#allocation33_spill]] }
  0xca   : > { %s9989_s11 = scalar_lea.hbm %s12758_s4, 16 }
  0xcb   : > { %p9990_p1 = scmp.ne.s32.totalorder %s12758_s4, %s9989_s11  ;;  %p9996_p0 = scmp.lt.u32.totalorder %s9989_s11, %s12758_s4 }
  0xcd   : > { %p9992_p3 = pnand %p9990_p1, %p10395_p8 }
  0xcf   : > { %p9993_p13 = pneg %p9992_p3 }
  0xd1   : > { %p9998_p2 = pnand %p9996_p0, %p9993_p13 }
  0xd3   : > { %10001 = shalt.err (!%p9998_p2)
}
  0xd4   : > { %s10002_s29 = scalar_lea.vmem %s526_s18, 16  ;;  %s10009_s6 = scalar_lea.vmem %s526_s18, 32 }
  0xd5   : > { %p10003_p5 = scmp.ne.s32.totalorder %s526_s18, %s10002_s29  ;;  %p10010_p4 = scmp.lt.s32.totalorder %s526_s18, %s526_s18 }
  0xd6   : > { %p10011_p10 = scmp.lt.s32.totalorder %s10009_s6, %s10002_s29 }
  0xd7   : > { %p10005_p7 = pnand %p10003_p5, %p10395_p8 }
  0xd8   : > { %p10012_p11 = por %p10011_p10, %p10010_p4 }
  0xd9   : > { %p10006_p9 = pneg %p10005_p7 }
  0xdb   : > { %p10013_p12 = pnand %p10012_p11, %p10006_p9 }
  0xdd   : > { %10016 = shalt.err (!%p10013_p12)
}
  0xde   : > { %9126 = dma.hbm_to_vmem [thread:$0]  (!%p10379_p6), %s12758_s4, 16, %s526_s18, [#allocation9]  }
  0xdf   : > { %s10230_s1 = smov [#allocation13]   ;;  %s10231_s7 = smov [#allocation16]  }
  0xe0   : > { %s560_s13 = sshll.u32 %s10230_s1, 4  ;;  %s592_s11 = sshll.u32 %s10231_s7, 4  ;;  %s561_s13 = int_to_ptr.vmem [resolvable:$true] %s560_s13  ;;  %s593_s11 = int_to_ptr.vmem [resolvable:$true] %s592_s11 }
  0xe1   : > { %s12759_s10 = sld [smem:[#allocation39_spill]] }
  0xe7   : > { %s10017_s17 = scalar_lea.hbm %s12759_s10, 32 }
  0xe8   : > { %p10018_p1 = scmp.ne.s32.totalorder %s12759_s10, %s10017_s17  ;;  %p10024_p0 = scmp.lt.u32.totalorder %s10017_s17, %s12759_s10 }
  0xea   : > { %p10020_p3 = pnand %p10018_p1, %p10395_p8 }
  0xec   : > { %p10021_p13 = pneg %p10020_p3 }
  0xee   : > { %p10026_p2 = pnand %p10024_p0, %p10021_p13 }
  0xf0   : > { %10029 = shalt.err (!%p10026_p2)
}
  0xf1   : > { %s10030_s18 = scalar_lea.vmem %s561_s13, 32  ;;  %p10038_p4 = scmp.lt.s32.totalorder %s561_s13, %s561_s13 }
  0xf2   : > { %p10031_p5 = scmp.ne.s32.totalorder %s561_s13, %s10030_s18  ;;  %p10039_p10 = scmp.lt.s32.totalorder %s10030_s18, %s10030_s18 }
  0xf4   : > { %p10033_p7 = pnand %p10031_p5, %p10395_p8  ;;  %p10040_p11 = por %p10039_p10, %p10038_p4 }
  0xf6   : > { %p10034_p9 = pneg %p10033_p7 }
  0xf8   : > { %p10041_p12 = pnand %p10040_p11, %p10034_p9 }
  0xfa   : > { %10044 = shalt.err (!%p10041_p12)
}
  0xfb   : > { %9132 = dma.hbm_to_vmem [thread:$0]  (!%p10379_p6), %s12759_s10, 32, %s561_s13, [#allocation12], %s10224_s22, %s10224_s22, %s10225_s5  }
  0xfc   : > { %s12760_s14 = sld [smem:[#allocation43_spill]] }
 0x102   : > { %s10045_s26 = scalar_lea.hbm %s12760_s14, 32 }
 0x103   : > { %p10046_p1 = scmp.ne.s32.totalorder %s12760_s14, %s10045_s26  ;;  %p10052_p0 = scmp.lt.u32.totalorder %s10045_s26, %s12760_s14 }
 0x105   : > { %p10048_p3 = pnand %p10046_p1, %p10395_p8 }
 0x107   : > { %p10049_p13 = pneg %p10048_p3 }
 0x109   : > { %p10054_p2 = pnand %p10052_p0, %p10049_p13 }
 0x10b   : > { %10057 = shalt.err (!%p10054_p2)
}
 0x10c   : > { %s10058_s25 = scalar_lea.vmem %s593_s11, 32  ;;  %p10066_p4 = scmp.lt.s32.totalorder %s593_s11, %s593_s11 }
 0x10d   : > { %p10059_p5 = scmp.ne.s32.totalorder %s593_s11, %s10058_s25  ;;  %p10067_p10 = scmp.lt.s32.totalorder %s10058_s25, %s10058_s25 }
 0x10f   : > { %p10061_p7 = pnand %p10059_p5, %p10395_p8  ;;  %p10068_p11 = por %p10067_p10, %p10066_p4 }
 0x111   : > { %p10062_p9 = pneg %p10061_p7 }
 0x113   : > { %p10069_p12 = pnand %p10068_p11, %p10062_p9 }
 0x115   : > { %10072 = shalt.err (!%p10069_p12)
}
 0x116   : > { %9138 = dma.hbm_to_vmem [thread:$0]  (!%p10379_p6), %s12760_s14, 32, %s593_s11, [#allocation15], %s10224_s22, %s10224_s22, %s10225_s5  }
 0x117   : > { %s10232_s27 = smov [#allocation19]   ;;  %s10073_s26 = scalar_lea.hbm %s12691_s16, 32 }
 0x118   : > { %s618_s1 = sshll.u32 %s10232_s27, 4  ;;  %p10074_p1 = scmp.ne.s32.totalorder %s12691_s16, %s10073_s26  ;;  %s619_s1 = int_to_ptr.vmem [resolvable:$true] %s618_s1 }
 0x119   : > { %p10080_p0 = scmp.lt.u32.totalorder %s10073_s26, %s12691_s16 }
 0x11a   : > { %p10076_p3 = pnand %p10074_p1, %p10395_p8 }
 0x11c   : > { %p10077_p13 = pneg %p10076_p3 }
 0x11e   : > { %p10082_p2 = pnand %p10080_p0, %p10077_p13 }
 0x120   : > { %10085 = shalt.err (!%p10082_p2)
}
 0x121   : > { %s10086_s11 = scalar_lea.vmem %s619_s1, 32  ;;  %p10094_p4 = scmp.lt.s32.totalorder %s619_s1, %s619_s1 }
 0x122   : > { %p10087_p5 = scmp.ne.s32.totalorder %s619_s1, %s10086_s11  ;;  %p10095_p10 = scmp.lt.s32.totalorder %s10086_s11, %s10086_s11 }
 0x124   : > { %p10089_p7 = pnand %p10087_p5, %p10395_p8  ;;  %p10096_p11 = por %p10095_p10, %p10094_p4 }
 0x126   : > { %p10090_p9 = pneg %p10089_p7 }
 0x128   : > { %p10097_p12 = pnand %p10096_p11, %p10090_p9 }
 0x12a   : > { %10100 = shalt.err (!%p10097_p12)
}
 0x12b   : > { %9144 = dma.hbm_to_vmem [thread:$0]  (!%p10379_p6), %s12691_s16, 32, %s619_s1, [#allocation18], %s10224_s22, %s10224_s22, %s10225_s5  }
 0x12c   : > { %s6988_s3 = sadd.s32 4294967294, %s10217_s21   ;;  %s10614_s24 = sadd.s32 1, %s10217_s21  }
 0x12d   : > { %s44_s18 = ssub.s32 %s10217_s21, %s10614_s24  ;;  %s47_s27 = sadd.s32 1, %s10213_s20 }
 0x12e   : > { %p45_p8 = scmp.eq.s32.totalorder %s44_s18, 0  ;;  %p54_p1 = scmp.ne.s32.totalorder %s10213_s20, %s10209_s30 }
 0x12f   : > { %p55_p3 = scmp.eq.s32.totalorder %s10217_s21, 0  ;;  %p60_p13 = scmp.ne.s32.totalorder %s10209_s30, %s10205_s0 }
 0x130   : > { %s10625_s7 = scalar_select %p45_p8, %s10213_s20, %s47_s27  }
 0x131   : > { %p10627_p0 = por %p55_p3, %p54_p1  ;;  %p12762_p2 = scmp.eq.s32.totalorder %s10363_s2, 0 }
 0x132   : > { %p462_p5 = scmp.eq.s32.totalorder %s10363_s2, 1  ;;  %p468_p7 = scmp.eq.s32.totalorder %s6988_s3, 1 }
 0x133   : > { %p10633_p6 = por %p12762_p2, %p60_p13  ;;  %p9163_p9 = scmp.lt.s32.totalorder %s10217_s21, 2 }
 0x134   : > { %s638_s5 = sand.u32 1, %s10213_s20   ;;  %p10640_p4 = por %p462_p5, %p54_p1 }
 0x135   : > { %p10644_p10 = por %p468_p7, %p60_p13  ;;  %s7001_s17 = sshll.u32 %s638_s5, 4 }
 0x136   : > { %s12764_s1 = scalar_select %p10640_p4, 1, 0 }
 0x137   : > { %s12765_s26 = scalar_select %p10644_p10, 1, 0 }
 0x138   : > { %s7374_s19 = sshll.u32 %s10217_s21, 8  ;;  %s12766_s11 = sld [smem:[#allocation29_spill]] }
 0x139   : > { %s642_s13 = scalar_lea.vmem [#allocation2], %s7001_s17  ;;  %p10658_p11 = pnand %p9163_p9, %p10627_p0 }
 0x13a   : > { %s649_s3 = sshll.u32 %s642_s13, 4  ;;  %s10662_s27 = scalar_lea.sflag [#allocation3], %s638_s5  ;;  %s10654_s3 = int_to_ptr.vmem [resolvable:$true] %s649_s3 }
 0x13b   : > { %p10103_p8 = pneg %p10658_p11 }
 0x13e   : > { %s10652_s25 = scalar_lea.hbm %s12766_s11, %s7374_s19  ;;  %s10106_s28 = scalar_lea.hbm %s12766_s11, 512 }
 0x13f   : > { %s10101_s29 = scalar_lea.hbm %s10652_s25, 256  ;;  %p10107_p13 = scmp.lt.u32.totalorder %s10652_s25, %s12766_s11 }
 0x140   : > { %p10102_p12 = scmp.ne.s32.totalorder %s10652_s25, %s10101_s29  ;;  %p10108_p0 = scmp.lt.u32.totalorder %s10106_s28, %s10101_s29 }
 0x141   : > { %p10110_p5 = scmp.lt.u32.totalorder %s10101_s29, %s10652_s25 }
 0x142   : > { %p10104_p1 = pnand %p10103_p8, %p10102_p12  ;;  %p10109_p2 = por %p10108_p0, %p10107_p13 }
 0x144   : > { %p10105_p3 = pneg %p10104_p1  ;;  %p10111_p7 = por %p10110_p5, %p10109_p2 }
 0x146   : > { %p10112_p9 = pnand %p10111_p7, %p10105_p3 }
 0x148   : > { %10115 = shalt.err (!%p10112_p9)
}
 0x149   : > { %s10116_s5 = scalar_lea.vmem %s10654_s3, 256  ;;  %s10233_s17 = smov [#allocation2]  }
 0x14a   : > { %p10117_p12 = scmp.ne.s32.totalorder %s10654_s3, %s10116_s5  ;;  %s10121_s19 = sshll.u32 %s10233_s17, 4  ;;  %s10122_s19 = int_to_ptr.vmem [resolvable:$false] %s10121_s19 }
 0x14b   : > { %s10123_s6 = scalar_lea.vmem %s10122_s19, 512  ;;  %p10124_p4 = scmp.lt.s32.totalorder %s10654_s3, %s10122_s19 }
 0x14c   : > { %p10119_p1 = pnand %p10117_p12, %p10103_p8  ;;  %p10125_p13 = scmp.lt.s32.totalorder %s10123_s6, %s10116_s5 }
 0x14e   : > { %p10120_p10 = pneg %p10119_p1  ;;  %p10126_p0 = por %p10125_p13, %p10124_p4 }
 0x150   : > { %p10127_p2 = pnand %p10126_p0, %p10120_p10 }
 0x152   : > { %10130 = shalt.err (!%p10127_p2)
}
 0x153   : > { %s12768_s29 = smov 8   ;;  %s12769_s28 = smov 128  }
 0x154   : > { %9148 = dma.hbm_to_vmem [thread:$0]  (!%p10658_p11), %s10652_s25, 256, %s10654_s3, %s10662_s27, %s12769_s28, %s12769_s28, %s12768_s29  }
 0x155   : > { %p12770_p8 = scmp.ne.s32.totalorder %s12750_s23, 0 }
 0x157   : > { %661 = sbr.rel (%p12770_p8) target bundleno = 9692 (0x25dc), region = 96 }
 0x15e   : > { %s10696_s13 = sand.u32 1, %s10209_s30  }
 0x15f   : > { %s7005_s5 = sshll.u32 %s10696_s13, 4  ;;  %s664_s17 = scalar_lea.sflag [#allocation3], %s10696_s13 }
 0x160   : > { %s667_s19 = scalar_lea.vmem [#allocation2], %s7005_s5 }
 0x161   : > { %10176 = dma.done.wait (%p10633_p6), %s664_s17, 256  }
 0x162   : > { %10178 = vsyncadd (%p10633_p6), %s664_s17, 4294967040  ;;  %p12771_p4 = scmp.eq.s32.totalorder %s10363_s2, 0 }
 0x164   : > { %10180 = dma.done.wait (%p12771_p4), [#allocation6], 272   ;;  %p12772_p10 = pmov %p12771_p4 }
 0x165   : > { %p12773_p11 = pmov %p12771_p4 }
 0x166   : > { %10182 = vsyncadd (%p12772_p10), [#allocation6], 4294967024 }
 0x167   : > { %10184 = dma.done.wait (%p12773_p11), [#allocation9], 528   ;;  %p12774_p3 = pmov %p12771_p4 }
 0x169   : > { %10186 = vsyncadd (%p12774_p3), [#allocation9], 4294966768  ;;  %p12775_p5 = pmov %p12774_p3 }
 0x16a   : > { %p12776_p7 = pmov %p12774_p3 }
 0x16b   : > { %10188 = dma.done.wait (%p12775_p5), [#allocation12], 64  }
 0x16c   : > { %10190 = vsyncadd (%p12776_p7), [#allocation12], 4294967232  ;;  %p12777_p6 = pmov %p12774_p3 }
 0x16d   : > { %p12778_p9 = pmov %p12774_p3 }
 0x16e   : > { %10192 = dma.done.wait (%p12777_p6), [#allocation15], 64  }
 0x16f   : > { %10194 = vsyncadd (%p12778_p9), [#allocation15], 4294967232  ;;  %p12779_p12 = pmov %p12774_p3 }
 0x170   : > { %p12780_p1 = pmov %p12774_p3 }
 0x171   : > { %10196 = dma.done.wait (%p12779_p12), [#allocation18], 64  }
 0x172   : > { %10198 = vsyncadd (%p12780_p1), [#allocation18], 4294967232  ;;  %v762_v0 = vld [vmem:[%s667_s19] sm:$0xff]  ;;  %v797_v2 = vld [vmem:[#allocation5 + $0x8] sm:$0xff]  ;;  %vm805_vm0 = vcmask 130048   ;;  %vm995_vm1 = vcmask 261120  }
 0x173   : > { %v796_v1 = vld [vmem:[#allocation5] sm:$0xff]  ;;  %764 = vxpose.xlu0.b32.start [1/2] (short) (narrow) %v762_v0, 64  ;;  %v763_v3 = vld [vmem:[%s667_s19 + $0x8] sm:$0xff]  ;;  %v7017_v19 = vld [vmem:[#allocation7] ss:$0 sm:$0xff]  ;;  %s12782_s25 = sld [smem:[#allocation38_spill]] }
 0x174   : > { %v8594_v4 = vpack.c.bf16 %v797_v2, %v796_v1  ;;  %v991_v13 = vld [vmem:[#allocation8] sm:$0xff]  ;;  %v992_v14 = vld [vmem:[#allocation8 + $0x8] sm:$0xff]  ;;  %v993_v16 = vld [vmem:[#allocation8 + $0x10] sm:$0xff]  ;;  %s12783_s29 = sld [smem:[#allocation36_spill]]  ;;  %s12784_s17 = sld [smem:[#allocation40_spill]]  ;;  %vm1663_vm2 = vcmask 64512  }
 0x175   : > { %v8598_v15 = vpack.c.bf16 %v992_v14, %v991_v13  ;;  %v994_v17 = vld [vmem:[#allocation8 + $0x18] sm:$0xff]  ;;  %v7042_v13 = vld [vmem:[#allocation10] ss:$0 sm:$0xff]  ;;  %s12785_s18 = sld [smem:[#allocation34_spill]]  ;;  %s12786_s28 = sld [smem:[#allocation35_spill]]  ;;  %vm10919_vm3 = vmpackc.low %vm1663_vm2, %vm1663_vm2  ;;  %vm1817_vm4 = vcmask 523264  }
 0x176   : > { %8595 = vmatprep.subr.bf16.mxu1 %v8594_v4  ;;  %v8602_v18 = vpack.c.bf16 %v994_v17, %v993_v16  ;;  %s12724_s3 = smov 120   ;;  %s12722_s27 = smov 112   ;;  %vm3385_vm5 = vcmask 195584  }
 0x177   : > { %765 = vxpose.xlu0.b32.end [2/2] (short) (narrow) %v763_v3, 64  ;;  %8597 = vmatpush3.bf16.msra.mxu1 %v8594_v4  ;;  %s12720_s6 = smov 104   ;;  %s12718_s5 = smov 8  }
 0x178   : > { %8599 = vmatprep.subr.bf16.mxu1 %v8598_v15  ;;  %s12716_s19 = smov 16   ;;  %s12726_s23 = smov 24  }
 0x179   : > { %s12792_s10 = sld [smem:[#allocation45_spill]]  ;;  %s12794_s4 = smov 120  }
 0x17a   : > { %s12795_s8 = smov 112   ;;  %s12796_s12 = smov 104  }
 0x17b   : > { %s12797_s11 = smov 8   ;;  %s7016_s14 = sshll.u32 %s10696_s13, 5 }
 0x17c   : > { %s7375_s9 = sshll.u32 %s10363_s2, 9  ;;  %p12802_p0 = scmp.ne.s32.totalorder %s12764_s1, 0 }
 0x17d   : > { %s10240_s2 = smov [#allocation20]  }
 0x1f3   : > { %v780_v5 = vpop.trf.xlu0 }
 0x1f4   : > { %7826 = vmatprep.mubr.msk.f32.mxu1 %vm805_vm0, %v780_v5 }
 0x1f7   : > { %v781_v6 = vpop.trf.xlu0 }
 0x1f8   : > { %7827 = vmatmul.mubr.msk.f32.vlgmr.msra.gmra.mrb[0].mxu1 %vm805_vm0, %v781_v6 }
 0x1f9   : > { %8601 = vmatpush3.bf16.msra.mxu1 %v8598_v15 }
 0x1fa   : > { %8603 = vmatprep.subr.bf16.mxu1 %v8602_v18 }
 0x1fb   : > { %v782_v7 = vpop.trf.xlu0 }
 0x1fc   : > { %7829 = vmatprep.mubr.msk.f32.mxu1 %vm805_vm0, %v782_v7 }
 0x1fd   : > { %8605 = vmatpush3.bf16.msra.mxu1 %v8602_v18 }
 0x1ff   : > { %v783_v8 = vpop.trf.xlu0 }
 0x200   : > { %7830 = vmatmul.mubr.msk.f32.gmra.mrb[2].mxu1 %vm805_vm0, %v783_v8 }
 0x203   : > { %v784_v9 = vpop.trf.xlu0 }
 0x204   : > { %7832 = vmatprep.mubr.msk.f32.mxu1 %vm805_vm0, %v784_v9 }
 0x207   : > { %v785_v10 = vpop.trf.xlu0 }
 0x208   : > { %7833 = vmatmul.mubr.msk.f32.gmra.mrb[4].mxu1 %vm805_vm0, %v785_v10 }
 0x20b   : > { %v786_v11 = vpop.trf.xlu0 }
 0x20c   : > { %7835 = vmatprep.mubr.msk.f32.mxu1 %vm805_vm0, %v786_v11 }
 0x20f   : > { %v787_v12 = vpop.trf.xlu0 }
 0x210   : > { %7836 = vmatmul.mubr.msk.f32.gmra.mrb[6].mxu1 %vm805_vm0, %v787_v12 }
 0x2cb   : > { %v7828_v20 = vpop.f32.mrb[0].mxu1 }
 0x2cc   : > { %v902_v21 = vadd.f32 %v7828_v20, %v7017_v19  ;;  %v896_v22 = vpop.f32.mrb[1].mxu1 }
 0x2cd   : > { %v897_v23 = vadd.f32 %v7017_v19, %v896_v22 }
 0x2ce   : > { %v7027_v24 = vmul.f32 -1.442695, %v902_v21 }
 0x2cf   : > { %v7026_v25 = vmul.f32 -1.442695, %v897_v23 }
 0x2d0   : > { %9469 = vpow2.f32 %v7027_v24 }
 0x2d1   : > { %9471 = vpow2.f32 %v7026_v25 }
 0x2d3   : > { %v7831_v26 = vpop.f32.mrb[2].mxu1 }
 0x2d4   : > { %v912_v27 = vadd.f32 %v7831_v26, %v7017_v19  ;;  %v906_v28 = vpop.f32.mrb[3].mxu1 }
 0x2d5   : > { %v907_v29 = vadd.f32 %v7017_v19, %v906_v28 }
 0x2d6   : > { %v7029_v30 = vmul.f32 -1.442695, %v912_v27 }
 0x2d7   : > { %v7028_v31 = vmul.f32 -1.442695, %v907_v29 }
 0x2d8   : > { %9473 = vpow2.f32 %v7029_v30 }
 0x2d9   : > { %9475 = vpow2.f32 %v7028_v31 }
 0x2da   : > { %v9470_v32 = vpop.eup %9469 }
 0x2db   : > { %v9472_v33 = vpop.eup %9471  ;;  %v960_v34 = vadd.f32 1.0, %v9470_v32  ;;  %v7834_v35 = vpop.f32.mrb[4].mxu1 }
 0x2dc   : > { %v959_v36 = vadd.f32 1.0, %v9472_v33  ;;  %v922_v37 = vadd.f32 %v7834_v35, %v7017_v19  ;;  %v916_v38 = vpop.f32.mrb[5].mxu1 }
 0x2dd   : > { %9477 = vrcp.f32 %v960_v34  ;;  %v917_v39 = vadd.f32 %v7017_v19, %v916_v38 }
 0x2de   : > { %9479 = vrcp.f32 %v959_v36  ;;  %v7031_v40 = vmul.f32 -1.442695, %v922_v37 }
 0x2df   : > { %v7030_v41 = vmul.f32 -1.442695, %v917_v39 }
 0x2e0   : > { %9481 = vpow2.f32 %v7031_v40 }
 0x2e1   : > { %9483 = vpow2.f32 %v7030_v41 }
 0x2e2   : > { %v9474_v42 = vpop.eup %9473 }
 0x2e3   : > { %v9476_v43 = vpop.eup %9475  ;;  %v962_v44 = vadd.f32 1.0, %v9474_v42  ;;  %v7837_v45 = vpop.f32.mrb[6].mxu1 }
 0x2e4   : > { %v961_v46 = vadd.f32 1.0, %v9476_v43  ;;  %v932_v47 = vadd.f32 %v7837_v45, %v7017_v19  ;;  %v926_v48 = vpop.f32.mrb[7].mxu1 }
 0x2e5   : > { %9485 = vrcp.f32 %v962_v44  ;;  %v927_v49 = vadd.f32 %v7017_v19, %v926_v48 }
 0x2e6   : > { %9487 = vrcp.f32 %v961_v46  ;;  %v7033_v50 = vmul.f32 -1.442695, %v932_v47 }
 0x2e7   : > { %v9478_v51 = vpop.eup %9477  ;;  %v7032_v52 = vmul.f32 -1.442695, %v927_v49 }
 0x2e8   : > { %v9480_v53 = vpop.eup %9479  ;;  %9489 = vpow2.f32 %v7033_v50  ;;  %v984_v56 = vmul.f32 %v9478_v51, %v902_v21 }
 0x2e9   : > { %v983_v54 = vmul.f32 %v9480_v53, %v897_v23  ;;  %9491 = vpow2.f32 %v7032_v52 }
 0x2ea   : > { %v9482_v55 = vpop.eup %9481 }
 0x2eb   : > { %v9484_v57 = vpop.eup %9483  ;;  %v964_v58 = vadd.f32 1.0, %v9482_v55  ;;  %7846 = vmatprep.mubr.msk.f32.mxu1 %vm995_vm1, %v983_v54 }
 0x2ec   : > { %v963_v59 = vadd.f32 1.0, %v9484_v57  ;;  %7847 = vmatmul.mubr.msk.f32.vlgmr.msra.gmra.mrb[8].mxu1 %vm995_vm1, %v984_v56 }
 0x2ed   : > { %9493 = vrcp.f32 %v964_v58 }
 0x2ee   : > { %9495 = vrcp.f32 %v963_v59 }
 0x2ef   : > { %v9486_v60 = vpop.eup %9485 }
 0x2f0   : > { %v9488_v61 = vpop.eup %9487  ;;  %v986_v0 = vmul.f32 %v9486_v60, %v912_v27 }
 0x2f1   : > { %v985_v62 = vmul.f32 %v9488_v61, %v907_v29 }
 0x2f2   : > { %v9490_v63 = vpop.eup %9489 }
 0x2f3   : > { %v9492_v1 = vpop.eup %9491  ;;  %v966_v2 = vadd.f32 1.0, %v9490_v63  ;;  %7849 = vmatprep.mubr.msk.f32.mxu1 %vm995_vm1, %v985_v62 }
 0x2f4   : > { %v965_v3 = vadd.f32 1.0, %v9492_v1  ;;  %7850 = vmatmul.mubr.msk.f32.gmra.mrb[10].mxu1 %vm995_vm1, %v986_v0 }
 0x2f5   : > { %9497 = vrcp.f32 %v966_v2 }
 0x2f6   : > { %9499 = vrcp.f32 %v965_v3 }
 0x2f7   : > { %v9494_v4 = vpop.eup %9493 }
 0x2f8   : > { %v9496_v5 = vpop.eup %9495  ;;  %v988_v7 = vmul.f32 %v9494_v4, %v922_v37 }
 0x2f9   : > { %v987_v6 = vmul.f32 %v9496_v5, %v917_v39 }
 0x2fb   : > { %7852 = vmatprep.mubr.msk.f32.mxu1 %vm995_vm1, %v987_v6 }
 0x2fc   : > { %7853 = vmatmul.mubr.msk.f32.gmra.mrb[12].mxu1 %vm995_vm1, %v988_v7 }
 0x2ff   : > { %v9498_v8 = vpop.eup %9497 }
 0x300   : > { %v9500_v9 = vpop.eup %9499  ;;  %v990_v11 = vmul.f32 %v9498_v8, %v932_v47 }
 0x301   : > { %v989_v10 = vmul.f32 %v9500_v9, %v927_v49 }
 0x303   : > { %7855 = vmatprep.mubr.msk.f32.mxu1 %vm995_vm1, %v989_v10 }
 0x304   : > { %7856 = vmatmul.mubr.msk.f32.gmra.mrb[14].mxu1 %vm995_vm1, %v990_v11 }
 0x3bf   : > { %v7848_v12 = vpop.f32.mrb[8].mxu1 }
 0x3c0   : > { %v1086_v14 = vpop.f32.mrb[9].mxu1  ;;  %v1126_v15 = vadd.f32 %v7848_v12, %v984_v56 }
 0x3c1   : > { %v1125_v16 = vadd.f32 %v1086_v14, %v983_v54 }
 0x3c2   : > { %v10742_v18 = vadd.f32 %v7042_v13, %v1126_v15 }
 0x3c3   : > { %v10740_v17 = vadd.f32 %v7042_v13, %v1125_v16 }
 0x3c4   : > { %v1153_v24 = vsel %vm995_vm1, %v10742_v18, 0.0 }
 0x3c5   : > { %v1150_v19 = vsel %vm995_vm1, %v10740_v17, 0.0 }
 0x3c6   : > { %1151 = vadd.xlane.f32.xlu1 %v1150_v19 }
 0x3c7   : > { %v7851_v20 = vpop.f32.mrb[10].mxu1 }
 0x3c8   : > { %v1128_v21 = vadd.f32 %v7851_v20, %v986_v0  ;;  %v1096_v22 = vpop.f32.mrb[11].mxu1 }
 0x3c9   : > { %v1127_v23 = vadd.f32 %v1096_v22, %v985_v62  ;;  %v1423_v22 = vld [vmem:[%s12782_s25] sm:$0xff] }
 0x3ca   : > { %v10748_v25 = vadd.f32 %v7042_v13, %v1128_v21  ;;  %1154 = vadd.xlane.f32.xlu1 %v1153_v24 }
 0x3cb   : > { %v10750_v26 = vadd.f32 %v7042_v13, %v1127_v23  ;;  %v1424_v23 = vld [vmem:[%s12782_s25 + $0x8] sm:$0xff] }
 0x3cc   : > { %v1159_v27 = vsel %vm995_vm1, %v10748_v25, 0.0 }
 0x3cd   : > { %v1156_v28 = vsel %vm995_vm1, %v10750_v26, 0.0 }
 0x3ce   : > { %1160 = vadd.xlane.f32.xlu1 %v1159_v27  ;;  %1157 = vadd.xlane.f32.xlu0 %v1156_v28  ;;  %v8614_v27 = vpack.c.bf16 %v1424_v23, %v1423_v22  ;;  %v1283_v28 = vld [vmem:[%s12783_s29] sm:$0xff] }
 0x3cf   : > { %v7854_v29 = vpop.f32.mrb[12].mxu1 }
 0x3d0   : > { %v1106_v30 = vpop.f32.mrb[13].mxu1  ;;  %v1130_v31 = vadd.f32 %v7854_v29, %v988_v7  ;;  %v1284_v29 = vld [vmem:[%s12783_s29 + $0x8] sm:$0xff]  ;;  %8615 = vmatprep.subr.bf16.mxu1 %v8614_v27 }
 0x3d1   : > { %v1129_v32 = vadd.f32 %v1106_v30, %v987_v6  ;;  %v8606_v30 = vpack.c.bf16 %v1284_v29, %v1283_v28  ;;  %8617 = vmatpush3.bf16.msra.mxu1 %v8614_v27 }
 0x3d2   : > { %v10758_v34 = vadd.f32 %v7042_v13, %v1130_v31  ;;  %v1425_v31 = vld [vmem:[%s12782_s25 + $0x10] sm:$0xff] }
 0x3d3   : > { %v10756_v33 = vadd.f32 %v7042_v13, %v1129_v32  ;;  %8607 = vmatprep.subr.bf16.mxu0 %v8606_v30  ;;  %v1426_v32 = vld [vmem:[%s12782_s25 + $0x18] sm:$0xff] }
 0x3d4   : > { %v1165_v40 = vsel %vm995_vm1, %v10758_v34, 0.0  ;;  %8609 = vmatpush3.bf16.msra.mxu0 %v8606_v30 }
 0x3d5   : > { %v1162_v35 = vsel %vm995_vm1, %v10756_v33, 0.0 }
 0x3d6   : > { %1163 = vadd.xlane.f32.xlu1 %v1162_v35  ;;  %v1285_v35 = vld [vmem:[%s12783_s29 + $0x10] sm:$0xff] }
 0x3d7   : > { %v7857_v36 = vpop.f32.mrb[14].mxu1 }
 0x3d8   : > { %v1116_v37 = vpop.f32.mrb[15].mxu1  ;;  %v1132_v38 = vadd.f32 %v7857_v36, %v990_v11  ;;  %v8618_v36 = vpack.c.bf16 %v1426_v32, %v1425_v31 }
 0x3d9   : > { %v1131_v39 = vadd.f32 %v1116_v37, %v989_v10  ;;  %v1286_v37 = vld [vmem:[%s12783_s29 + $0x18] sm:$0xff] }
 0x3da   : > { %1166 = vadd.xlane.f32.xlu1 %v1165_v40  ;;  %v10766_v42 = vadd.f32 %v7042_v13, %v1132_v38  ;;  %v8610_v38 = vpack.c.bf16 %v1286_v37, %v1285_v35  ;;  %8619 = vmatprep.subr.bf16.mxu1 %v8618_v36  ;;  %v1540_v40 = vld [vmem:[%s12784_s17 + $0x8] sm:$0xff] }
 0x3db   : > { %v10764_v41 = vadd.f32 %v7042_v13, %v1131_v39  ;;  %8621 = vmatpush3.bf16.msra.mxu1 %v8618_v36  ;;  %v1539_v39 = vld [vmem:[%s12784_s17] sm:$0xff] }
 0x3dc   : > { %v1171_v44 = vsel %vm995_vm1, %v10766_v42, 0.0  ;;  %8611 = vmatprep.subr.bf16.mxu0 %v8610_v38 }
 0x3dd   : > { %12781 = vst [vmem:[#allocation28_spill] sm:$0xff] %v10764_v41  ;;  %v1168_v43 = vsel %vm995_vm1, %v10764_v41, 0.0  ;;  %8613 = vmatpush3.bf16.msra.mxu0 %v8610_v38 }
 0x3de   : > { %1169 = vadd.xlane.f32.xlu1 %v1168_v43  ;;  %v8622_v43 = vpack.c.bf16 %v1540_v40, %v1539_v39 }
 0x3e0   : > { %8623 = vmatprep.subr.bf16.mxu0 %v8622_v43 }
 0x3e2   : > { %1172 = vadd.xlane.f32.xlu1 %v1171_v44 }
 0x453   : > { %v1152_v45 = vpop.xlane.xlu1 %1151 }
 0x454   : > { %v1175_v46 = vmul.f32 0.03125, %v1152_v45 }
 0x456   : > { %v10773_v47 = vsub.f32 %v10740_v17, %v1175_v46 }
 0x457   : > { %v1155_v48 = vpop.xlane.xlu1 %1154 }
 0x458   : > { %v1176_v49 = vmul.f32 0.03125, %v1155_v48  ;;  %v1191_v50 = vmul.f32 %v10773_v47, %v10773_v47 }
 0x45a   : > { %v10778_v51 = vsub.f32 %v10742_v18, %v1176_v49  ;;  %v1199_v52 = vsel %vm995_vm1, %v1191_v50, 0.0 }
 0x45b   : > { %v1161_v53 = vpop.xlane.xlu1 %1160  ;;  %v1158_v54 = vpop.xlane.xlu0 %1157  ;;  %1200 = vadd.xlane.f32.xlu1 %v1199_v52 }
 0x45c   : > { %v1178_v55 = vmul.f32 0.03125, %v1161_v53  ;;  %v1177_v56 = vmul.f32 0.03125, %v1158_v54  ;;  %v1192_v57 = vmul.f32 %v10778_v51, %v10778_v51 }
 0x45e   : > { %v10784_v58 = vsub.f32 %v10748_v25, %v1178_v55  ;;  %v10787_v59 = vsub.f32 %v10750_v26, %v1177_v56  ;;  %v1202_v60 = vsel %vm995_vm1, %v1192_v57, 0.0 }
 0x45f   : > { %1203 = vadd.xlane.f32.xlu1 %v1202_v60 }
 0x460   : > { %v1193_v61 = vmul.f32 %v10787_v59, %v10787_v59  ;;  %v1194_v63 = vmul.f32 %v10784_v58, %v10784_v58 }
 0x462   : > { %v1205_v62 = vsel %vm995_vm1, %v1193_v61, 0.0  ;;  %v1208_v3 = vsel %vm995_vm1, %v1194_v63, 0.0  ;;  %v10853_v61 = vld [vmem:[%s12785_s18] ss:$0 sm:$0xff] }
 0x463   : > { %v1164_v0 = vpop.xlane.xlu1 %1163  ;;  %1206 = vadd.xlane.f32.xlu1 %v1205_v62 }
 0x464   : > { %v1179_v1 = vmul.f32 0.03125, %v1164_v0 }
 0x466   : > { %v10796_v2 = vsub.f32 %v10756_v33, %v1179_v1  ;;  %v10859_v1 = vld [vmem:[%s12786_s28] ss:$0 sm:$0xff] }
 0x467   : > { %v1167_v4 = vpop.xlane.xlu1 %1166  ;;  %1209 = vadd.xlane.f32.xlu1 %v1208_v3 }
 0x468   : > { %v1180_v5 = vmul.f32 0.03125, %v1167_v4  ;;  %v1195_v6 = vmul.f32 %v10796_v2, %v10796_v2 }
 0x46a   : > { %v10802_v7 = vsub.f32 %v10758_v34, %v1180_v5  ;;  %v1211_v8 = vsel %vm995_vm1, %v1195_v6, 0.0 }
 0x46b   : > { %1212 = vadd.xlane.f32.xlu1 %v1211_v8  ;;  %v1170_v9 = vpop.xlane.xlu1 %1169 }
 0x46c   : > { %v1181_v10 = vmul.f32 0.03125, %v1170_v9  ;;  %v1196_v11 = vmul.f32 %v10802_v7, %v10802_v7 }
 0x46e   : > { %v10808_v12 = vsub.f32 %v10764_v41, %v1181_v10  ;;  %v1214_v13 = vsel %vm995_vm1, %v1196_v11, 0.0  ;;  %v1542_v11 = vld [vmem:[%s12784_s17 + $0x18] sm:$0xff] }
 0x46f   : > { %1215 = vadd.xlane.f32.xlu1 %v1214_v13  ;;  %v1173_v14 = vpop.xlane.xlu1 %1172 }
 0x470   : > { %v1182_v15 = vmul.f32 0.03125, %v1173_v14  ;;  %v1197_v16 = vmul.f32 %v10808_v12, %v10808_v12 }
 0x472   : > { %v10814_v19 = vsub.f32 %v10766_v42, %v1182_v15  ;;  %v1217_v20 = vsel %vm995_vm1, %v1197_v16, 0.0 }
 0x473   : > { %1218 = vadd.xlane.f32.xlu1 %v1217_v20 }
 0x474   : > { %v1198_v21 = vmul.f32 %v10814_v19, %v10814_v19 }
 0x476   : > { %v1220_v24 = vsel %vm995_vm1, %v1198_v21, 0.0 }
 0x477   : > { %1221 = vadd.xlane.f32.xlu1 %v1220_v24 }
 0x4e8   : > { %v1201_v44 = vpop.xlane.xlu1 %1200 }
 0x4e9   : > { %v1223_v45 = vmul.f32 0.03125, %v1201_v44 }
 0x4eb   : > { %v1231_v46 = vadd.f32 1e-05, %v1223_v45 }
 0x4ec   : > { %v1204_v48 = vpop.xlane.xlu1 %1203 }
 0x4ed   : > { %9501 = vrsqrt.f32 %v1231_v46  ;;  %v1224_v49 = vmul.f32 0.03125, %v1204_v48 }
 0x4ef   : > { %v1232_v50 = vadd.f32 1e-05, %v1224_v49 }
 0x4f0   : > { %v1207_v52 = vpop.xlane.xlu1 %1206 }
 0x4f1   : > { %9503 = vrsqrt.f32 %v1232_v50  ;;  %v1225_v53 = vmul.f32 0.03125, %v1207_v52 }
 0x4f3   : > { %v1233_v54 = vadd.f32 1e-05, %v1225_v53 }
 0x4f4   : > { %v1210_v55 = vpop.xlane.xlu1 %1209 }
 0x4f5   : > { %9505 = vrsqrt.f32 %v1233_v54  ;;  %v1226_v56 = vmul.f32 0.03125, %v1210_v55 }
 0x4f7   : > { %v9502_v57 = vpop.eup %9501  ;;  %v1234_v60 = vadd.f32 1e-05, %v1226_v56 }
 0x4f8   : > { %v1213_v62 = vpop.xlane.xlu1 %1212  ;;  %v1247_v63 = vmul.f32 %v9502_v57, %v10773_v47  ;;  %v1541_v47 = vld [vmem:[%s12784_s17 + $0x10] sm:$0xff] }
 0x4f9   : > { %9507 = vrsqrt.f32 %v1234_v60  ;;  %v1227_v0 = vmul.f32 0.03125, %v1213_v62  ;;  %v8626_v21 = vpack.c.bf16 %v1542_v11, %v1541_v47 }
 0x4fa   : > { %v1261_v3 = vmul.f32 %v10853_v61, %v1247_v63 }
 0x4fb   : > { %v9504_v4 = vpop.eup %9503  ;;  %v1235_v5 = vadd.f32 1e-05, %v1227_v0 }
 0x4fc   : > { %v1216_v6 = vpop.xlane.xlu1 %1215  ;;  %v1275_v8 = vadd.f32 %v10859_v1, %v1261_v3  ;;  %v1248_v9 = vmul.f32 %v9504_v4, %v10778_v51 }
 0x4fd   : > { %9509 = vrsqrt.f32 %v1235_v5  ;;  %v1228_v10 = vmul.f32 0.03125, %v1216_v6 }
 0x4fe   : > { %7866 = vmatprep.mubr.msk.f32.mxu0 %vm995_vm1, %v1275_v8  ;;  %7886 = vmatprep.mubr.msk.f32.mxu1 %vm995_vm1, %v1275_v8  ;;  %v1262_v13 = vmul.f32 %v10853_v61, %v1248_v9 }
 0x4ff   : > { %v9506_v14 = vpop.eup %9505  ;;  %v1236_v15 = vadd.f32 1e-05, %v1228_v10 }
 0x500   : > { %v1219_v16 = vpop.xlane.xlu1 %1218  ;;  %v1276_v51 = vadd.f32 %v10859_v1, %v1262_v13  ;;  %v1249_v20 = vmul.f32 %v9506_v14, %v10787_v59 }
 0x501   : > { %9511 = vrsqrt.f32 %v1236_v15  ;;  %v1229_v22 = vmul.f32 0.03125, %v1219_v16 }
 0x502   : > { %7867 = vmatmul.mubr.msk.f32.vlgmr.msra.gmra.mrb[0].mxu0 %vm995_vm1, %v1276_v51  ;;  %7887 = vmatmul.mubr.msk.f32.vlgmr.msra.gmra.mrb[16].mxu1 %vm995_vm1, %v1276_v51  ;;  %v1263_v23 = vmul.f32 %v10853_v61, %v1249_v20 }
 0x503   : > { %v9508_v24 = vpop.eup %9507  ;;  %v1237_v27 = vadd.f32 1e-05, %v1229_v22  ;;  %8625 = vmatpush3.bf16.msra.mxu0 %v8622_v43 }
 0x504   : > { %v1222_v28 = vpop.xlane.xlu1 %1221  ;;  %v1277_v29 = vadd.f32 %v10859_v1, %v1263_v23  ;;  %v1250_v30 = vmul.f32 %v9508_v24, %v10784_v58  ;;  %8627 = vmatprep.subr.bf16.mxu0 %v8626_v21 }
 0x505   : > { %9513 = vrsqrt.f32 %v1237_v27  ;;  %v1230_v59 = vmul.f32 0.03125, %v1222_v28 }
 0x506   : > { %7869 = vmatprep.mubr.msk.f32.mxu0 %vm995_vm1, %v1277_v29  ;;  %7889 = vmatprep.mubr.msk.f32.mxu1 %vm995_vm1, %v1277_v29  ;;  %v1264_v31 = vmul.f32 %v10853_v61, %v1250_v30  ;;  %v7063_v30 = vld [vmem:[#allocation14] ss:$0 sm:$0xff] }
 0x507   : > { %v9510_v32 = vpop.eup %9509  ;;  %v1238_v35 = vadd.f32 1e-05, %v1230_v59  ;;  %8629 = vmatpush3.bf16.msra.mxu0 %v8626_v21 }
 0x508   : > { %v1278_v36 = vadd.f32 %v10859_v1, %v1264_v31  ;;  %v1251_v37 = vmul.f32 %v9510_v32, %v10796_v2 }
 0x509   : > { %9515 = vrsqrt.f32 %v1238_v35 }
 0x50a   : > { %7870 = vmatmul.mubr.msk.f32.gmra.mrb[2].mxu0 %vm995_vm1, %v1278_v36  ;;  %7890 = vmatmul.mubr.msk.f32.gmra.mrb[18].mxu1 %vm995_vm1, %v1278_v36  ;;  %v1265_v58 = vmul.f32 %v10853_v61, %v1251_v37 }
 0x50b   : > { %v9512_v38 = vpop.eup %9511 }
 0x50c   : > { %v1279_v39 = vadd.f32 %v10859_v1, %v1265_v58  ;;  %v1252_v40 = vmul.f32 %v9512_v38, %v10802_v7 }
 0x50e   : > { %7872 = vmatprep.mubr.msk.f32.mxu0 %vm995_vm1, %v1279_v39  ;;  %7892 = vmatprep.mubr.msk.f32.mxu1 %vm995_vm1, %v1279_v39  ;;  %v1266_v43 = vmul.f32 %v10853_v61, %v1252_v40 }
 0x50f   : > { %v9514_v44 = vpop.eup %9513 }
 0x510   : > { %v1280_v2 = vadd.f32 %v10859_v1, %v1266_v43  ;;  %v1253_v45 = vmul.f32 %v9514_v44, %v10808_v12  ;;  %v7054_v12 = vld [vmem:[#allocation13] ss:$0 sm:$0xff] }
 0x512   : > { %7873 = vmatmul.mubr.msk.f32.gmra.mrb[4].mxu0 %vm995_vm1, %v1280_v2  ;;  %7893 = vmatmul.mubr.msk.f32.gmra.mrb[20].mxu1 %vm995_vm1, %v1280_v2  ;;  %v1267_v46 = vmul.f32 %v10853_v61, %v1253_v45 }
 0x513   : > { %v9516_v48 = vpop.eup %9515 }
 0x514   : > { %v1281_v7 = vadd.f32 %v10859_v1, %v1267_v46  ;;  %v1254_v49 = vmul.f32 %v9516_v48, %v10814_v19  ;;  %v10914_v19 = vld [vmem:[#allocation11] ss:$0 sm:$0xff] }
 0x516   : > { %7875 = vmatprep.mubr.msk.f32.mxu0 %vm995_vm1, %v1281_v7  ;;  %7895 = vmatprep.mubr.msk.f32.mxu1 %vm995_vm1, %v1281_v7  ;;  %v1268_v50 = vmul.f32 %v10853_v61, %v1254_v49 }
 0x518   : > { %v1282_v52 = vadd.f32 %v10859_v1, %v1268_v50 }
 0x51a   : > { %7876 = vmatmul.mubr.msk.f32.gmra.mrb[6].mxu0 %vm995_vm1, %v1282_v52  ;;  %7896 = vmatmul.mubr.msk.f32.gmra.mrb[22].mxu1 %vm995_vm1, %v1282_v52 }
 0x51b   : > { %7906 = vmatprep.mubr.msk.f32.mxu0 %vm995_vm1, %v1275_v8 }
 0x51e   : > { %7907 = vmatmul.mubr.msk.f32.vlgmr.msra.gmra.mrb[8].mxu0 %vm995_vm1, %v1276_v51 }
 0x51f   : > { %7909 = vmatprep.mubr.msk.f32.mxu0 %vm995_vm1, %v1277_v29 }
 0x522   : > { %7910 = vmatmul.mubr.msk.f32.gmra.mrb[10].mxu0 %vm995_vm1, %v1278_v36 }
 0x523   : > { %7912 = vmatprep.mubr.msk.f32.mxu0 %vm995_vm1, %v1279_v39 }
 0x526   : > { %7913 = vmatmul.mubr.msk.f32.gmra.mrb[12].mxu0 %vm995_vm1, %v1280_v2 }
 0x527   : > { %7915 = vmatprep.mubr.msk.f32.mxu0 %vm995_vm1, %v1281_v7 }
 0x52a   : > { %7916 = vmatmul.mubr.msk.f32.gmra.mrb[14].mxu0 %vm995_vm1, %v1282_v52 }
 0x5d5   : > { %v7868_v53 = vpop.f32.mrb[0].mxu0  ;;  %v7888_v54 = vpop.f32.mrb[16].mxu1 }
 0x5d6   : > { %v1506_v55 = vadd.f32 %v7888_v54, %v7054_v12  ;;  %v1384_v56 = vpop.f32.mrb[1].mxu0  ;;  %v1500_v57 = vpop.f32.mrb[17].mxu1  ;;  %v1390_v58 = vadd.f32 %v7868_v53, %v10914_v19 }
 0x5d7   : > { %v1385_v60 = vadd.f32 %v10914_v19, %v1384_v56  ;;  %v1501_v61 = vadd.f32 %v7054_v12, %v1500_v57 }
 0x5d8   : > { %v10955_v46 = vmul.f32 0.35355338, %v1390_v58 }
 0x5d9   : > { %v10923_v63 = vmul.f32 0.35355338, %v1385_v60  ;;  %v8630_v0 = vpack.c.bf16 %v1506_v55, %v1501_v61  ;;  %v10925_v1 = vpack.i.bf16 %v1506_v55, %v1501_v61 }
 0x5db   : > { %8632 = vmatprep.subr.msk.bf16.mxu1 %vm10919_vm3, %v8630_v0  ;;  %7934 = vmatprep.mubr.msk.f32.mxu1 %vm1663_vm2, %v10923_v63 }
 0x5dc   : > { %8635 = vmatpush3.bf16.xpose.msk.msra.mxu1 %vm10919_vm3, %v8630_v0 }
 0x5dd   : > { %v7871_v3 = vpop.f32.mrb[2].mxu0  ;;  %v7891_v4 = vpop.f32.mrb[18].mxu1 }
 0x5de   : > { %v1516_v5 = vadd.f32 %v7891_v4, %v7054_v12  ;;  %v1394_v6 = vpop.f32.mrb[3].mxu0  ;;  %v1510_v8 = vpop.f32.mrb[19].mxu1  ;;  %v1400_v48 = vadd.f32 %v7871_v3, %v10914_v19 }
 0x5df   : > { %v1511_v9 = vadd.f32 %v7054_v12, %v1510_v8  ;;  %v1395_v43 = vadd.f32 %v10914_v19, %v1394_v6 }
 0x5e0   : > { %v10965_v56 = vmul.f32 0.35355338, %v1400_v48 }
 0x5e1   : > { %v8636_v10 = vpack.c.bf16 %v1516_v5, %v1511_v9  ;;  %v10933_v47 = vpack.i.bf16 %v1516_v5, %v1511_v9  ;;  %v10960_v52 = vmul.f32 0.35355338, %v1395_v43 }
 0x5e3   : > { %8638 = vmatprep.subr.msk.bf16.mxu1 %vm10919_vm3, %v8636_v10 }
 0x5e4   : > { %8641 = vmatpush3.bf16.xpose.msk.msra.mxu1 %vm10919_vm3, %v8636_v10 }
 0x5e5   : > { %v7874_v11 = vpop.f32.mrb[4].mxu0  ;;  %v7894_v13 = vpop.f32.mrb[20].mxu1 }
 0x5e6   : > { %v1526_v14 = vadd.f32 %v7894_v13, %v7054_v12  ;;  %v1404_v15 = vpop.f32.mrb[5].mxu0  ;;  %v1520_v16 = vpop.f32.mrb[21].mxu1  ;;  %v1410_v57 = vadd.f32 %v7874_v11, %v10914_v19 }
 0x5e7   : > { %v1521_v51 = vadd.f32 %v7054_v12, %v1520_v16 }
 0x5e8   : > { %v10977_v9 = vmul.f32 0.35355338, %v1410_v57 }
 0x5e9   : > { %v8642_v20 = vpack.c.bf16 %v1526_v14, %v1521_v51  ;;  %v10939_v21 = vpack.i.bf16 %v1526_v14, %v1521_v51 }
 0x5eb   : > { %8644 = vmatprep.subr.msk.bf16.mxu1 %vm10919_vm3, %v8642_v20 }
 0x5ec   : > { %8647 = vmatpush3.bf16.xpose.msk.msra.mxu1 %vm10919_vm3, %v8642_v20 }
 0x5ed   : > { %v7877_v22 = vpop.f32.mrb[6].mxu0  ;;  %v7897_v23 = vpop.f32.mrb[22].mxu1 }
 0x5ee   : > { %v1536_v24 = vadd.f32 %v7897_v23, %v7054_v12  ;;  %v1414_v27 = vpop.f32.mrb[7].mxu0  ;;  %v1530_v28 = vpop.f32.mrb[23].mxu1  ;;  %v1420_v10 = vadd.f32 %v7877_v22, %v10914_v19 }
 0x5ef   : > { %v1531_v29 = vadd.f32 %v7054_v12, %v1530_v28  ;;  %v1405_v12 = vadd.f32 %v10914_v19, %v1404_v15  ;;  %v1415_v4 = vadd.f32 %v10914_v19, %v1414_v27 }
 0x5f0   : > { %v10990_v15 = vmul.f32 0.35355338, %v1420_v10 }
 0x5f1   : > { %v7908_v59 = vpop.f32.mrb[8].mxu0  ;;  %v8648_v31 = vpack.c.bf16 %v1536_v24, %v1531_v29  ;;  %v10945_v32 = vpack.i.bf16 %v1536_v24, %v1531_v29  ;;  %v10972_v3 = vmul.f32 0.35355338, %v1405_v12  ;;  %v10984_v14 = vmul.f32 0.35355338, %v1415_v4 }
 0x5f2   : > { %v1622_v35 = vadd.f32 %v7908_v59, %v7063_v30  ;;  %v1616_v36 = vpop.f32.mrb[9].mxu0 }
 0x5f3   : > { %v1617_v37 = vadd.f32 %v7063_v30, %v1616_v36  ;;  %8650 = vmatprep.subr.msk.bf16.mxu1 %vm10919_vm3, %v8648_v31 }
 0x5f4   : > { %8653 = vmatpush3.bf16.xpose.msk.msra.mxu1 %vm10919_vm3, %v8648_v31 }
 0x5f5   : > { %v7911_v38 = vpop.f32.mrb[10].mxu0  ;;  %v8654_v39 = vpack.c.bf16 %v1622_v35, %v1617_v37  ;;  %v10952_v40 = vpack.i.bf16 %v1622_v35, %v1617_v37 }
 0x5f6   : > { %v1632_v44 = vadd.f32 %v7911_v38, %v7063_v30  ;;  %v1626_v2 = vpop.f32.mrb[11].mxu0 }
 0x5f7   : > { %v1627_v45 = vadd.f32 %v7063_v30, %v1626_v2  ;;  %8655 = vmatprep.subr.bf16.mxu0 %v8654_v39 }
 0x5f8   : > { %8657 = vmatpush3.bf16.msra.mxu0 %v8654_v39 }
 0x5f9   : > { %v7914_v7 = vpop.f32.mrb[12].mxu0  ;;  %v8658_v49 = vpack.c.bf16 %v1632_v44, %v1627_v45  ;;  %v10958_v50 = vpack.i.bf16 %v1632_v44, %v1627_v45 }
 0x5fa   : > { %v1642_v53 = vadd.f32 %v7914_v7, %v7063_v30  ;;  %v1636_v54 = vpop.f32.mrb[13].mxu0 }
 0x5fb   : > { %v1637_v55 = vadd.f32 %v7063_v30, %v1636_v54  ;;  %7935 = vmatmul.mubr.msk.f32.vlgmr.msra.gmra.mrb[24].mxu1 %vm1663_vm2, %v10955_v46  ;;  %8659 = vmatprep.subr.bf16.mxu0 %v8658_v49 }
 0x5fc   : > { %7937 = vmatprep.mubr.msk.f32.mxu1 %vm1663_vm2, %v10960_v52  ;;  %8661 = vmatpush3.bf16.msra.mxu0 %v8658_v49 }
 0x5fd   : > { %v7917_v60 = vpop.f32.mrb[14].mxu0  ;;  %v8662_v61 = vpack.c.bf16 %v1642_v53, %v1637_v55  ;;  %v10970_v0 = vpack.i.bf16 %v1642_v53, %v1637_v55 }
 0x5fe   : > { %v1652_v5 = vadd.f32 %v7917_v60, %v7063_v30  ;;  %v1646_v6 = vpop.f32.mrb[15].mxu0 }
 0x5ff   : > { %v1647_v8 = vadd.f32 %v7063_v30, %v1646_v6  ;;  %7938 = vmatmul.mubr.msk.f32.gmra.mrb[26].mxu1 %vm1663_vm2, %v10965_v56  ;;  %8663 = vmatprep.subr.bf16.mxu0 %v8662_v61 }
 0x600   : > { %7940 = vmatprep.mubr.msk.f32.mxu1 %vm1663_vm2, %v10972_v3  ;;  %8665 = vmatpush3.bf16.msra.mxu0 %v8662_v61 }
 0x601   : > { %v8666_v11 = vpack.c.bf16 %v1652_v5, %v1647_v8  ;;  %v10982_v13 = vpack.i.bf16 %v1652_v5, %v1647_v8 }
 0x603   : > { %7941 = vmatmul.mubr.msk.f32.gmra.mrb[28].mxu1 %vm1663_vm2, %v10977_v9  ;;  %8667 = vmatprep.subr.bf16.mxu0 %v8666_v11 }
 0x604   : > { %7943 = vmatprep.mubr.msk.f32.mxu1 %vm1663_vm2, %v10984_v14  ;;  %8669 = vmatpush3.bf16.msra.mxu0 %v8666_v11 }
 0x607   : > { %7944 = vmatmul.mubr.msk.f32.gmra.mrb[30].mxu1 %vm1663_vm2, %v10990_v15 }
 0x6ce   : > { %v7936_v19 = vpop.f32.mrb[24].mxu1 }
 0x6cf   : > { %v1778_v16 = vpop.f32.mrb[25].mxu1  ;;  %v1821_v23 = vsel %vm1817_vm4, %v7936_v19, -inf }
 0x6d0   : > { %v1818_v51 = vsel %vm1817_vm4, %v1778_v16, -inf }
 0x6d1   : > { %1819 = vmax.xlane.f32.xlu1 %v1818_v51 }
 0x6d2   : > { %v7939_v20 = vpop.f32.mrb[26].mxu1 }
 0x6d3   : > { %v1788_v22 = vpop.f32.mrb[27].mxu1  ;;  %v1827_v29 = vsel %vm1817_vm4, %v7939_v20, -inf }
 0x6d4   : > { %v1824_v35 = vsel %vm1817_vm4, %v1788_v22, -inf }
 0x6d5   : > { %1822 = vmax.xlane.f32.xlu1 %v1821_v23 }
 0x6d6   : > { %v7942_v24 = vpop.f32.mrb[28].mxu1 }
 0x6d7   : > { %v1798_v27 = vpop.f32.mrb[29].mxu1  ;;  %v1833_v28 = vsel %vm1817_vm4, %v7942_v24, -inf }
 0x6d8   : > { %1834 = vmax.xlane.f32.xlu0 %v1833_v28  ;;  %v1830_v36 = vsel %vm1817_vm4, %v1798_v27, -inf }
 0x6d9   : > { %1828 = vmax.xlane.f32.xlu1 %v1827_v29 }
 0x6da   : > { %v7945_v30 = vpop.f32.mrb[30].mxu1 }
 0x6db   : > { %v1808_v59 = vpop.f32.mrb[31].mxu1  ;;  %v1839_v31 = vsel %vm1817_vm4, %v7945_v30, -inf }
 0x6dc   : > { %1840 = vmax.xlane.f32.xlu0 %v1839_v31  ;;  %v1836_v37 = vsel %vm1817_vm4, %v1808_v59, -inf }
 0x6dd   : > { %1825 = vmax.xlane.f32.xlu1 %v1824_v35 }
 0x6e1   : > { %1831 = vmax.xlane.f32.xlu1 %v1830_v36 }
 0x6e5   : > { %1837 = vmax.xlane.f32.xlu1 %v1836_v37 }
 0x6f6   : > { %9230 = vrot.lane.b32.xlu1 %v10925_v1, %s12724_s3 }
 0x75e   : > { %v1820_v58 = vpop.xlane.xlu1 %1819 }
 0x75f   : > { %v1842_v38 = vsub.f32 %v1778_v16, %v1820_v58 }
 0x761   : > { %v1850_v39 = vmul.f32 1.442695, %v1842_v38 }
 0x762   : > { %v1823_v43 = vpop.xlane.xlu1 %1822 }
 0x763   : > { %9517 = vpow2.f32 %v1850_v39  ;;  %v1843_v44 = vsub.f32 %v7936_v19, %v1823_v43 }
 0x765   : > { %v1852_v2 = vmul.f32 1.442695, %v1843_v44  ;;  %v1835_v45 = vpop.xlane.xlu0 %1834 }
 0x766   : > { %v1847_v48 = vsub.f32 %v7942_v24, %v1835_v45  ;;  %v1829_v7 = vpop.xlane.xlu1 %1828 }
 0x767   : > { %9519 = vpow2.f32 %v1852_v2  ;;  %v1845_v49 = vsub.f32 %v7939_v20, %v1829_v7 }
 0x768   : > { %v1860_v12 = vmul.f32 1.442695, %v1847_v48 }
 0x769   : > { %v1856_v53 = vmul.f32 1.442695, %v1845_v49  ;;  %v1841_v54 = vpop.xlane.xlu0 %1840 }
 0x76a   : > { %v1849_v55 = vsub.f32 %v7945_v30, %v1841_v54  ;;  %v1826_v57 = vpop.xlane.xlu1 %1825 }
 0x76b   : > { %9521 = vpow2.f32 %v1856_v53  ;;  %v1844_v60 = vsub.f32 %v1788_v22, %v1826_v57 }
 0x76c   : > { %9523 = vpow2.f32 %v1860_v12  ;;  %v1864_v4 = vmul.f32 1.442695, %v1849_v55 }
 0x76d   : > { %v9518_v61 = vpop.eup %9517  ;;  %v1854_v5 = vmul.f32 1.442695, %v1844_v60 }
 0x76e   : > { %v1832_v6 = vpop.xlane.xlu1 %1831  ;;  %v1866_v8 = vsel %vm1817_vm4, %v9518_v61, 0.0 }
 0x76f   : > { %9525 = vpow2.f32 %v1854_v5  ;;  %v1846_v10 = vsub.f32 %v1798_v27, %v1832_v6  ;;  %1867 = vadd.xlane.f32.xlu1 %v1866_v8 }
 0x770   : > { %9527 = vpow2.f32 %v1864_v4 }
 0x771   : > { %v9520_v11 = vpop.eup %9519  ;;  %v1858_v19 = vmul.f32 1.442695, %v1846_v10 }
 0x772   : > { %v1838_v16 = vpop.xlane.xlu1 %1837  ;;  %v1869_v51 = vsel %vm1817_vm4, %v9520_v11, 0.0 }
 0x773   : > { %9529 = vpow2.f32 %v1858_v19  ;;  %v1848_v20 = vsub.f32 %v1808_v59, %v1838_v16  ;;  %1870 = vadd.xlane.f32.xlu0 %v1869_v51 }
 0x775   : > { %v11006_v22 = vpop.eup %9521  ;;  %v1862_v23 = vmul.f32 1.442695, %v1848_v20 }
 0x776   : > { %v9231_v24 = vpop.permute.xlu1 %9230  ;;  %v1875_v28 = vsel %vm1817_vm4, %v11006_v22, 0.0  ;;  %v11010_v29 = vpop.eup %9523 }
 0x777   : > { %9531 = vpow2.f32 %v1862_v23  ;;  %v9233_v27 = vunpack.i.h.bf16 %v9231_v24  ;;  %v9232_v30 = vunpack.i.l.bf16 %v9231_v24  ;;  %1876 = vadd.xlane.f32.xlu0 %v1875_v28  ;;  %v1881_v36 = vsel %vm1817_vm4, %v11010_v29, 0.0 }
 0x779   : > { %v9526_v31 = vpop.eup %9525  ;;  %v8670_v35 = vpack.c.bf16 %v9233_v27, %v9232_v30 }
 0x77a   : > { %v1872_v59 = vsel %vm1817_vm4, %v9526_v31, 0.0  ;;  %v11015_v37 = vpop.eup %9527 }
 0x77b   : > { %1882 = vadd.xlane.f32.xlu0 %v1881_v36  ;;  %1873 = vadd.xlane.f32.xlu1 %v1872_v59  ;;  %v1887_v38 = vsel %vm1817_vm4, %v11015_v37, 0.0 }
 0x77c   : > { %8672 = vmatprep.subr.msk.bf16.mxu0 %vm10919_vm3, %v8670_v35 }
 0x77d   : > { %v9530_v58 = vpop.eup %9529 }
 0x77e   : > { %v1878_v39 = vsel %vm1817_vm4, %v9530_v58, 0.0 }
 0x77f   : > { %1888 = vadd.xlane.f32.xlu0 %v1887_v38  ;;  %1879 = vadd.xlane.f32.xlu1 %v1878_v39 }
 0x781   : > { %v9532_v43 = vpop.eup %9531 }
 0x782   : > { %v1884_v44 = vsel %vm1817_vm4, %v9532_v43, 0.0 }
 0x783   : > { %1885 = vadd.xlane.f32.xlu0 %v1884_v44 }
 0x790   : > { %9240 = vrot.lane.b32.xlu1 %v10939_v21, %s12724_s3 }
 0x794   : > { %9245 = vrot.lane.b32.xlu1 %v10945_v32, %s12724_s3 }
 0x798   : > { %2035 = vrot.lane.b32.xlu1 %v10923_v63, %s12724_s3 }
 0x799   : > { %9235 = vrot.lane.b32.xlu0 %v10933_v47, %s12724_s3 }
 0x79c   : > { %2037 = vrot.lane.b32.xlu1 %v10955_v46, %s12724_s3 }
 0x79d   : > { %2039 = vrot.lane.b32.xlu0 %v10960_v52, %s12724_s3 }
 0x7a0   : > { %2041 = vrot.lane.b32.xlu1 %v10965_v56, %s12724_s3 }
 0x7a1   : > { %2043 = vrot.lane.b32.xlu0 %v10972_v3, %s12724_s3 }
 0x7a4   : > { %2045 = vrot.lane.b32.xlu1 %v10977_v9, %s12724_s3 }
 0x7a5   : > { %2047 = vrot.lane.b32.xlu0 %v10984_v14, %s12724_s3 }
 0x7a8   : > { %2049 = vrot.lane.b32.xlu1 %v10990_v15, %s12724_s3 }
 0x7fc   : > { %v1868_v2 = vpop.xlane.xlu1 %1867 }
 0x7fd   : > { %9533 = vrcp.f32 %v1868_v2 }
 0x800   : > { %v1871_v45 = vpop.xlane.xlu0 %1870 }
 0x801   : > { %9535 = vrcp.f32 %v1871_v45 }
 0x804   : > { %v1877_v48 = vpop.xlane.xlu0 %1876 }
 0x805   : > { %9537 = vrcp.f32 %v1877_v48 }
 0x807   : > { %v9534_v7 = vpop.eup %9533 }
 0x808   : > { %v1883_v49 = vpop.xlane.xlu0 %1882  ;;  %v1874_v12 = vpop.xlane.xlu1 %1873  ;;  %v1891_v53 = vmul.f32 %v9534_v7, %v9518_v61 }
 0x809   : > { %9539 = vrcp.f32 %v1874_v12 }
 0x80a   : > { %7962 = vmatprep.mubr.msk.f32.mxu0 %vm1817_vm4, %v1891_v53  ;;  %9541 = vrcp.f32 %v1883_v49 }
 0x80b   : > { %v9536_v54 = vpop.eup %9535 }
 0x80c   : > { %v1893_v55 = vmul.f32 %v9536_v54, %v9520_v11  ;;  %v1889_v57 = vpop.xlane.xlu0 %1888  ;;  %v1880_v60 = vpop.xlane.xlu1 %1879 }
 0x80d   : > { %9543 = vrcp.f32 %v1880_v60 }
 0x80e   : > { %7963 = vmatmul.mubr.msk.f32.vlgmr.msra.gmra.mrb[16].mxu0 %vm1817_vm4, %v1893_v55 }
 0x80f   : > { %8675 = vmatpush3.bf16.xpose.msk.msra.mxu0 %vm10919_vm3, %v8670_v35  ;;  %v9538_v61 = vpop.eup %9537 }
 0x810   : > { %v1886_v4 = vpop.xlane.xlu0 %1885  ;;  %v9241_v5 = vpop.permute.xlu1 %9240  ;;  %v1897_v24 = vmul.f32 %v9538_v61, %v11006_v22 }
 0x811   : > { %9545 = vrcp.f32 %v1886_v4  ;;  %v9243_v10 = vunpack.i.h.bf16 %v9241_v5  ;;  %v9242_v19 = vunpack.i.l.bf16 %v9241_v5 }
 0x812   : > { %9547 = vrcp.f32 %v1889_v57 }
 0x813   : > { %v9540_v6 = vpop.eup %9539  ;;  %v8682_v27 = vpack.c.bf16 %v9243_v10, %v9242_v19 }
 0x814   : > { %v9236_v8 = vpop.permute.xlu0 %9235  ;;  %v1895_v51 = vmul.f32 %v9540_v6, %v9526_v31  ;;  %v9542_v20 = vpop.eup %9541 }
 0x815   : > { %v9238_v16 = vunpack.i.h.bf16 %v9236_v8  ;;  %v9237_v11 = vunpack.i.l.bf16 %v9236_v8  ;;  %v9246_v35 = vpop.permute.xlu1 %9245  ;;  %v1901_v31 = vmul.f32 %v9542_v20, %v11010_v29 }
 0x816   : > { %7965 = vmatprep.mubr.msk.f32.mxu0 %vm1817_vm4, %v1895_v51  ;;  %v9248_v38 = vunpack.i.h.bf16 %v9246_v35  ;;  %v9247_v39 = vunpack.i.l.bf16 %v9246_v35 }
 0x817   : > { %v8676_v23 = vpack.c.bf16 %v9238_v16, %v9237_v11  ;;  %v9544_v28 = vpop.eup %9543  ;;  %7966 = vmatmul.mubr.msk.f32.gmra.mrb[18].mxu0 %vm1817_vm4, %v1897_v24 }
 0x818   : > { %v1899_v30 = vmul.f32 %v9544_v28, %v9530_v58  ;;  %v8688_v44 = vpack.c.bf16 %v9248_v38, %v9247_v39 }
 0x819   : > { %8678 = vmatprep.subr.msk.bf16.mxu0 %vm10919_vm3, %v8676_v23  ;;  %v2036_v2 = vpop.permute.xlu1 %2035 }
 0x81a   : > { %8681 = vmatpush3.bf16.xpose.msk.msra.mxu0 %vm10919_vm3, %v8676_v23  ;;  %7968 = vmatprep.mubr.msk.f32.mxu0 %vm1817_vm4, %v1899_v30 }
 0x81b   : > { %v9546_v36 = vpop.eup %9545  ;;  %8684 = vmatprep.subr.msk.bf16.mxu0 %vm10919_vm3, %v8682_v27  ;;  %7969 = vmatmul.mubr.msk.f32.gmra.mrb[20].mxu0 %vm1817_vm4, %v1901_v31 }
 0x81c   : > { %v9548_v22 = vpop.eup %9547  ;;  %v1903_v59 = vmul.f32 %v9546_v36, %v9532_v43  ;;  %v2040_v43 = vpop.permute.xlu0 %2039 }
 0x81d   : > { %v1905_v58 = vmul.f32 %v9548_v22, %v11015_v37  ;;  %v2038_v29 = vpop.permute.xlu1 %2037 }
 0x81e   : > { %7971 = vmatprep.mubr.msk.f32.mxu0 %vm1817_vm4, %v1903_v59 }
 0x81f   : > { %7972 = vmatmul.mubr.msk.f32.gmra.mrb[22].mxu0 %vm1817_vm4, %v1905_v58 }
 0x820   : > { %7990 = vmatprep.mubr.msk.f32.mxu0 %vm1663_vm2, %v2036_v2  ;;  %v2044_v37 = vpop.permute.xlu0 %2043 }
 0x821   : > { %v2042_v45 = vpop.permute.xlu1 %2041 }
 0x822   : > { %8687 = vmatpush3.bf16.xpose.msk.msra.mxu0 %vm10919_vm3, %v8682_v27 }
 0x823   : > { %8690 = vmatprep.subr.msk.bf16.mxu0 %vm10919_vm3, %v8688_v44 }
 0x824   : > { %v2048_v7 = vpop.permute.xlu0 %2047 }
 0x825   : > { %v2046_v48 = vpop.permute.xlu1 %2045 }
 0x829   : > { %v2050_v49 = vpop.permute.xlu1 %2049 }
 0x82a   : > { %8693 = vmatpush3.bf16.xpose.msk.msra.mxu0 %vm10919_vm3, %v8688_v44 }
 0x831   : > { %7991 = vmatmul.mubr.msk.f32.vlgmr.msra.gmra.mrb[24].mxu0 %vm1663_vm2, %v2038_v29 }
 0x832   : > { %7993 = vmatprep.mubr.msk.f32.mxu0 %vm1663_vm2, %v2040_v43 }
 0x835   : > { %7994 = vmatmul.mubr.msk.f32.gmra.mrb[26].mxu0 %vm1663_vm2, %v2042_v45 }
 0x836   : > { %7996 = vmatprep.mubr.msk.f32.mxu0 %vm1663_vm2, %v2044_v37 }
 0x839   : > { %7997 = vmatmul.mubr.msk.f32.gmra.mrb[28].mxu0 %vm1663_vm2, %v2046_v48 }
 0x83a   : > { %7999 = vmatprep.mubr.msk.f32.mxu0 %vm1663_vm2, %v2048_v7 }
 0x83d   : > { %8000 = vmatmul.mubr.msk.f32.gmra.mrb[30].mxu0 %vm1663_vm2, %v2050_v49 }
 0x8e1   : > { %v11078_v12 = vpop.f32.mrb[16].mxu0 }
 0x8e2   : > { %v11080_v53 = vpop.f32.mrb[17].mxu0 }
 0x8ea   : > { %v11082_v54 = vpop.f32.mrb[18].mxu0 }
 0x8eb   : > { %v11084_v55 = vpop.f32.mrb[19].mxu0 }
 0x8ee   : > { %v11086_v57 = vpop.f32.mrb[20].mxu0 }
 0x8ef   : > { %v11088_v60 = vpop.f32.mrb[21].mxu0 }
 0x8f2   : > { %v11090_v4 = vpop.f32.mrb[22].mxu0 }
 0x8f3   : > { %v11092_v5 = vpop.f32.mrb[23].mxu0 }
 0x904   : > { %v7992_v61 = vpop.f32.mrb[24].mxu0 }
 0x905   : > { %v2165_v6 = vpop.f32.mrb[25].mxu0  ;;  %v2207_v8 = vsel %vm1817_vm4, %v7992_v61, -inf }
 0x906   : > { %2208 = vmax.xlane.f32.xlu1 %v2207_v8  ;;  %v2204_v10 = vsel %vm1817_vm4, %v2165_v6, -inf }
 0x907   : > { %2205 = vmax.xlane.f32.xlu0 %v2204_v10 }
 0x908   : > { %v11096_v19 = vpop.f32.mrb[26].mxu0 }
 0x909   : > { %v2175_v16 = vpop.f32.mrb[27].mxu0  ;;  %v2213_v11 = vsel %vm1817_vm4, %v11096_v19, -inf }
 0x90a   : > { %v2210_v23 = vsel %vm1817_vm4, %v2175_v16, -inf }
 0x90b   : > { %2214 = vmax.xlane.f32.xlu0 %v2213_v11 }
 0x90c   : > { %v7998_v51 = vpop.f32.mrb[28].mxu0 }
 0x90d   : > { %v11100_v20 = vpop.f32.mrb[29].mxu0  ;;  %v2219_v27 = vsel %vm1817_vm4, %v7998_v51, -inf }
 0x90e   : > { %v2216_v35 = vsel %vm1817_vm4, %v11100_v20, -inf }
 0x90f   : > { %2211 = vmax.xlane.f32.xlu0 %v2210_v23 }
 0x910   : > { %v11103_v24 = vpop.f32.mrb[30].mxu0 }
 0x911   : > { %v11105_v28 = vpop.f32.mrb[31].mxu0  ;;  %v2225_v30 = vsel %vm1817_vm4, %v11103_v24, -inf }
 0x912   : > { %v2222_v36 = vsel %vm1817_vm4, %v11105_v28, -inf }
 0x913   : > { %2220 = vmax.xlane.f32.xlu0 %v2219_v27 }
 0x917   : > { %9250 = vrot.lane.b32.xlu1 %v10952_v40, %s12724_s3  ;;  %2226 = vmax.xlane.f32.xlu0 %v2225_v30 }
 0x92d   : > { %9255 = vrot.lane.b32.xlu0 %v10958_v50, %s12724_s3 }
 0x93b   : > { %2217 = vmax.xlane.f32.xlu1 %v2216_v35 }
 0x94c   : > { %9260 = vrot.lane.b32.xlu1 %v10970_v0, %s12724_s3 }
 0x970   : > { %2223 = vmax.xlane.f32.xlu1 %v2222_v36 }
 0x981   : > { %9265 = vrot.lane.b32.xlu1 %v10982_v13, %s12724_s3  ;;  %s12791_s3 = sld [smem:[#allocation44_spill]] }
 0x993   : > { %v2209_v31 = vpop.xlane.xlu1 %2208 }
 0x994   : > { %v2229_v22 = vsub.f32 %v7992_v61, %v2209_v31  ;;  %v2206_v59 = vpop.xlane.xlu0 %2205 }
 0x995   : > { %v2228_v38 = vsub.f32 %v2165_v6, %v2206_v59 }
 0x996   : > { %v2238_v39 = vmul.f32 1.442695, %v2229_v22 }
 0x997   : > { %v2236_v58 = vmul.f32 1.442695, %v2228_v38  ;;  %v9251_v44 = vpop.permute.xlu1 %9250 }
 0x998   : > { %9549 = vpow2.f32 %v2238_v39  ;;  %v9253_v2 = vunpack.i.h.bf16 %v9251_v44  ;;  %v9252_v29 = vunpack.i.l.bf16 %v9251_v44  ;;  %v2215_v43 = vpop.xlane.xlu0 %2214 }
 0x999   : > { %9551 = vpow2.f32 %v2236_v58  ;;  %v2231_v38 = vsub.f32 %v11096_v19, %v2215_v43 }
 0x99a   : > { %v8694_v45 = vpack.c.bf16 %v9253_v2, %v9252_v29 }
 0x99b   : > { %v2242_v58 = vmul.f32 1.442695, %v2231_v38 }
 0x99c   : > { %8695 = vmatprep.subr.bf16.mxu1 %v8694_v45  ;;  %v2212_v37 = vpop.xlane.xlu0 %2211 }
 0x99d   : > { %v2230_v48 = vsub.f32 %v2175_v16, %v2212_v37  ;;  %8697 = vmatpush3.bf16.msra.mxu1 %v8694_v45 }
 0x99f   : > { %v2240_v7 = vmul.f32 1.442695, %v2230_v48 }
 0x9a0   : > { %v2221_v49 = vpop.xlane.xlu0 %2220 }
 0x9a1   : > { %9553 = vpow2.f32 %v2240_v7  ;;  %v2233_v8 = vsub.f32 %v7998_v51, %v2221_v49 }
 0x9a2   : > { %v11122_v61 = vpop.eup %9549 }
 0x9a3   : > { %v11124_v6 = vpop.eup %9551  ;;  %v2246_v10 = vmul.f32 1.442695, %v2233_v8  ;;  %v2255_v11 = vsel %vm1817_vm4, %v11122_v61, 0.0 }
 0x9a4   : > { %2256 = vadd.xlane.f32.xlu0 %v2255_v11  ;;  %v2227_v23 = vpop.xlane.xlu0 %2226  ;;  %v2252_v27 = vsel %vm1817_vm4, %v11124_v6, 0.0 }
 0x9a5   : > { %9555 = vpow2.f32 %v2246_v10  ;;  %2253 = vadd.xlane.f32.xlu1 %v2252_v27  ;;  %v2235_v39 = vsub.f32 %v11103_v24, %v2227_v23 }
 0x9a6   : > { %9557 = vpow2.f32 %v2242_v58 }
 0x9a7   : > { %v2250_v29 = vmul.f32 1.442695, %v2235_v39 }
 0x9a8   : > { %v9256_v16 = vpop.permute.xlu0 %9255 }
 0x9a9   : > { %v9258_v30 = vunpack.i.h.bf16 %v9256_v16  ;;  %v9257_v35 = vunpack.i.l.bf16 %v9256_v16 }
 0x9ab   : > { %v11130_v36 = vpop.eup %9553  ;;  %v8698_v51 = vpack.c.bf16 %v9258_v30, %v9257_v35 }
 0x9ac   : > { %v2258_v31 = vsel %vm1817_vm4, %v11130_v36, 0.0 }
 0x9ad   : > { %2259 = vadd.xlane.f32.xlu0 %v2258_v31  ;;  %8699 = vmatprep.subr.bf16.mxu1 %v8698_v51 }
 0x9ae   : > { %8701 = vmatpush3.bf16.msra.mxu1 %v8698_v51 }
 0x9af   : > { %v11134_v22 = vpop.eup %9555 }
 0x9b0   : > { %v2267_v59 = vsel %vm1817_vm4, %v11134_v22, 0.0  ;;  %v9558_v8 = vpop.eup %9557 }
 0x9b1   : > { %2268 = vadd.xlane.f32.xlu0 %v2267_v59 }
 0x9b6   : > { %9270 = vrot.lane.b32.xlu1 %v10925_v1, %s12722_s27 }
 0x9c8   : > { %v2218_v44 = vpop.xlane.xlu1 %2217 }
 0x9c9   : > { %v2232_v2 = vsub.f32 %v11100_v20, %v2218_v44  ;;  %v2261_v20 = vsel %vm1817_vm4, %v9558_v8, 0.0 }
 0x9cb   : > { %v2244_v45 = vmul.f32 1.442695, %v2232_v2 }
 0x9cc   : > { %v9261_v37 = vpop.permute.xlu1 %9260 }
 0x9cd   : > { %9559 = vpow2.f32 %v2244_v45  ;;  %v9263_v48 = vunpack.i.h.bf16 %v9261_v37  ;;  %v9262_v7 = vunpack.i.l.bf16 %v9261_v37 }
 0x9ce   : > { %9561 = vpow2.f32 %v2250_v29 }
 0x9cf   : > { %v8702_v49 = vpack.c.bf16 %v9263_v48, %v9262_v7 }
 0x9d1   : > { %8703 = vmatprep.subr.bf16.mxu1 %v8702_v49 }
 0x9d2   : > { %8705 = vmatpush3.bf16.msra.mxu1 %v8702_v49 }
 0x9d7   : > { %v11143_v10 = vpop.eup %9559 }
 0x9d8   : > { %v2264_v19 = vsel %vm1817_vm4, %v11143_v10, 0.0  ;;  %v11147_v24 = vpop.eup %9561 }
 0x9d9   : > { %2265 = vadd.xlane.f32.xlu0 %v2264_v19  ;;  %v2273_v43 = vsel %vm1817_vm4, %v11147_v24, 0.0 }
 0x9da   : > { %2262 = vadd.xlane.f32.xlu1 %v2261_v20 }
 0x9dd   : > { %2274 = vadd.xlane.f32.xlu0 %v2273_v43 }
 0x9eb   : > { %9280 = vrot.lane.b32.xlu1 %v10939_v21, %s12722_s27 }
 0x9ef   : > { %9285 = vrot.lane.b32.xlu1 %v10945_v32, %s12722_s27 }
 0x9f3   : > { %2453 = vrot.lane.b32.xlu1 %v10923_v63, %s12722_s27 }
 0x9f7   : > { %2455 = vrot.lane.b32.xlu1 %v10955_v46, %s12722_s27 }
 0x9fb   : > { %2459 = vrot.lane.b32.xlu1 %v10965_v56, %s12722_s27 }
 0x9fd   : > { %v2224_v11 = vpop.xlane.xlu1 %2223 }
 0x9fe   : > { %v2234_v23 = vsub.f32 %v11105_v28, %v2224_v11 }
 0x9ff   : > { %2463 = vrot.lane.b32.xlu1 %v10977_v9, %s12722_s27 }
 0xa00   : > { %v2248_v27 = vmul.f32 1.442695, %v2234_v23 }
 0xa01   : > { %v9266_v16 = vpop.permute.xlu1 %9265 }
 0xa02   : > { %9563 = vpow2.f32 %v2248_v27  ;;  %v9268_v30 = vunpack.i.h.bf16 %v9266_v16  ;;  %v9267_v35 = vunpack.i.l.bf16 %v9266_v16 }
 0xa03   : > { %2467 = vrot.lane.b32.xlu1 %v10990_v15, %s12722_s27 }
 0xa04   : > { %v8706_v51 = vpack.c.bf16 %v9268_v30, %v9267_v35 }
 0xa06   : > { %8707 = vmatprep.subr.bf16.mxu1 %v8706_v51 }
 0xa07   : > { %8709 = vmatpush3.bf16.msra.mxu1 %v8706_v51 }
 0xa0c   : > { %v9564_v31 = vpop.eup %9563 }
 0xa0d   : > { %v2270_v59 = vsel %vm1817_vm4, %v9564_v31, 0.0 }
 0xa0e   : > { %2271 = vadd.xlane.f32.xlu0 %v2270_v59 }
 0xa24   : > { %9275 = vrot.lane.b32.xlu0 %v10933_v47, %s12722_s27 }
 0xa28   : > { %2457 = vrot.lane.b32.xlu0 %v10960_v52, %s12722_s27 }
 0xa2c   : > { %2461 = vrot.lane.b32.xlu0 %v10972_v3, %s12722_s27 }
 0xa30   : > { %2465 = vrot.lane.b32.xlu0 %v10984_v14, %s12722_s27 }
 0xa31   : > { %v2257_v28 = vpop.xlane.xlu0 %2256 }
 0xa32   : > { %9565 = vrcp.f32 %v2257_v28  ;;  %v2254_v38 = vpop.xlane.xlu1 %2253 }
 0xa33   : > { %9567 = vrcp.f32 %v2254_v38 }
 0xa36   : > { %v9271_v39 = vpop.permute.xlu1 %9270 }
 0xa37   : > { %v9273_v58 = vunpack.i.h.bf16 %v9271_v39  ;;  %v9272_v44 = vunpack.i.l.bf16 %v9271_v39 }
 0xa39   : > { %v8710_v2 = vpack.c.bf16 %v9273_v58, %v9272_v44 }
 0xa3a   : > { %v2260_v29 = vpop.xlane.xlu0 %2259 }
 0xa3b   : > { %9569 = vrcp.f32 %v2260_v29  ;;  %8712 = vmatprep.subr.msk.bf16.mxu1 %vm10919_vm3, %v8710_v2 }
 0xa3c   : > { %v9566_v45 = vpop.eup %9565 }
 0xa3d   : > { %v9568_v37 = vpop.eup %9567  ;;  %v2279_v7 = vmul.f32 %v9566_v45, %v11122_v61 }
 0xa3e   : > { %v2277_v48 = vmul.f32 %v9568_v37, %v11124_v6  ;;  %v2269_v20 = vpop.xlane.xlu0 %2268 }
 0xa40   : > { %8018 = vmatprep.mubr.msk.f32.mxu1 %vm1817_vm4, %v2277_v48 }
 0xa41   : > { %8019 = vmatmul.mubr.msk.f32.vlgmr.msra.gmra.mrb[32].mxu1 %vm1817_vm4, %v2279_v7 }
 0xa42   : > { %8715 = vmatpush3.bf16.xpose.msk.msra.mxu1 %vm10919_vm3, %v8710_v2 }
 0xa45   : > { %v9570_v49 = vpop.eup %9569 }
 0xa46   : > { %v2281_v19 = vmul.f32 %v9570_v49, %v11130_v36 }
 0xa48   : > { %8021 = vmatprep.mubr.msk.f32.mxu1 %vm1817_vm4, %v2281_v19 }
 0xa66   : > { %v2266_v43 = vpop.xlane.xlu0 %2265 }
 0xa67   : > { %9571 = vrcp.f32 %v2266_v43  ;;  %v2263_v11 = vpop.xlane.xlu1 %2262 }
 0xa68   : > { %9573 = vrcp.f32 %v2263_v11 }
 0xa69   : > { %9575 = vrcp.f32 %v2269_v20 }
 0xa6a   : > { %v2275_v30 = vpop.xlane.xlu0 %2274 }
 0xa6b   : > { %9577 = vrcp.f32 %v2275_v30  ;;  %v9281_v51 = vpop.permute.xlu1 %9280 }
 0xa6c   : > { %v9283_v28 = vunpack.i.h.bf16 %v9281_v51  ;;  %v9282_v38 = vunpack.i.l.bf16 %v9281_v51 }
 0xa6f   : > { %v9286_v44 = vpop.permute.xlu1 %9285 }
 0xa70   : > { %v9288_v45 = vunpack.i.h.bf16 %v9286_v44  ;;  %v9287_v37 = vunpack.i.l.bf16 %v9286_v44 }
 0xa71   : > { %v9572_v6 = vpop.eup %9571 }
 0xa72   : > { %v9574_v61 = vpop.eup %9573  ;;  %v2285_v16 = vmul.f32 %v9572_v6, %v11143_v10  ;;  %v8722_v10 = vpack.c.bf16 %v9283_v28, %v9282_v38  ;;  %v8728_v49 = vpack.c.bf16 %v9288_v45, %v9287_v37 }
 0xa73   : > { %v2283_v23 = vmul.f32 %v9574_v61, %v9558_v8  ;;  %v9576_v27 = vpop.eup %9575  ;;  %v2454_v7 = vpop.permute.xlu1 %2453 }
 0xa74   : > { %v2287_v36 = vmul.f32 %v9576_v27, %v11134_v22 }
 0xa75   : > { %8022 = vmatmul.mubr.msk.f32.gmra.mrb[34].mxu1 %vm1817_vm4, %v2283_v23  ;;  %v9578_v2 = vpop.eup %9577 }
 0xa76   : > { %8024 = vmatprep.mubr.msk.f32.mxu1 %vm1817_vm4, %v2285_v16  ;;  %v2291_v48 = vmul.f32 %v9578_v2, %v11147_v24 }
 0xa77   : > { %v2456_v19 = vpop.permute.xlu1 %2455 }
 0xa79   : > { %8025 = vmatmul.mubr.msk.f32.gmra.mrb[36].mxu1 %vm1817_vm4, %v2287_v36 }
 0xa7b   : > { %v2460_v24 = vpop.permute.xlu1 %2459 }
 0xa7f   : > { %v2464_v43 = vpop.permute.xlu1 %2463 }
 0xa83   : > { %v2468_v6 = vpop.permute.xlu1 %2467 }
 0xa9b   : > { %v2272_v35 = vpop.xlane.xlu0 %2271 }
 0xa9c   : > { %9579 = vrcp.f32 %v2272_v35 }
 0xa9f   : > { %v9276_v59 = vpop.permute.xlu0 %9275 }
 0xaa0   : > { %v9278_v8 = vunpack.i.h.bf16 %v9276_v59  ;;  %v9277_v39 = vunpack.i.l.bf16 %v9276_v59 }
 0xaa2   : > { %v8716_v58 = vpack.c.bf16 %v9278_v8, %v9277_v39 }
 0xaa4   : > { %8718 = vmatprep.subr.msk.bf16.mxu1 %vm10919_vm3, %v8716_v58 }
 0xaa5   : > { %8721 = vmatpush3.bf16.xpose.msk.msra.mxu1 %vm10919_vm3, %v8716_v58 }
 0xaa6   : > { %v9580_v22 = vpop.eup %9579  ;;  %8724 = vmatprep.subr.msk.bf16.mxu1 %vm10919_vm3, %v8722_v10 }
 0xaa7   : > { %v2289_v29 = vmul.f32 %v9580_v22, %v9564_v31  ;;  %v2458_v31 = vpop.permute.xlu0 %2457 }
 0xaa9   : > { %8027 = vmatprep.mubr.msk.f32.mxu1 %vm1817_vm4, %v2289_v29 }
 0xaaa   : > { %8028 = vmatmul.mubr.msk.f32.gmra.mrb[38].mxu1 %vm1817_vm4, %v2291_v48 }
 0xaab   : > { %8046 = vmatprep.mubr.msk.f32.mxu1 %vm1663_vm2, %v2454_v7  ;;  %v2462_v20 = vpop.permute.xlu0 %2461 }
 0xaad   : > { %8727 = vmatpush3.bf16.xpose.msk.msra.mxu1 %vm10919_vm3, %v8722_v10 }
 0xaae   : > { %8730 = vmatprep.subr.msk.bf16.mxu1 %vm10919_vm3, %v8728_v49 }
 0xaaf   : > { %v2466_v11 = vpop.permute.xlu0 %2465 }
 0xab5   : > { %8733 = vmatpush3.bf16.xpose.msk.msra.mxu1 %vm10919_vm3, %v8728_v49 }
 0xabc   : > { %8047 = vmatmul.mubr.msk.f32.vlgmr.msra.gmra.mrb[40].mxu1 %vm1663_vm2, %v2456_v19 }
 0xabd   : > { %8049 = vmatprep.mubr.msk.f32.mxu1 %vm1663_vm2, %v2458_v31 }
 0xac0   : > { %8050 = vmatmul.mubr.msk.f32.gmra.mrb[42].mxu1 %vm1663_vm2, %v2460_v24 }
 0xac1   : > { %8052 = vmatprep.mubr.msk.f32.mxu1 %vm1663_vm2, %v2462_v20 }
 0xac4   : > { %8053 = vmatmul.mubr.msk.f32.gmra.mrb[44].mxu1 %vm1663_vm2, %v2464_v43 }
 0xac5   : > { %8055 = vmatprep.mubr.msk.f32.mxu1 %vm1663_vm2, %v2466_v11 }
 0xac8   : > { %8056 = vmatmul.mubr.msk.f32.gmra.mrb[46].mxu1 %vm1663_vm2, %v2468_v6 }
 0xb14   : > { %v11214_v61 = vpop.f32.mrb[32].mxu1 }
 0xb15   : > { %v11216_v23 = vpop.f32.mrb[33].mxu1 }
 0xb48   : > { %v11218_v27 = vpop.f32.mrb[34].mxu1 }
 0xb49   : > { %v11220_v16 = vpop.f32.mrb[35].mxu1 }
 0xb4c   : > { %v11222_v36 = vpop.f32.mrb[36].mxu1 }
 0xb4d   : > { %v11224_v30 = vpop.f32.mrb[37].mxu1 }
 0xb7d   : > { %v11226_v35 = vpop.f32.mrb[38].mxu1 }
 0xb7e   : > { %v11228_v51 = vpop.f32.mrb[39].mxu1 }
 0xb8f   : > { %v8048_v59 = vpop.f32.mrb[40].mxu1 }
 0xb90   : > { %v2583_v28 = vpop.f32.mrb[41].mxu1  ;;  %v2625_v38 = vsel %vm1817_vm4, %v8048_v59, -inf }
 0xb91   : > { %2626 = vmax.xlane.f32.xlu1 %v2625_v38  ;;  %v2622_v8 = vsel %vm1817_vm4, %v2583_v28, -inf }
 0xb92   : > { %2623 = vmax.xlane.f32.xlu0 %v2622_v8 }
 0xb93   : > { %v11232_v39 = vpop.f32.mrb[42].mxu1 }
 0xb94   : > { %v2593_v58 = vpop.f32.mrb[43].mxu1  ;;  %v2631_v10 = vsel %vm1817_vm4, %v11232_v39, -inf }
 0xb95   : > { %v2628_v22 = vsel %vm1817_vm4, %v2593_v58, -inf }
 0xb96   : > { %2632 = vmax.xlane.f32.xlu0 %v2631_v10 }
 0xb97   : > { %v8054_v44 = vpop.f32.mrb[44].mxu1 }
 0xb98   : > { %v11236_v2 = vpop.f32.mrb[45].mxu1  ;;  %v2637_v37 = vsel %vm1817_vm4, %v8054_v44, -inf }
 0xb99   : > { %v2634_v7 = vsel %vm1817_vm4, %v11236_v2, -inf }
 0xb9a   : > { %2629 = vmax.xlane.f32.xlu0 %v2628_v22 }
 0xb9b   : > { %v11239_v29 = vpop.f32.mrb[46].mxu1 }
 0xb9c   : > { %v11241_v45 = vpop.f32.mrb[47].mxu1  ;;  %v2643_v48 = vsel %vm1817_vm4, %v11239_v29, -inf }
 0xb9d   : > { %v2640_v49 = vsel %vm1817_vm4, %v11241_v45, -inf }
 0xb9e   : > { %2638 = vmax.xlane.f32.xlu0 %v2637_v37 }
 0xba2   : > { %9290 = vrot.lane.b32.xlu1 %v10952_v40, %s12722_s27  ;;  %2644 = vmax.xlane.f32.xlu0 %v2643_v48 }
 0xbb8   : > { %9295 = vrot.lane.b32.xlu0 %v10958_v50, %s12722_s27 }
 0xbc6   : > { %2635 = vmax.xlane.f32.xlu1 %v2634_v7 }
 0xbd7   : > { %9300 = vrot.lane.b32.xlu1 %v10970_v0, %s12722_s27 }
 0xbfb   : > { %2641 = vmax.xlane.f32.xlu1 %v2640_v49 }
 0xc0c   : > { %9305 = vrot.lane.b32.xlu1 %v10982_v13, %s12722_s27  ;;  %s12798_s27 = smov 16  }
 0xc1e   : > { %v2627_v19 = vpop.xlane.xlu1 %2626 }
 0xc1f   : > { %v2647_v31 = vsub.f32 %v8048_v59, %v2627_v19  ;;  %v2624_v24 = vpop.xlane.xlu0 %2623 }
 0xc20   : > { %v2646_v20 = vsub.f32 %v2583_v28, %v2624_v24 }
 0xc21   : > { %v2656_v43 = vmul.f32 1.442695, %v2647_v31 }
 0xc22   : > { %v2654_v11 = vmul.f32 1.442695, %v2646_v20  ;;  %v9291_v6 = vpop.permute.xlu1 %9290 }
 0xc23   : > { %9581 = vpow2.f32 %v2656_v43  ;;  %v9293_v38 = vunpack.i.h.bf16 %v9291_v6  ;;  %v9292_v8 = vunpack.i.l.bf16 %v9291_v6  ;;  %v2633_v10 = vpop.xlane.xlu0 %2632 }
 0xc24   : > { %9583 = vpow2.f32 %v2654_v11 }
 0xc25   : > { %v8734_v22 = vpack.c.bf16 %v9293_v38, %v9292_v8 }
 0xc27   : > { %8735 = vmatprep.subr.bf16.mxu0 %v8734_v22  ;;  %v2630_v37 = vpop.xlane.xlu0 %2629 }
 0xc28   : > { %v2648_v48 = vsub.f32 %v2593_v58, %v2630_v37  ;;  %8737 = vmatpush3.bf16.msra.mxu0 %v8734_v22  ;;  %v2649_v22 = vsub.f32 %v11232_v39, %v2633_v10 }
 0xc2a   : > { %v2658_v7 = vmul.f32 1.442695, %v2648_v48  ;;  %v2660_v48 = vmul.f32 1.442695, %v2649_v22 }
 0xc2b   : > { %v2639_v49 = vpop.xlane.xlu0 %2638 }
 0xc2c   : > { %9585 = vpow2.f32 %v2658_v7  ;;  %v2651_v41 = vsub.f32 %v8054_v44, %v2639_v49 }
 0xc2d   : > { %v11258_v59 = vpop.eup %9581 }
 0xc2e   : > { %v11260_v28 = vpop.eup %9583  ;;  %v2664_v19 = vmul.f32 1.442695, %v2651_v41  ;;  %v2673_v31 = vsel %vm1817_vm4, %v11258_v59, 0.0 }
 0xc2f   : > { %2674 = vadd.xlane.f32.xlu0 %v2673_v31  ;;  %v2645_v24 = vpop.xlane.xlu0 %2644  ;;  %v2670_v20 = vsel %vm1817_vm4, %v11260_v28, 0.0 }
 0xc30   : > { %9587 = vpow2.f32 %v2664_v19  ;;  %2671 = vadd.xlane.f32.xlu1 %v2670_v20  ;;  %v2653_v37 = vsub.f32 %v11239_v29, %v2645_v24 }
 0xc31   : > { %9589 = vpow2.f32 %v2660_v48 }
 0xc32   : > { %v2668_v19 = vmul.f32 1.442695, %v2653_v37 }
 0xc33   : > { %v9296_v58 = vpop.permute.xlu0 %9295 }
 0xc34   : > { %v9298_v43 = vunpack.i.h.bf16 %v9296_v58  ;;  %v9297_v11 = vunpack.i.l.bf16 %v9296_v58 }
 0xc36   : > { %v11266_v6 = vpop.eup %9585  ;;  %v8738_v44 = vpack.c.bf16 %v9298_v43, %v9297_v11 }
 0xc37   : > { %v2676_v38 = vsel %vm1817_vm4, %v11266_v6, 0.0 }
 0xc38   : > { %2677 = vadd.xlane.f32.xlu0 %v2676_v38  ;;  %8739 = vmatprep.subr.bf16.mxu0 %v8738_v44 }
 0xc39   : > { %8741 = vmatpush3.bf16.msra.mxu0 %v8738_v44 }
 0xc3a   : > { %v11270_v41 = vpop.eup %9587 }
 0xc3b   : > { %v2685_v8 = vsel %vm1817_vm4, %v11270_v41, 0.0 }
 0xc3c   : > { %2686 = vadd.xlane.f32.xlu0 %v2685_v8 }
 0xc41   : > { %9310 = vrot.lane.b32.xlu1 %v10925_v1, %s12720_s6  ;;  %v9590_v1 = vpop.eup %9589 }
 0xc53   : > { %v2636_v7 = vpop.xlane.xlu1 %2635 }
 0xc54   : > { %v2650_v49 = vsub.f32 %v11236_v2, %v2636_v7  ;;  %v2679_v2 = vsel %vm1817_vm4, %v9590_v1, 0.0 }
 0xc56   : > { %v2662_v31 = vmul.f32 1.442695, %v2650_v49 }
 0xc57   : > { %v9301_v20 = vpop.permute.xlu1 %9300 }
 0xc58   : > { %9591 = vpow2.f32 %v2662_v31  ;;  %v9303_v58 = vunpack.i.h.bf16 %v9301_v20  ;;  %v9302_v43 = vunpack.i.l.bf16 %v9301_v20 }
 0xc59   : > { %9593 = vpow2.f32 %v2668_v19 }
 0xc5a   : > { %v8742_v11 = vpack.c.bf16 %v9303_v58, %v9302_v43 }
 0xc5c   : > { %8743 = vmatprep.subr.bf16.mxu0 %v8742_v11 }
 0xc5d   : > { %8745 = vmatpush3.bf16.msra.mxu0 %v8742_v11 }
 0xc62   : > { %v11279_v44 = vpop.eup %9591 }
 0xc63   : > { %v2682_v39 = vsel %vm1817_vm4, %v11279_v44, 0.0  ;;  %v11283_v29 = vpop.eup %9593 }
 0xc64   : > { %2683 = vadd.xlane.f32.xlu0 %v2682_v39  ;;  %v2691_v10 = vsel %vm1817_vm4, %v11283_v29, 0.0 }
 0xc65   : > { %2680 = vadd.xlane.f32.xlu1 %v2679_v2 }
 0xc68   : > { %2692 = vadd.xlane.f32.xlu0 %v2691_v10 }
 0xc76   : > { %9320 = vrot.lane.b32.xlu1 %v10939_v21, %s12720_s6 }
 0xc7a   : > { %9325 = vrot.lane.b32.xlu1 %v10945_v32, %s12720_s6 }
 0xc7e   : > { %2863 = vrot.lane.b32.xlu1 %v10923_v63, %s12720_s6 }
 0xc82   : > { %2865 = vrot.lane.b32.xlu1 %v10955_v46, %s12720_s6 }
 0xc86   : > { %2869 = vrot.lane.b32.xlu1 %v10965_v56, %s12720_s6 }
 0xc88   : > { %v2642_v24 = vpop.xlane.xlu1 %2641 }
 0xc89   : > { %v2652_v38 = vsub.f32 %v11241_v45, %v2642_v24 }
 0xc8a   : > { %2873 = vrot.lane.b32.xlu1 %v10977_v9, %s12720_s6 }
 0xc8b   : > { %v2666_v8 = vmul.f32 1.442695, %v2652_v38 }
 0xc8c   : > { %v9306_v21 = vpop.permute.xlu1 %9305 }
 0xc8d   : > { %9595 = vpow2.f32 %v2666_v8  ;;  %v9308_v22 = vunpack.i.h.bf16 %v9306_v21  ;;  %v9307_v32 = vunpack.i.l.bf16 %v9306_v21 }
 0xc8e   : > { %2877 = vrot.lane.b32.xlu1 %v10990_v15, %s12720_s6 }
 0xc8f   : > { %v8746_v63 = vpack.c.bf16 %v9308_v22, %v9307_v32 }
 0xc91   : > { %8747 = vmatprep.subr.bf16.mxu0 %v8746_v63 }
 0xc92   : > { %8749 = vmatpush3.bf16.msra.mxu0 %v8746_v63 }
 0xc97   : > { %v9596_v46 = vpop.eup %9595 }
 0xc98   : > { %v2688_v56 = vsel %vm1817_vm4, %v9596_v46, 0.0 }
 0xc99   : > { %2689 = vadd.xlane.f32.xlu0 %v2688_v56 }
 0xcaf   : > { %9315 = vrot.lane.b32.xlu0 %v10933_v47, %s12720_s6 }
 0xcb3   : > { %2867 = vrot.lane.b32.xlu0 %v10960_v52, %s12720_s6 }
 0xcb7   : > { %2871 = vrot.lane.b32.xlu0 %v10972_v3, %s12720_s6 }
 0xcbb   : > { %2875 = vrot.lane.b32.xlu0 %v10984_v14, %s12720_s6 }
 0xcbc   : > { %v2675_v9 = vpop.xlane.xlu0 %2674 }
 0xcbd   : > { %9597 = vrcp.f32 %v2675_v9  ;;  %v2672_v15 = vpop.xlane.xlu1 %2671 }
 0xcbe   : > { %9599 = vrcp.f32 %v2672_v15 }
 0xcc1   : > { %v9311_v45 = vpop.permute.xlu1 %9310 }
 0xcc2   : > { %v9313_v37 = vunpack.i.h.bf16 %v9311_v45  ;;  %v9312_v48 = vunpack.i.l.bf16 %v9311_v45 }
 0xcc4   : > { %v8750_v7 = vpack.c.bf16 %v9313_v37, %v9312_v48 }
 0xcc5   : > { %v2678_v49 = vpop.xlane.xlu0 %2677 }
 0xcc6   : > { %9601 = vrcp.f32 %v2678_v49  ;;  %8752 = vmatprep.subr.msk.bf16.mxu0 %vm10919_vm3, %v8750_v7 }
 0xcc7   : > { %v9598_v47 = vpop.eup %9597 }
 0xcc8   : > { %v9600_v52 = vpop.eup %9599  ;;  %v2697_v19 = vmul.f32 %v9598_v47, %v11258_v59 }
 0xcc9   : > { %v2695_v3 = vmul.f32 %v9600_v52, %v11260_v28  ;;  %v2687_v20 = vpop.xlane.xlu0 %2686 }
 0xccb   : > { %8074 = vmatprep.mubr.msk.f32.mxu0 %vm1817_vm4, %v2695_v3 }
 0xccc   : > { %8075 = vmatmul.mubr.msk.f32.vlgmr.msra.gmra.mrb[32].mxu0 %vm1817_vm4, %v2697_v19 }
 0xccd   : > { %8755 = vmatpush3.bf16.xpose.msk.msra.mxu0 %vm10919_vm3, %v8750_v7 }
 0xcd0   : > { %v9602_v14 = vpop.eup %9601 }
 0xcd1   : > { %v2699_v31 = vmul.f32 %v9602_v14, %v11266_v6 }
 0xcd3   : > { %8077 = vmatprep.mubr.msk.f32.mxu0 %vm1817_vm4, %v2699_v31 }
 0xcf1   : > { %v2684_v58 = vpop.xlane.xlu0 %2683 }
 0xcf2   : > { %9603 = vrcp.f32 %v2684_v58  ;;  %v2681_v43 = vpop.xlane.xlu1 %2680 }
 0xcf3   : > { %9605 = vrcp.f32 %v2681_v43 }
 0xcf4   : > { %9607 = vrcp.f32 %v2687_v20 }
 0xcf5   : > { %v2693_v10 = vpop.xlane.xlu0 %2692 }
 0xcf6   : > { %9609 = vrcp.f32 %v2693_v10  ;;  %v9321_v38 = vpop.permute.xlu1 %9320 }
 0xcf7   : > { %v9323_v21 = vunpack.i.h.bf16 %v9321_v38  ;;  %v9322_v22 = vunpack.i.l.bf16 %v9321_v38 }
 0xcfa   : > { %v9326_v56 = vpop.permute.xlu1 %9325 }
 0xcfb   : > { %v9328_v45 = vunpack.i.h.bf16 %v9326_v56  ;;  %v9327_v37 = vunpack.i.l.bf16 %v9326_v56 }
 0xcfc   : > { %v9604_v28 = vpop.eup %9603 }
 0xcfd   : > { %v9606_v59 = vpop.eup %9605  ;;  %v2703_v2 = vmul.f32 %v9604_v28, %v11279_v44  ;;  %v8762_v44 = vpack.c.bf16 %v9323_v21, %v9322_v22  ;;  %v8768_v49 = vpack.c.bf16 %v9328_v45, %v9327_v37 }
 0xcfe   : > { %v2701_v11 = vmul.f32 %v9606_v59, %v9590_v1  ;;  %v9608_v39 = vpop.eup %9607  ;;  %v2864_v7 = vpop.permute.xlu1 %2863 }
 0xcff   : > { %v2705_v6 = vmul.f32 %v9608_v39, %v11270_v41 }
 0xd00   : > { %8078 = vmatmul.mubr.msk.f32.gmra.mrb[34].mxu0 %vm1817_vm4, %v2701_v11  ;;  %v9610_v9 = vpop.eup %9609 }
 0xd01   : > { %8080 = vmatprep.mubr.msk.f32.mxu0 %vm1817_vm4, %v2703_v2  ;;  %v2709_v48 = vmul.f32 %v9610_v9, %v11283_v29 }
 0xd02   : > { %v2866_v47 = vpop.permute.xlu1 %2865 }
 0xd04   : > { %8081 = vmatmul.mubr.msk.f32.gmra.mrb[36].mxu0 %vm1817_vm4, %v2705_v6 }
 0xd06   : > { %v2870_v29 = vpop.permute.xlu1 %2869 }
 0xd0a   : > { %v2874_v3 = vpop.permute.xlu1 %2873 }
 0xd0e   : > { %v2878_v14 = vpop.permute.xlu1 %2877 }
 0xd26   : > { %v2690_v24 = vpop.xlane.xlu0 %2689 }
 0xd27   : > { %9611 = vrcp.f32 %v2690_v24 }
 0xd2a   : > { %v9316_v8 = vpop.permute.xlu0 %9315 }
 0xd2b   : > { %v9318_v1 = vunpack.i.h.bf16 %v9316_v8  ;;  %v9317_v32 = vunpack.i.l.bf16 %v9316_v8 }
 0xd2d   : > { %v8756_v63 = vpack.c.bf16 %v9318_v1, %v9317_v32 }
 0xd2f   : > { %8758 = vmatprep.subr.msk.bf16.mxu0 %vm10919_vm3, %v8756_v63 }
 0xd30   : > { %8761 = vmatpush3.bf16.xpose.msk.msra.mxu0 %vm10919_vm3, %v8756_v63 }
 0xd31   : > { %v9612_v41 = vpop.eup %9611  ;;  %8764 = vmatprep.subr.msk.bf16.mxu0 %vm10919_vm3, %v8762_v44 }
 0xd32   : > { %v2707_v15 = vmul.f32 %v9612_v41, %v9596_v46  ;;  %v2868_v46 = vpop.permute.xlu0 %2867 }
 0xd34   : > { %8083 = vmatprep.mubr.msk.f32.mxu0 %vm1817_vm4, %v2707_v15 }
 0xd35   : > { %8084 = vmatmul.mubr.msk.f32.gmra.mrb[38].mxu0 %vm1817_vm4, %v2709_v48 }
 0xd36   : > { %8102 = vmatprep.mubr.msk.f32.mxu0 %vm1663_vm2, %v2864_v7  ;;  %v2872_v52 = vpop.permute.xlu0 %2871 }
 0xd38   : > { %8767 = vmatpush3.bf16.xpose.msk.msra.mxu0 %vm10919_vm3, %v8762_v44 }
 0xd39   : > { %8770 = vmatprep.subr.msk.bf16.mxu0 %vm10919_vm3, %v8768_v49 }
 0xd3a   : > { %v2876_v19 = vpop.permute.xlu0 %2875 }
 0xd40   : > { %8773 = vmatpush3.bf16.xpose.msk.msra.mxu0 %vm10919_vm3, %v8768_v49 }
 0xd47   : > { %8103 = vmatmul.mubr.msk.f32.vlgmr.msra.gmra.mrb[40].mxu0 %vm1663_vm2, %v2866_v47 }
 0xd48   : > { %8105 = vmatprep.mubr.msk.f32.mxu0 %vm1663_vm2, %v2868_v46 }
 0xd4b   : > { %8106 = vmatmul.mubr.msk.f32.gmra.mrb[42].mxu0 %vm1663_vm2, %v2870_v29 }
 0xd4c   : > { %8108 = vmatprep.mubr.msk.f32.mxu0 %vm1663_vm2, %v2872_v52 }
 0xd4f   : > { %8109 = vmatmul.mubr.msk.f32.gmra.mrb[44].mxu0 %vm1663_vm2, %v2874_v3 }
 0xd50   : > { %8111 = vmatprep.mubr.msk.f32.mxu0 %vm1663_vm2, %v2876_v19 }
 0xd53   : > { %8112 = vmatmul.mubr.msk.f32.gmra.mrb[46].mxu0 %vm1663_vm2, %v2878_v14 }
 0xd9f   : > { %v11350_v31 = vpop.f32.mrb[32].mxu0 }
 0xda0   : > { %v11352_v20 = vpop.f32.mrb[33].mxu0 }
 0xdd3   : > { %v11354_v58 = vpop.f32.mrb[34].mxu0 }
 0xdd4   : > { %v11356_v43 = vpop.f32.mrb[35].mxu0 }
 0xdd7   : > { %v11358_v28 = vpop.f32.mrb[36].mxu0 }
 0xdd8   : > { %v11360_v59 = vpop.f32.mrb[37].mxu0 }
 0xe08   : > { %v11362_v11 = vpop.f32.mrb[38].mxu0 }
 0xe09   : > { %v11364_v39 = vpop.f32.mrb[39].mxu0 }
 0xe1a   : > { %v8104_v2 = vpop.f32.mrb[40].mxu0 }
 0xe1b   : > { %v2993_v6 = vpop.f32.mrb[41].mxu0  ;;  %v3035_v10 = vsel %vm1817_vm4, %v8104_v2, -inf }
 0xe1c   : > { %3036 = vmax.xlane.f32.xlu1 %v3035_v10  ;;  %v3032_v24 = vsel %vm1817_vm4, %v2993_v6, -inf }
 0xe1d   : > { %3033 = vmax.xlane.f32.xlu0 %v3032_v24 }
 0xe1e   : > { %v8107_v38 = vpop.f32.mrb[42].mxu0 }
 0xe1f   : > { %v3003_v8 = vpop.f32.mrb[43].mxu0  ;;  %v3041_v32 = vsel %vm1817_vm4, %v8107_v38, -inf }
 0xe20   : > { %v3038_v21 = vsel %vm1817_vm4, %v3003_v8, -inf }
 0xe21   : > { %3039 = vmax.xlane.f32.xlu0 %v3038_v21 }
 0xe22   : > { %v8110_v22 = vpop.f32.mrb[44].mxu0 }
 0xe23   : > { %v3013_v1 = vpop.f32.mrb[45].mxu0  ;;  %v3047_v9 = vsel %vm1817_vm4, %v8110_v22, -inf }
 0xe24   : > { %v3044_v63 = vsel %vm1817_vm4, %v3013_v1, -inf }
 0xe25   : > { %3042 = vmax.xlane.f32.xlu0 %v3041_v32  ;;  %3045 = vmax.xlane.f32.xlu1 %v3044_v63 }
 0xe26   : > { %v8113_v44 = vpop.f32.mrb[46].mxu0 }
 0xe27   : > { %v3023_v56 = vpop.f32.mrb[47].mxu0  ;;  %v3053_v15 = vsel %vm1817_vm4, %v8113_v44, -inf }
 0xe28   : > { %v3050_v41 = vsel %vm1817_vm4, %v3023_v56, -inf }
 0xe29   : > { %3048 = vmax.xlane.f32.xlu0 %v3047_v9  ;;  %3051 = vmax.xlane.f32.xlu1 %v3050_v41 }
 0xe2d   : > { %3054 = vmax.xlane.f32.xlu0 %v3053_v15 }
 0xe3a   : > { %9330 = vrot.lane.b32.xlu1 %v10952_v40, %s12720_s6 }
 0xea9   : > { %v3037_v45 = vpop.xlane.xlu1 %3036 }
 0xeaa   : > { %v3057_v37 = vsub.f32 %v8104_v2, %v3037_v45  ;;  %v3034_v48 = vpop.xlane.xlu0 %3033 }
 0xeab   : > { %v3056_v7 = vsub.f32 %v2993_v6, %v3034_v48 }
 0xeac   : > { %v3066_v49 = vmul.f32 1.442695, %v3057_v37 }
 0xead   : > { %v3064_v47 = vmul.f32 1.442695, %v3056_v7 }
 0xeae   : > { %9613 = vpow2.f32 %v3066_v49  ;;  %v3040_v46 = vpop.xlane.xlu0 %3039 }
 0xeaf   : > { %9615 = vpow2.f32 %v3064_v47  ;;  %v3058_v29 = vsub.f32 %v3003_v8, %v3040_v46 }
 0xeb1   : > { %v3068_v52 = vmul.f32 1.442695, %v3058_v29 }
 0xeb2   : > { %v3043_v3 = vpop.xlane.xlu0 %3042  ;;  %v3046_v19 = vpop.xlane.xlu1 %3045 }
 0xeb3   : > { %9617 = vpow2.f32 %v3068_v52  ;;  %v3059_v14 = vsub.f32 %v8107_v38, %v3043_v3  ;;  %v3060_v10 = vsub.f32 %v3013_v1, %v3046_v19 }
 0xeb5   : > { %v3070_v24 = vmul.f32 1.442695, %v3059_v14  ;;  %v3072_v21 = vmul.f32 1.442695, %v3060_v10 }
 0xeb6   : > { %v3049_v32 = vpop.xlane.xlu0 %3048  ;;  %v3052_v40 = vpop.xlane.xlu1 %3051 }
 0xeb7   : > { %9619 = vpow2.f32 %v3070_v24  ;;  %v3061_v2 = vsub.f32 %v8110_v22, %v3049_v32  ;;  %v3062_v41 = vsub.f32 %v3023_v56, %v3052_v40 }
 0xeb8   : > { %v11376_v63 = vpop.eup %9613  ;;  %9621 = vpow2.f32 %v3072_v21 }
 0xeb9   : > { %v11378_v6 = vpop.eup %9615  ;;  %v3074_v9 = vmul.f32 1.442695, %v3061_v2  ;;  %v3083_v8 = vsel %vm1817_vm4, %v11376_v63, 0.0  ;;  %v3076_v7 = vmul.f32 1.442695, %v3062_v41 }
 0xeba   : > { %3084 = vadd.xlane.f32.xlu0 %v3083_v8  ;;  %v3055_v15 = vpop.xlane.xlu0 %3054  ;;  %v9331_v38 = vpop.permute.xlu1 %9330  ;;  %v3080_v1 = vsel %vm1817_vm4, %v11378_v6, 0.0 }
 0xebb   : > { %9623 = vpow2.f32 %v3074_v9  ;;  %v3063_v45 = vsub.f32 %v8113_v44, %v3055_v15  ;;  %v9333_v37 = vunpack.i.h.bf16 %v9331_v38  ;;  %v9332_v22 = vunpack.i.l.bf16 %v9331_v38  ;;  %3081 = vadd.xlane.f32.xlu1 %v3080_v1 }
 0xebd   : > { %v11384_v48 = vpop.eup %9617  ;;  %v3078_v49 = vmul.f32 1.442695, %v3063_v45  ;;  %v8774_v47 = vpack.c.bf16 %v9333_v37, %v9332_v22 }
 0xebe   : > { %v3086_v56 = vsel %vm1817_vm4, %v11384_v48, 0.0 }
 0xebf   : > { %9625 = vpow2.f32 %v3078_v49  ;;  %3087 = vadd.xlane.f32.xlu1 %v3086_v56  ;;  %8775 = vmatprep.subr.bf16.mxu1 %v8774_v47 }
 0xec0   : > { %8777 = vmatpush3.bf16.msra.mxu1 %v8774_v47  ;;  %9627 = vpow2.f32 %v3076_v7 }
 0xec1   : > { %v11388_v46 = vpop.eup %9619 }
 0xec2   : > { %v11390_v29 = vpop.eup %9621  ;;  %v3089_v44 = vsel %vm1817_vm4, %v11388_v46, 0.0 }
 0xec3   : > { %3090 = vadd.xlane.f32.xlu0 %v3089_v44  ;;  %v3092_v52 = vsel %vm1817_vm4, %v11390_v29, 0.0 }
 0xec4   : > { %3093 = vadd.xlane.f32.xlu1 %v3092_v52 }
 0xec5   : > { %v11396_v3 = vpop.eup %9623 }
 0xec6   : > { %v3095_v19 = vsel %vm1817_vm4, %v11396_v3, 0.0 }
 0xec7   : > { %3096 = vadd.xlane.f32.xlu0 %v3095_v19 }
 0xec9   : > { %v11400_v14 = vpop.eup %9625 }
 0xeca   : > { %v3101_v10 = vsel %vm1817_vm4, %v11400_v14, 0.0  ;;  %v11404_v24 = vpop.eup %9627 }
 0xecb   : > { %3102 = vadd.xlane.f32.xlu0 %v3101_v10  ;;  %v3098_v21 = vsel %vm1817_vm4, %v11404_v24, 0.0 }
 0xecf   : > { %3099 = vadd.xlane.f32.xlu0 %v3098_v21 }
 0xed5   : > { %9340 = vrot.lane.b32.xlu1 %v10970_v0, %s12720_s6 }
 0xed9   : > { %9345 = vrot.lane.b32.xlu1 %v10982_v13, %s12720_s6 }
 0xedd   : > { %3281 = vrot.lane.b32.xlu1 %v11216_v23, %s12718_s5 }
 0xee1   : > { %3283 = vrot.lane.b32.xlu1 %v11214_v61, %s12718_s5 }
 0xee5   : > { %3315 = vrot.lane.b32.xlu1 %v11350_v31, %s12716_s19  ;;  %9335 = vrot.lane.b32.xlu0 %v10958_v50, %s12720_s6 }
 0xee9   : > { %3287 = vrot.lane.b32.xlu1 %v11218_v27, %s12718_s5  ;;  %3313 = vrot.lane.b32.xlu0 %v11352_v20, %s12716_s19 }
 0xeed   : > { %3319 = vrot.lane.b32.xlu1 %v11354_v58, %s12716_s19  ;;  %3285 = vrot.lane.b32.xlu0 %v11220_v16, %s12718_s5 }
 0xef1   : > { %3291 = vrot.lane.b32.xlu1 %v11222_v36, %s12718_s5  ;;  %3317 = vrot.lane.b32.xlu0 %v11356_v43, %s12716_s19 }
 0xef5   : > { %3323 = vrot.lane.b32.xlu1 %v11358_v28, %s12716_s19  ;;  %3289 = vrot.lane.b32.xlu0 %v11224_v30, %s12718_s5 }
 0xef9   : > { %3295 = vrot.lane.b32.xlu1 %v11226_v35, %s12718_s5  ;;  %3321 = vrot.lane.b32.xlu0 %v11360_v59, %s12716_s19 }
 0xefd   : > { %3327 = vrot.lane.b32.xlu1 %v11362_v11, %s12716_s19  ;;  %3293 = vrot.lane.b32.xlu0 %v11228_v51, %s12718_s5  ;;  %s761_s5 = scalar_lea.vmem [#allocation20], %s7016_s14  ;;  %s10135_s14 = sshll.u32 %s10240_s2, 4  ;;  %s10136_s14 = int_to_ptr.vmem [resolvable:$false] %s10135_s14 }
 0xefe   : > { %s6820_s22 = sshll.u32 %s761_s5, 4  ;;  %s12624_s22 = int_to_ptr.vmem [resolvable:$true] %s6820_s22 }
 0xeff   : > { %s10131_s6 = scalar_lea.vmem %s12624_s22, 512  ;;  %p10138_p4 = scmp.lt.s32.totalorder %s12624_s22, %s10136_s14 }
 0xf00   : > { %p10132_p13 = scmp.ne.s32.totalorder %s12624_s22, %s10131_s6 }
 0xf01   : > { %3325 = vrot.lane.b32.xlu0 %v11364_v39, %s12716_s19  ;;  %s12789_s19 = sld [smem:[#allocation42_spill]] }
 0xf02   : > { %p10133_p2 = pnand %p10132_p13, %p12802_p0 }
 0xf04   : > { %p10134_p8 = pneg %p10133_p2 }
 0xf07   : > { %v3394_v47 = vld [vmem:[%s12789_s19] sm:$0xff]  ;;  %v3395_v56 = vld [vmem:[%s12789_s19 + $0x8] sm:$0xff]  ;;  %v3397_v44 = vld [vmem:[%s12789_s19 + $0x18] sm:$0xff] }
 0xf47   : > { %v3085_v0 = vpop.xlane.xlu0 %3084 }
 0xf48   : > { %v3082_v50 = vpop.xlane.xlu1 %3081 }
 0xf49   : > { %9629 = vrcp.f32 %v3082_v50 }
 0xf4a   : > { %9631 = vrcp.f32 %v3085_v0 }
 0xf4c   : > { %v3088_v13 = vpop.xlane.xlu1 %3087 }
 0xf4d   : > { %9633 = vrcp.f32 %v3088_v13 }
 0xf50   : > { %v3091_v61 = vpop.xlane.xlu0 %3090 }
 0xf51   : > { %v3094_v36 = vpop.xlane.xlu1 %3093  ;;  %9635 = vrcp.f32 %v3091_v61 }
 0xf52   : > { %9637 = vrcp.f32 %v3094_v36 }
 0xf53   : > { %v9630_v23 = vpop.eup %9629 }
 0xf54   : > { %v3097_v27 = vpop.xlane.xlu0 %3096  ;;  %v3105_v16 = vmul.f32 %v9630_v23, %v11378_v6  ;;  %v9632_v6 = vpop.eup %9631 }
 0xf55   : > { %v9341_v35 = vpop.permute.xlu1 %9340  ;;  %9639 = vrcp.f32 %v3097_v27  ;;  %v3107_v41 = vmul.f32 %v9632_v6, %v11376_v63 }
 0xf56   : > { %8130 = vmatprep.mubr.msk.f32.mxu1 %vm1817_vm4, %v3105_v16  ;;  %v9343_v51 = vunpack.i.h.bf16 %v9341_v35  ;;  %v9342_v58 = vunpack.i.l.bf16 %v9341_v35 }
 0xf57   : > { %v9634_v9 = vpop.eup %9633 }
 0xf58   : > { %v3103_v30 = vpop.xlane.xlu0 %3102  ;;  %v8782_v40 = vpack.c.bf16 %v9343_v51, %v9342_v58  ;;  %v3109_v15 = vmul.f32 %v9634_v9, %v11384_v48 }
 0xf59   : > { %v9346_v59 = vpop.permute.xlu1 %9345 }
 0xf5a   : > { %v9348_v39 = vunpack.i.h.bf16 %v9346_v59  ;;  %v9347_v32 = vunpack.i.l.bf16 %v9346_v59 }
 0xf5b   : > { %v9636_v8 = vpop.eup %9635 }
 0xf5c   : > { %v3100_v31 = vpop.xlane.xlu0 %3099  ;;  %v8786_v2 = vpack.c.bf16 %v9348_v39, %v9347_v32  ;;  %v9638_v38 = vpop.eup %9637  ;;  %v3111_v1 = vmul.f32 %v9636_v8, %v11388_v46  ;;  %v3396_v46 = vld [vmem:[%s12789_s19 + $0x10] sm:$0xff] }
 0xf5d   : > { %9641 = vrcp.f32 %v3100_v31  ;;  %v3113_v37 = vmul.f32 %v9638_v38, %v11390_v29  ;;  %v8790_v29 = vpack.c.bf16 %v3395_v56, %v3394_v47  ;;  %v8794_v52 = vpack.c.bf16 %v3397_v44, %v3396_v46  ;;  %v3282_v13 = vpop.permute.xlu1 %3281 }
 0xf5e   : > { %9643 = vrcp.f32 %v3103_v30  ;;  %v3369_v39 = vsel %vm1663_vm2, %v11080_v53, %v3282_v13 }
 0xf5f   : > { %v9640_v45 = vpop.eup %9639 }
 0xf60   : > { %v9336_v20 = vpop.permute.xlu0 %9335  ;;  %v3115_v63 = vmul.f32 %v9640_v45, %v11396_v3 }
 0xf61   : > { %v9338_v43 = vunpack.i.h.bf16 %v9336_v20  ;;  %v9337_v28 = vunpack.i.l.bf16 %v9336_v20  ;;  %v3284_v61 = vpop.permute.xlu1 %3283 }
 0xf63   : > { %v8778_v11 = vpack.c.bf16 %v9338_v43, %v9337_v28 }
 0xf64   : > { %v3314_v27 = vpop.permute.xlu0 %3313 }
 0xf65   : > { %8779 = vmatprep.subr.bf16.mxu1 %v8778_v11  ;;  %v3316_v23 = vpop.permute.xlu1 %3315 }
 0xf66   : > { %8781 = vmatpush3.bf16.msra.mxu1 %v8778_v11 }
 0xf67   : > { %8783 = vmatprep.subr.bf16.mxu1 %v8782_v40  ;;  %v9642_v22 = vpop.eup %9641 }
 0xf68   : > { %v9644_v7 = vpop.eup %9643  ;;  %v3117_v48 = vmul.f32 %v9642_v22, %v11404_v24  ;;  %v3286_v36 = vpop.permute.xlu0 %3285 }
 0xf69   : > { %v3119_v49 = vmul.f32 %v9644_v7, %v11400_v14  ;;  %v3288_v16 = vpop.permute.xlu1 %3287 }
 0xf6a   : > { %8785 = vmatpush3.bf16.msra.mxu1 %v8782_v40  ;;  %v3370_v40 = vsel %vm1663_vm2, %v11078_v12, %v3284_v61  ;;  %v3372_v12 = vsel %vm1663_vm2, %v11082_v54, %v3288_v16 }
 0xf6b   : > { %8787 = vmatprep.subr.bf16.mxu1 %v8786_v2  ;;  %v3378_v9 = vsel %vm805_vm0, %v3370_v40, %v3316_v23 }
 0xf6c   : > { %v3318_v35 = vpop.permute.xlu0 %3317 }
 0xf6d   : > { %v3320_v30 = vpop.permute.xlu1 %3319 }
 0xf6e   : > { %8789 = vmatpush3.bf16.msra.mxu1 %v8786_v2  ;;  %v3377_v2 = vsel %vm805_vm0, %v3369_v39, %v3314_v27  ;;  %v3380_v45 = vsel %vm805_vm0, %v3372_v12, %v3320_v30 }
 0xf6f   : > { %8791 = vmatprep.subr.bf16.mxu1 %v8790_v29 }
 0xf70   : > { %v3290_v20 = vpop.permute.xlu0 %3289 }
 0xf71   : > { %8131 = vmatmul.mubr.msk.f32.vlgmr.msra.gmra.mrb[48].mxu1 %vm1817_vm4, %v3107_v41  ;;  %v3292_v31 = vpop.permute.xlu1 %3291 }
 0xf72   : > { %8133 = vmatprep.mubr.msk.f32.mxu1 %vm1817_vm4, %v3109_v15  ;;  %8793 = vmatpush3.bf16.msra.mxu1 %v8790_v29  ;;  %v3371_v15 = vsel %vm1663_vm2, %v11084_v55, %v3286_v36  ;;  %v3373_v55 = vsel %vm1663_vm2, %v11088_v60, %v3290_v20  ;;  %v3374_v54 = vsel %vm1663_vm2, %v11086_v57, %v3292_v31 }
 0xf73   : > { %8795 = vmatprep.subr.bf16.mxu1 %v8794_v52  ;;  %v3379_v38 = vsel %vm805_vm0, %v3371_v15, %v3318_v35 }
 0xf74   : > { %v3322_v58 = vpop.permute.xlu0 %3321 }
 0xf75   : > { %8134 = vmatmul.mubr.msk.f32.gmra.mrb[50].mxu1 %vm1817_vm4, %v3111_v1  ;;  %v3324_v51 = vpop.permute.xlu1 %3323  ;;  %v3381_v7 = vsel %vm805_vm0, %v3373_v55, %v3322_v58 }
 0xf76   : > { %8136 = vmatprep.mubr.msk.f32.mxu1 %vm1817_vm4, %v3113_v37  ;;  %8797 = vmatpush3.bf16.msra.mxu1 %v8794_v52 }
 0xf78   : > { %v3294_v28 = vpop.permute.xlu0 %3293 }
 0xf79   : > { %8137 = vmatmul.mubr.msk.f32.gmra.mrb[52].mxu1 %vm1817_vm4, %v3115_v63  ;;  %v3296_v43 = vpop.permute.xlu1 %3295  ;;  %v3375_v60 = vsel %vm1663_vm2, %v11092_v5, %v3294_v28 }
 0xf7a   : > { %8139 = vmatprep.mubr.msk.f32.mxu1 %vm1817_vm4, %v3117_v48  ;;  %v3376_v57 = vsel %vm1663_vm2, %v11090_v4, %v3296_v43 }
 0xf7c   : > { %v3326_v11 = vpop.permute.xlu0 %3325 }
 0xf7d   : > { %8140 = vmatmul.mubr.msk.f32.gmra.mrb[54].mxu1 %vm1817_vm4, %v3119_v49  ;;  %v3328_v59 = vpop.permute.xlu1 %3327  ;;  %v3382_v49 = vsel %vm805_vm0, %v3374_v54, %v3324_v51  ;;  %v3383_v29 = vsel %vm805_vm0, %v3375_v60, %v3326_v11 }
 0xf7e   : > { %v3384_v52 = vsel %vm805_vm0, %v3376_v57, %v3328_v59  ;;  %v12790_v59 = vld [vmem:[#allocation28_spill] sm:$0xff] }
0x1044   : > { %v8132_v3 = vpop.f32.mrb[48].mxu1 }
0x1045   : > { %3347 = vrot.lane.b32.xlu1 %v8132_v3, %s12726_s23  ;;  %v3234_v19 = vpop.f32.mrb[49].mxu1 }
0x1046   : > { %3345 = vrot.lane.b32.xlu0 %v3234_v19, %s12726_s23 }
0x1048   : > { %v8135_v14 = vpop.f32.mrb[50].mxu1 }
0x1049   : > { %3351 = vrot.lane.b32.xlu1 %v8135_v14, %s12726_s23  ;;  %v3244_v10 = vpop.f32.mrb[51].mxu1  ;;  %v7176_v14 = vld [vmem:[#allocation16] ss:$0 sm:$0xff] }
0x104a   : > { %3349 = vrot.lane.b32.xlu0 %v3244_v10, %s12726_s23 }
0x104c   : > { %v8138_v24 = vpop.f32.mrb[52].mxu1 }
0x104d   : > { %3355 = vrot.lane.b32.xlu1 %v8138_v24, %s12726_s23  ;;  %v3254_v21 = vpop.f32.mrb[53].mxu1 }
0x104e   : > { %3353 = vrot.lane.b32.xlu0 %v3254_v21, %s12726_s23 }
0x1050   : > { %v8141_v50 = vpop.f32.mrb[54].mxu1 }
0x1051   : > { %3359 = vrot.lane.b32.xlu1 %v8141_v50, %s12726_s23  ;;  %v3264_v0 = vpop.f32.mrb[55].mxu1 }
0x1052   : > { %3357 = vrot.lane.b32.xlu0 %v3264_v0, %s12726_s23 }
0x10b7   : > { %v3348_v32 = vpop.permute.xlu1 %3347 }
0x10b8   : > { %v3346_v6 = vpop.permute.xlu0 %3345  ;;  %v3387_v8 = vsel %vm3385_vm5, %v3378_v9, %v3348_v32 }
0x10b9   : > { %v3386_v41 = vsel %vm3385_vm5, %v3377_v2, %v3346_v6 }
0x10ba   : > { %8150 = vmatprep.mubr.msk.f32.mxu1 %vm995_vm1, %v3386_v41 }
0x10bb   : > { %8151 = vmatmul.mubr.msk.f32.vlgmr.msra.gmra.mrb[56].mxu1 %vm995_vm1, %v3387_v8  ;;  %v3352_v53 = vpop.permute.xlu1 %3351 }
0x10bc   : > { %v3350_v1 = vpop.permute.xlu0 %3349  ;;  %v3389_v22 = vsel %vm3385_vm5, %v3380_v45, %v3352_v53 }
0x10bd   : > { %v3388_v37 = vsel %vm3385_vm5, %v3379_v38, %v3350_v1 }
0x10be   : > { %8153 = vmatprep.mubr.msk.f32.mxu1 %vm995_vm1, %v3388_v37 }
0x10bf   : > { %8154 = vmatmul.mubr.msk.f32.gmra.mrb[58].mxu1 %vm995_vm1, %v3389_v22  ;;  %v3356_v63 = vpop.permute.xlu1 %3355 }
0x10c0   : > { %v3354_v48 = vpop.permute.xlu0 %3353  ;;  %v3391_v56 = vsel %vm3385_vm5, %v3382_v49, %v3356_v63 }
0x10c1   : > { %v3390_v47 = vsel %vm3385_vm5, %v3381_v7, %v3354_v48 }
0x10c2   : > { %8156 = vmatprep.mubr.msk.f32.mxu1 %vm995_vm1, %v3390_v47 }
0x10c3   : > { %8157 = vmatmul.mubr.msk.f32.gmra.mrb[60].mxu1 %vm995_vm1, %v3391_v56  ;;  %v3360_v46 = vpop.permute.xlu1 %3359 }
0x10c4   : > { %v3358_v44 = vpop.permute.xlu0 %3357  ;;  %v3393_v19 = vsel %vm3385_vm5, %v3384_v52, %v3360_v46 }
0x10c5   : > { %v3392_v3 = vsel %vm3385_vm5, %v3383_v29, %v3358_v44 }
0x10c6   : > { %8159 = vmatprep.mubr.msk.f32.mxu1 %vm995_vm1, %v3392_v3 }
0x10c7   : > { %8160 = vmatmul.mubr.msk.f32.gmra.mrb[62].mxu1 %vm995_vm1, %v3393_v19 }
0x118e   : > { %v8152_v5 = vpop.f32.mrb[56].mxu1 }
0x118f   : > { %v3528_v10 = vadd.f32 %v8152_v5, %v10742_v18  ;;  %v3488_v24 = vpop.f32.mrb[57].mxu1 }
0x1190   : > { %v3527_v4 = vadd.f32 %v3488_v24, %v10740_v17 }
0x1191   : > { %v11524_v21 = vadd.f32 %v7176_v14, %v3528_v10 }
0x1192   : > { %v11526_v50 = vadd.f32 %v7176_v14, %v3527_v4  ;;  %v8155_v0 = vpop.f32.mrb[58].mxu1 }
0x1193   : > { %v3530_v13 = vadd.f32 %v8155_v0, %v10748_v25  ;;  %v3498_v61 = vpop.f32.mrb[59].mxu1  ;;  %v3555_v23 = vsel %vm995_vm1, %v11524_v21, 0.0 }
0x1194   : > { %v3529_v27 = vadd.f32 %v3498_v61, %v10750_v26  ;;  %3556 = vadd.xlane.f32.xlu1 %v3555_v23  ;;  %v3552_v18 = vsel %vm995_vm1, %v11526_v50, 0.0 }
0x1195   : > { %3553 = vadd.xlane.f32.xlu0 %v3552_v18  ;;  %v11536_v36 = vadd.f32 %v7176_v14, %v3530_v13 }
0x1196   : > { %v11534_v16 = vadd.f32 %v7176_v14, %v3529_v27  ;;  %v8158_v17 = vpop.f32.mrb[60].mxu1 }
0x1197   : > { %v3508_v30 = vpop.f32.mrb[61].mxu1  ;;  %v3532_v35 = vadd.f32 %v8158_v17, %v10758_v34  ;;  %v3561_v58 = vsel %vm995_vm1, %v11536_v36, 0.0  ;;  %v3684_v17 = vld [vmem:[%s12791_s3] sm:$0xff] }
0x1198   : > { %v3531_v25 = vadd.f32 %v3508_v30, %v10756_v33  ;;  %v3558_v31 = vsel %vm995_vm1, %v11534_v16, 0.0  ;;  %v3685_v30 = vld [vmem:[%s12791_s3 + $0x8] sm:$0xff] }
0x1199   : > { %3559 = vadd.xlane.f32.xlu0 %v3558_v31  ;;  %v11546_v43 = vadd.f32 %v7176_v14, %v3532_v35  ;;  %v8798_v35 = vpack.c.bf16 %v3685_v30, %v3684_v17  ;;  %v3687_v31 = vld [vmem:[%s12791_s3 + $0x18] sm:$0xff] }
0x119a   : > { %v11542_v26 = vadd.f32 %v7176_v14, %v3531_v25  ;;  %v8161_v20 = vpop.f32.mrb[62].mxu1  ;;  %v3686_v25 = vld [vmem:[%s12791_s3 + $0x10] sm:$0xff]  ;;  %v7177_v17 = vld [vmem:[#allocation17] ss:$0 sm:$0xff] }
0x119b   : > { %v3518_v51 = vpop.f32.mrb[63].mxu1  ;;  %v3534_v28 = vadd.f32 %v8161_v20, %v10766_v42  ;;  %v3567_v32 = vsel %vm995_vm1, %v11546_v43, 0.0  ;;  %8799 = vmatprep.subr.bf16.mxu0 %v8798_v35  ;;  %v8802_v20 = vpack.c.bf16 %v3687_v31, %v3686_v25 }
0x119c   : > { %v3533_v11 = vadd.f32 %v3518_v51, %v12790_v59  ;;  %v3564_v33 = vsel %vm995_vm1, %v11542_v26, 0.0  ;;  %8801 = vmatpush3.bf16.msra.mxu0 %v8798_v35  ;;  %v3825_v51 = vld [vmem:[%s12792_s10] sm:$0xff] }
0x119d   : > { %3562 = vadd.xlane.f32.xlu0 %v3561_v58  ;;  %3565 = vadd.xlane.f32.xlu1 %v3564_v33  ;;  %v11554_v39 = vadd.f32 %v7176_v14, %v3534_v28  ;;  %v3826_v58 = vld [vmem:[%s12792_s10 + $0x8] sm:$0xff]  ;;  %v3827_v28 = vld [vmem:[%s12792_s10 + $0x10] sm:$0xff] }
0x119e   : > { %v11552_v34 = vadd.f32 %v7176_v14, %v3533_v11  ;;  %8803 = vmatprep.subr.bf16.mxu0 %v8802_v20  ;;  %v8806_v59 = vpack.c.bf16 %v3826_v58, %v3825_v51  ;;  %v3828_v11 = vld [vmem:[%s12792_s10 + $0x18] sm:$0xff] }
0x119f   : > { %v3573_v42 = vsel %vm995_vm1, %v11554_v39, 0.0  ;;  %v8810_v33 = vpack.c.bf16 %v3828_v11, %v3827_v28 }
0x11a0   : > { %v3570_v40 = vsel %vm995_vm1, %v11552_v34, 0.0  ;;  %8805 = vmatpush3.bf16.msra.mxu0 %v8802_v20  ;;  %8807 = vmatprep.subr.bf16.mxu1 %v8806_v59 }
0x11a1   : > { %3568 = vadd.xlane.f32.xlu0 %v3567_v32  ;;  %3571 = vadd.xlane.f32.xlu1 %v3570_v40  ;;  %v3829_v32 = vld [vmem:[%s12792_s10 + $0x20] sm:$0xff]  ;;  %v3830_v40 = vld [vmem:[%s12792_s10 + $0x28] sm:$0xff] }
0x11a2   : > { %8809 = vmatpush3.bf16.msra.mxu1 %v8806_v59  ;;  %v7178_v59 = vld [vmem:[#allocation19] ss:$0 sm:$0xff] }
0x11a3   : > { %8811 = vmatprep.subr.bf16.mxu1 %v8810_v33 }
0x11a5   : > { %3574 = vadd.xlane.f32.xlu0 %v3573_v42  ;;  %v8814_v42 = vpack.c.bf16 %v3830_v40, %v3829_v32 }
0x11a6   : > { %8813 = vmatpush3.bf16.msra.mxu1 %v8810_v33 }
0x11a7   : > { %8815 = vmatprep.subr.bf16.mxu1 %v8814_v42 }
0x11aa   : > { %8817 = vmatpush3.bf16.msra.mxu1 %v8814_v42 }
0x1221   : > { %v3557_v2 = vpop.xlane.xlu1 %3556 }
0x1222   : > { %v3577_v6 = vmul.f32 0.03125, %v3557_v2  ;;  %v3554_v9 = vpop.xlane.xlu0 %3553  ;;  %v3831_v2 = vld [vmem:[%s12792_s10 + $0x30] sm:$0xff] }
0x1223   : > { %v3576_v41 = vmul.f32 0.03125, %v3554_v9 }
0x1224   : > { %v11563_v8 = vsub.f32 %v11524_v21, %v3577_v6  ;;  %v3832_v6 = vld [vmem:[%s12792_s10 + $0x38] sm:$0xff] }
0x1225   : > { %v11566_v15 = vsub.f32 %v11526_v50, %v3576_v41  ;;  %v8818_v9 = vpack.c.bf16 %v3832_v6, %v3831_v2  ;;  %v3833_v41 = vld [vmem:[%s12792_s10 + $0x40] sm:$0xff] }
0x1226   : > { %v3560_v53 = vpop.xlane.xlu0 %3559  ;;  %v3593_v12 = vmul.f32 %v11563_v8, %v11563_v8 }
0x1227   : > { %v3578_v38 = vmul.f32 0.03125, %v3560_v53  ;;  %v3592_v1 = vmul.f32 %v11566_v15, %v11566_v15  ;;  %v3834_v53 = vld [vmem:[%s12792_s10 + $0x48] sm:$0xff]  ;;  %8819 = vmatprep.subr.bf16.mxu1 %v8818_v9 }
0x1228   : > { %v3603_v45 = vsel %vm995_vm1, %v3593_v12, 0.0  ;;  %v8822_v12 = vpack.c.bf16 %v3834_v53, %v3833_v41  ;;  %8821 = vmatpush3.bf16.msra.mxu1 %v8818_v9 }
0x1229   : > { %v11574_v37 = vsub.f32 %v11534_v16, %v3578_v38  ;;  %3604 = vadd.xlane.f32.xlu0 %v3603_v45  ;;  %v3600_v22 = vsel %vm995_vm1, %v3592_v1, 0.0  ;;  %v3835_v38 = vld [vmem:[%s12792_s10 + $0x50] sm:$0xff]  ;;  %v3836_v1 = vld [vmem:[%s12792_s10 + $0x58] sm:$0xff] }
0x122a   : > { %v3563_v55 = vpop.xlane.xlu0 %3562  ;;  %v3566_v63 = vpop.xlane.xlu1 %3565  ;;  %3601 = vadd.xlane.f32.xlu1 %v3600_v22  ;;  %8823 = vmatprep.subr.bf16.mxu1 %v8822_v12  ;;  %v8826_v45 = vpack.c.bf16 %v3836_v1, %v3835_v38  ;;  %v3837_v22 = vld [vmem:[%s12792_s10 + $0x60] sm:$0xff] }
0x122b   : > { %v3579_v54 = vmul.f32 0.03125, %v3563_v55  ;;  %v3580_v7 = vmul.f32 0.03125, %v3566_v63  ;;  %v3594_v48 = vmul.f32 %v11574_v37, %v11574_v37  ;;  %v3838_v55 = vld [vmem:[%s12792_s10 + $0x68] sm:$0xff] }
0x122c   : > { %8825 = vmatpush3.bf16.msra.mxu1 %v8822_v12  ;;  %v8830_v63 = vpack.c.bf16 %v3838_v55, %v3837_v22 }
0x122d   : > { %v11580_v49 = vsub.f32 %v11536_v36, %v3579_v54  ;;  %v11583_v47 = vsub.f32 %v11542_v26, %v3580_v7  ;;  %v3606_v56 = vsel %vm995_vm1, %v3594_v48, 0.0  ;;  %8827 = vmatprep.subr.bf16.mxu1 %v8826_v45 }
0x122e   : > { %v3569_v60 = vpop.xlane.xlu0 %3568  ;;  %3607 = vadd.xlane.f32.xlu1 %v3606_v56  ;;  %v3572_v46 = vpop.xlane.xlu1 %3571 }
0x122f   : > { %v3581_v57 = vmul.f32 0.03125, %v3569_v60  ;;  %v3582_v29 = vmul.f32 0.03125, %v3572_v46  ;;  %v3595_v44 = vmul.f32 %v11580_v49, %v11580_v49  ;;  %v3596_v52 = vmul.f32 %v11583_v47, %v11583_v47 }
0x1230   : > { %8829 = vmatpush3.bf16.msra.mxu1 %v8826_v45 }
0x1231   : > { %v11591_v3 = vsub.f32 %v11546_v43, %v3581_v57  ;;  %v11594_v19 = vsub.f32 %v11552_v34, %v3582_v29  ;;  %v3609_v5 = vsel %vm995_vm1, %v3595_v44, 0.0  ;;  %v3612_v14 = vsel %vm995_vm1, %v3596_v52, 0.0  ;;  %8831 = vmatprep.subr.bf16.mxu1 %v8830_v63 }
0x1232   : > { %3610 = vadd.xlane.f32.xlu0 %v3609_v5  ;;  %v3575_v10 = vpop.xlane.xlu0 %3574  ;;  %3613 = vadd.xlane.f32.xlu1 %v3612_v14 }
0x1233   : > { %v3583_v24 = vmul.f32 0.03125, %v3575_v10  ;;  %v3597_v4 = vmul.f32 %v11591_v3, %v11591_v3  ;;  %v3598_v0 = vmul.f32 %v11594_v19, %v11594_v19 }
0x1234   : > { %8833 = vmatpush3.bf16.msra.mxu1 %v8830_v63 }
0x1235   : > { %v11603_v13 = vsub.f32 %v11554_v39, %v3583_v24  ;;  %v3615_v61 = vsel %vm995_vm1, %v3597_v4, 0.0  ;;  %v3618_v23 = vsel %vm995_vm1, %v3598_v0, 0.0 }
0x1236   : > { %3616 = vadd.xlane.f32.xlu0 %v3615_v61  ;;  %3619 = vadd.xlane.f32.xlu1 %v3618_v23 }
0x1237   : > { %v3599_v27 = vmul.f32 %v11603_v13, %v11603_v13 }
0x1239   : > { %v3621_v18 = vsel %vm995_vm1, %v3599_v27, 0.0 }
0x123a   : > { %3622 = vadd.xlane.f32.xlu0 %v3621_v18 }
0x12b6   : > { %v3605_v54 = vpop.xlane.xlu0 %3604 }
0x12b7   : > { %v3625_v7 = vmul.f32 0.03125, %v3605_v54  ;;  %v3602_v48 = vpop.xlane.xlu1 %3601 }
0x12b8   : > { %v3624_v56 = vmul.f32 0.03125, %v3602_v48 }
0x12b9   : > { %v3633_v60 = vadd.f32 1e-05, %v3625_v7 }
0x12ba   : > { %v3632_v46 = vadd.f32 1e-05, %v3624_v56 }
0x12bb   : > { %9645 = vrsqrt.f32 %v3633_v60  ;;  %v3608_v57 = vpop.xlane.xlu1 %3607 }
0x12bc   : > { %9647 = vrsqrt.f32 %v3632_v46  ;;  %v3626_v29 = vmul.f32 0.03125, %v3608_v57  ;;  %v3840_v46 = vld [vmem:[%s12792_s10 + $0x78] sm:$0xff] }
0x12be   : > { %v3634_v44 = vadd.f32 1e-05, %v3626_v29 }
0x12bf   : > { %v3611_v52 = vpop.xlane.xlu0 %3610  ;;  %v3614_v5 = vpop.xlane.xlu1 %3613 }
0x12c0   : > { %9649 = vrsqrt.f32 %v3634_v44  ;;  %v3627_v14 = vmul.f32 0.03125, %v3611_v52  ;;  %v3628_v10 = vmul.f32 0.03125, %v3614_v5 }
0x12c2   : > { %v3635_v24 = vadd.f32 1e-05, %v3627_v14  ;;  %v3636_v4 = vadd.f32 1e-05, %v3628_v10 }
0x12c3   : > { %v3617_v0 = vpop.xlane.xlu0 %3616  ;;  %v3620_v61 = vpop.xlane.xlu1 %3619 }
0x12c4   : > { %9651 = vrsqrt.f32 %v3635_v24  ;;  %v3629_v23 = vmul.f32 0.03125, %v3617_v0  ;;  %v3630_v27 = vmul.f32 0.03125, %v3620_v61 }
0x12c5   : > { %v9646_v18 = vpop.eup %9645  ;;  %9653 = vrsqrt.f32 %v3636_v4 }
0x12c6   : > { %v9648_v30 = vpop.eup %9647  ;;  %v3649_v35 = vmul.f32 %v9646_v18, %v11563_v8  ;;  %v3637_v25 = vadd.f32 1e-05, %v3629_v23  ;;  %v3638_v31 = vadd.f32 1e-05, %v3630_v27 }
0x12c7   : > { %v3623_v20 = vpop.xlane.xlu0 %3622  ;;  %v3648_v51 = vmul.f32 %v9648_v30, %v11566_v15 }
0x12c8   : > { %v3663_v58 = vmul.f32 %v7177_v17, %v3649_v35  ;;  %9655 = vrsqrt.f32 %v3637_v25  ;;  %v3631_v28 = vmul.f32 0.03125, %v3623_v20 }
0x12c9   : > { %9657 = vrsqrt.f32 %v3638_v31  ;;  %v3662_v11 = vmul.f32 %v7177_v17, %v3648_v51 }
0x12ca   : > { %v9650_v33 = vpop.eup %9649  ;;  %v3639_v32 = vadd.f32 1e-05, %v3631_v28  ;;  %v3677_v2 = vadd.f32 %v7178_v59, %v3663_v58 }
0x12cb   : > { %v3676_v40 = vadd.f32 %v7178_v59, %v3662_v11  ;;  %v3650_v42 = vmul.f32 %v9650_v33, %v11574_v37 }
0x12cc   : > { %9659 = vrsqrt.f32 %v3639_v32 }
0x12cd   : > { %8170 = vmatprep.mubr.msk.f32.mxu0 %vm995_vm1, %v3676_v40  ;;  %v3664_v8 = vmul.f32 %v7177_v17, %v3650_v42 }
0x12ce   : > { %v9652_v6 = vpop.eup %9651  ;;  %8171 = vmatmul.mubr.msk.f32.vlgmr.msra.gmra.mrb[48].mxu0 %vm995_vm1, %v3677_v2 }
0x12cf   : > { %v9654_v15 = vpop.eup %9653  ;;  %v3678_v9 = vadd.f32 %v7178_v59, %v3664_v8  ;;  %v3651_v41 = vmul.f32 %v9652_v6, %v11580_v49 }
0x12d0   : > { %v3652_v53 = vmul.f32 %v9654_v15, %v11583_v47 }
0x12d1   : > { %8173 = vmatprep.mubr.msk.f32.mxu0 %vm995_vm1, %v3678_v9  ;;  %v3665_v12 = vmul.f32 %v7177_v17, %v3651_v41 }
0x12d2   : > { %v9656_v38 = vpop.eup %9655  ;;  %v3666_v1 = vmul.f32 %v7177_v17, %v3652_v53 }
0x12d3   : > { %v9658_v37 = vpop.eup %9657  ;;  %v3679_v45 = vadd.f32 %v7178_v59, %v3665_v12  ;;  %v3653_v22 = vmul.f32 %v9656_v38, %v11591_v3 }
0x12d4   : > { %v3680_v55 = vadd.f32 %v7178_v59, %v3666_v1  ;;  %v3654_v63 = vmul.f32 %v9658_v37, %v11594_v19  ;;  %v3839_v19 = vld [vmem:[%s12792_s10 + $0x70] sm:$0xff] }
0x12d5   : > { %8174 = vmatmul.mubr.msk.f32.gmra.mrb[50].mxu0 %vm995_vm1, %v3679_v45  ;;  %v3667_v54 = vmul.f32 %v7177_v17, %v3653_v22  ;;  %v8834_v57 = vpack.c.bf16 %v3840_v46, %v3839_v19 }
0x12d6   : > { %v9660_v7 = vpop.eup %9659  ;;  %8176 = vmatprep.mubr.msk.f32.mxu0 %vm995_vm1, %v3680_v55  ;;  %v3668_v49 = vmul.f32 %v7177_v17, %v3654_v63 }
0x12d7   : > { %v3681_v47 = vadd.f32 %v7178_v59, %v3667_v54  ;;  %v3655_v48 = vmul.f32 %v9660_v7, %v11603_v13  ;;  %8835 = vmatprep.subr.bf16.mxu1 %v8834_v57 }
0x12d8   : > { %v3682_v56 = vadd.f32 %v7178_v59, %v3668_v49  ;;  %8837 = vmatpush3.bf16.msra.mxu1 %v8834_v57 }
0x12d9   : > { %8177 = vmatmul.mubr.msk.f32.gmra.mrb[52].mxu0 %vm995_vm1, %v3681_v47  ;;  %v3669_v60 = vmul.f32 %v7177_v17, %v3655_v48 }
0x12da   : > { %8179 = vmatprep.mubr.msk.f32.mxu0 %vm995_vm1, %v3682_v56 }
0x12db   : > { %v3683_v3 = vadd.f32 %v7178_v59, %v3669_v60 }
0x12dd   : > { %8180 = vmatmul.mubr.msk.f32.gmra.mrb[54].mxu0 %vm995_vm1, %v3683_v3 }
0x13a1   : > { %v8172_v13 = vpop.f32.mrb[48].mxu0 }
0x13a2   : > { %v3778_v29 = vpop.f32.mrb[49].mxu0  ;;  %v3818_v52 = vmax.f32 %v8172_v13, 0.0 }
0x13a3   : > { %v3817_v44 = vmax.f32 %v3778_v29, 0.0 }
0x13a5   : > { %8214 = vmatprep.mubr.f32.mxu1 %v3817_v44 }
0x13a6   : > { %8215 = vmatmul.mubr.f32.vlgmr.msra.gmra.mrb[64].mxu1 %v3818_v52 }
0x13a8   : > { %v8175_v5 = vpop.f32.mrb[50].mxu0 }
0x13a9   : > { %v3788_v14 = vpop.f32.mrb[51].mxu0  ;;  %v3820_v24 = vmax.f32 %v8175_v5, 0.0 }
0x13aa   : > { %v3819_v10 = vmax.f32 %v3788_v14, 0.0 }
0x13ac   : > { %v8178_v4 = vpop.f32.mrb[52].mxu0  ;;  %8217 = vmatprep.mubr.f32.mxu1 %v3819_v10 }
0x13ad   : > { %v3798_v0 = vpop.f32.mrb[53].mxu0  ;;  %8218 = vmatmul.mubr.f32.gmra.mrb[66].mxu1 %v3820_v24  ;;  %v3822_v23 = vmax.f32 %v8178_v4, 0.0 }
0x13ae   : > { %v3821_v61 = vmax.f32 %v3798_v0, 0.0 }
0x13b0   : > { %v8181_v27 = vpop.f32.mrb[54].mxu0  ;;  %8220 = vmatprep.mubr.f32.mxu1 %v3821_v61 }
0x13b1   : > { %v3808_v18 = vpop.f32.mrb[55].mxu0  ;;  %8221 = vmatmul.mubr.f32.gmra.mrb[68].mxu1 %v3822_v23  ;;  %v3824_v30 = vmax.f32 %v8181_v27, 0.0 }
0x13b2   : > { %v3823_v17 = vmax.f32 %v3808_v18, 0.0 }
0x13b4   : > { %8223 = vmatprep.mubr.f32.mxu1 %v3823_v17 }
0x13b5   : > { %8224 = vmatmul.mubr.f32.gmra.mrb[70].mxu1 %v3824_v30 }
0x1479   : > { %v8216_v35 = vpop.f32.mrb[64].mxu1 }
0x147a   : > { %v11687_v25 = vadd.f32 %v8216_v35, %v11524_v21  ;;  %v3907_v31 = vpop.f32.mrb[65].mxu1 }
0x147b   : > { %v11690_v20 = vadd.f32 %v3907_v31, %v11526_v50  ;;  %v7191_v31 = vld [vmem:[%s12783_s29 + $0x20] sm:$0xff] }
0x147c   : > { %v3961_v51 = vsel %vm995_vm1, %v11687_v25, 0.0 }
0x147d   : > { %3962 = vadd.xlane.f32.xlu0 %v3961_v51  ;;  %v3958_v58 = vsel %vm995_vm1, %v11690_v20, 0.0  ;;  %v7192_v51 = vld [vmem:[%s12783_s29 + $0x28] sm:$0xff] }
0x147e   : > { %3959 = vadd.xlane.f32.xlu1 %v3958_v58  ;;  %v7217_v58 = vld [vmem:[%s12784_s17 + $0x20] sm:$0xff] }
0x1480   : > { %v8219_v28 = vpop.f32.mrb[66].mxu1 }
0x1481   : > { %v11697_v59 = vadd.f32 %v8219_v28, %v11536_v36  ;;  %v3917_v11 = vpop.f32.mrb[67].mxu1  ;;  %v8838_v28 = vpack.c.bf16 %v7192_v51, %v7191_v31  ;;  %v7206_v31 = vld [vmem:[%s12782_s25 + $0x30] sm:$0xff] }
0x1482   : > { %v11700_v21 = vadd.f32 %v3917_v11, %v11534_v16  ;;  %v7218_v11 = vld [vmem:[%s12784_s17 + $0x28] sm:$0xff] }
0x1483   : > { %v3967_v50 = vsel %vm995_vm1, %v11697_v59, 0.0  ;;  %8839 = vmatprep.subr.bf16.mxu0 %v8838_v28 }
0x1484   : > { %3968 = vadd.xlane.f32.xlu0 %v3967_v50  ;;  %v8222_v33 = vpop.f32.mrb[68].mxu1  ;;  %v3964_v32 = vsel %vm995_vm1, %v11700_v21, 0.0  ;;  %v8854_v50 = vpack.c.bf16 %v7218_v11, %v7217_v58  ;;  %8841 = vmatpush3.bf16.msra.mxu0 %v8838_v28 }
0x1485   : > { %v11707_v40 = vadd.f32 %v8222_v33, %v11546_v43  ;;  %3965 = vadd.xlane.f32.xlu1 %v3964_v32  ;;  %v3927_v42 = vpop.f32.mrb[69].mxu1  ;;  %v7193_v33 = vld [vmem:[%s12783_s29 + $0x30] sm:$0xff]  ;;  %v7194_v32 = vld [vmem:[%s12783_s29 + $0x38] sm:$0xff] }
0x1486   : > { %v11710_v36 = vadd.f32 %v3927_v42, %v11542_v26  ;;  %8855 = vmatprep.subr.bf16.mxu1 %v8854_v50  ;;  %v7219_v42 = vld [vmem:[%s12784_s17 + $0x30] sm:$0xff] }
0x1487   : > { %v3973_v16 = vsel %vm995_vm1, %v11707_v40, 0.0  ;;  %8857 = vmatpush3.bf16.msra.mxu1 %v8854_v50 }
0x1488   : > { %3974 = vadd.xlane.f32.xlu0 %v3973_v16  ;;  %v8225_v2 = vpop.f32.mrb[70].mxu1  ;;  %v3970_v8 = vsel %vm995_vm1, %v11710_v36, 0.0  ;;  %v8842_v16 = vpack.c.bf16 %v7194_v32, %v7193_v33 }
0x1489   : > { %v11717_v6 = vadd.f32 %v8225_v2, %v11554_v39  ;;  %3971 = vadd.xlane.f32.xlu1 %v3970_v8  ;;  %v3937_v15 = vpop.f32.mrb[71].mxu1  ;;  %v7220_v2 = vld [vmem:[%s12784_s17 + $0x38] sm:$0xff] }
0x148a   : > { %v11720_v43 = vadd.f32 %v3937_v15, %v11552_v34  ;;  %v8858_v8 = vpack.c.bf16 %v7220_v2, %v7219_v42  ;;  %8843 = vmatprep.subr.bf16.mxu0 %v8842_v16  ;;  %v7204_v15 = vld [vmem:[%s12782_s25 + $0x20] sm:$0xff] }
0x148b   : > { %v3979_v26 = vsel %vm995_vm1, %v11717_v6, 0.0  ;;  %8845 = vmatpush3.bf16.msra.mxu0 %v8842_v16 }
0x148c   : > { %12793 = vst [vmem:[#allocation28_spill] sm:$0xff] %v11720_v43  ;;  %3980 = vadd.xlane.f32.xlu0 %v3979_v26  ;;  %v3976_v9 = vsel %vm995_vm1, %v11720_v43, 0.0  ;;  %8859 = vmatprep.subr.bf16.mxu1 %v8858_v8  ;;  %v7205_v26 = vld [vmem:[%s12782_s25 + $0x28] sm:$0xff] }
0x148d   : > { %3977 = vadd.xlane.f32.xlu1 %v3976_v9  ;;  %8861 = vmatpush3.bf16.msra.mxu1 %v8858_v8  ;;  %v8846_v9 = vpack.c.bf16 %v7205_v26, %v7204_v15 }
0x148f   : > { %8847 = vmatprep.subr.bf16.mxu0 %v8846_v9 }
0x150a   : > { %v3963_v41 = vpop.xlane.xlu0 %3962 }
0x150b   : > { %v3983_v53 = vmul.f32 0.03125, %v3963_v41  ;;  %v3960_v12 = vpop.xlane.xlu1 %3959 }
0x150c   : > { %v3982_v38 = vmul.f32 0.03125, %v3960_v12 }
0x150d   : > { %v11727_v39 = vsub.f32 %v11687_v25, %v3983_v53 }
0x150e   : > { %v11730_v1 = vsub.f32 %v11690_v20, %v3982_v38 }
0x150f   : > { %v3999_v34 = vmul.f32 %v11727_v39, %v11727_v39 }
0x1510   : > { %v3998_v37 = vmul.f32 %v11730_v1, %v11730_v1 }
0x1511   : > { %v3969_v45 = vpop.xlane.xlu0 %3968  ;;  %v4009_v22 = vsel %vm995_vm1, %v3999_v34, 0.0 }
0x1512   : > { %v3985_v55 = vmul.f32 0.03125, %v3969_v45  ;;  %4010 = vadd.xlane.f32.xlu0 %v4009_v22  ;;  %v3966_v63 = vpop.xlane.xlu1 %3965  ;;  %v4006_v54 = vsel %vm995_vm1, %v3998_v37, 0.0 }
0x1513   : > { %v3984_v7 = vmul.f32 0.03125, %v3966_v63  ;;  %4007 = vadd.xlane.f32.xlu1 %v4006_v54 }
0x1514   : > { %v11739_v49 = vsub.f32 %v11697_v59, %v3985_v55 }
0x1515   : > { %v11742_v47 = vsub.f32 %v11700_v21, %v3984_v7  ;;  %v3975_v48 = vpop.xlane.xlu0 %3974 }
0x1516   : > { %v3987_v56 = vmul.f32 0.03125, %v3975_v48  ;;  %v3972_v60 = vpop.xlane.xlu1 %3971  ;;  %v4001_v3 = vmul.f32 %v11739_v49, %v11739_v49 }
0x1517   : > { %v3986_v19 = vmul.f32 0.03125, %v3972_v60  ;;  %v4000_v46 = vmul.f32 %v11742_v47, %v11742_v47 }
0x1518   : > { %v11749_v57 = vsub.f32 %v11707_v40, %v3987_v56  ;;  %v4015_v13 = vsel %vm995_vm1, %v4001_v3, 0.0 }
0x1519   : > { %v11753_v29 = vsub.f32 %v11710_v36, %v3986_v19  ;;  %4016 = vadd.xlane.f32.xlu0 %v4015_v13  ;;  %v3981_v44 = vpop.xlane.xlu0 %3980  ;;  %v4012_v52 = vsel %vm995_vm1, %v4000_v46, 0.0  ;;  %v7189_v13 = vld [vmem:[%s12785_s18 + $0x1] ss:$0 sm:$0xff] }
0x151a   : > { %v3989_v5 = vmul.f32 0.03125, %v3981_v44  ;;  %4013 = vadd.xlane.f32.xlu1 %v4012_v52  ;;  %v3978_v14 = vpop.xlane.xlu1 %3977  ;;  %v4003_v10 = vmul.f32 %v11749_v57, %v11749_v57 }
0x151b   : > { %v3988_v24 = vmul.f32 0.03125, %v3978_v14  ;;  %v4002_v4 = vmul.f32 %v11753_v29, %v11753_v29 }
0x151c   : > { %v11761_v0 = vsub.f32 %v11717_v6, %v3989_v5  ;;  %v4021_v61 = vsel %vm995_vm1, %v4003_v10, 0.0 }
0x151d   : > { %v11765_v23 = vsub.f32 %v11720_v43, %v3988_v24  ;;  %4022 = vadd.xlane.f32.xlu0 %v4021_v61  ;;  %v4018_v27 = vsel %vm995_vm1, %v4002_v4, 0.0 }
0x151e   : > { %4019 = vadd.xlane.f32.xlu1 %v4018_v27  ;;  %v4005_v18 = vmul.f32 %v11761_v0, %v11761_v0 }
0x151f   : > { %v4004_v17 = vmul.f32 %v11765_v23, %v11765_v23 }
0x1520   : > { %v4027_v30 = vsel %vm995_vm1, %v4005_v18, 0.0 }
0x1521   : > { %4028 = vadd.xlane.f32.xlu0 %v4027_v30  ;;  %v4024_v35 = vsel %vm995_vm1, %v4004_v17, 0.0  ;;  %v7190_v17 = vld [vmem:[%s12786_s28 + $0x1] ss:$0 sm:$0xff] }
0x1522   : > { %4025 = vadd.xlane.f32.xlu1 %v4024_v35 }
0x159f   : > { %v4011_v41 = vpop.xlane.xlu0 %4010 }
0x15a0   : > { %v4031_v53 = vmul.f32 0.03125, %v4011_v41  ;;  %v4008_v12 = vpop.xlane.xlu1 %4007 }
0x15a1   : > { %v4030_v38 = vmul.f32 0.03125, %v4008_v12 }
0x15a2   : > { %v4039_v34 = vadd.f32 1e-05, %v4031_v53 }
0x15a3   : > { %v4038_v37 = vadd.f32 1e-05, %v4030_v38 }
0x15a4   : > { %9661 = vrsqrt.f32 %v4039_v34 }
0x15a5   : > { %9663 = vrsqrt.f32 %v4038_v37 }
0x15a6   : > { %v4017_v45 = vpop.xlane.xlu0 %4016 }
0x15a7   : > { %v4033_v22 = vmul.f32 0.03125, %v4017_v45  ;;  %v4014_v55 = vpop.xlane.xlu1 %4013 }
0x15a8   : > { %v4032_v63 = vmul.f32 0.03125, %v4014_v55 }
0x15a9   : > { %v4041_v54 = vadd.f32 1e-05, %v4033_v22 }
0x15aa   : > { %v4040_v7 = vadd.f32 1e-05, %v4032_v63  ;;  %v4023_v48 = vpop.xlane.xlu0 %4022 }
0x15ab   : > { %9665 = vrsqrt.f32 %v4041_v54  ;;  %v4035_v56 = vmul.f32 0.03125, %v4023_v48  ;;  %v4020_v60 = vpop.xlane.xlu1 %4019 }
0x15ac   : > { %9667 = vrsqrt.f32 %v4040_v7  ;;  %v4034_v3 = vmul.f32 0.03125, %v4020_v60 }
0x15ad   : > { %v4043_v19 = vadd.f32 1e-05, %v4035_v56 }
0x15ae   : > { %v9662_v46 = vpop.eup %9661  ;;  %v4042_v44 = vadd.f32 1e-05, %v4034_v3  ;;  %v4029_v52 = vpop.xlane.xlu0 %4028 }
0x15af   : > { %v9664_v5 = vpop.eup %9663  ;;  %v4055_v14 = vmul.f32 %v9662_v46, %v11727_v39  ;;  %9669 = vrsqrt.f32 %v4043_v19  ;;  %v4037_v10 = vmul.f32 0.03125, %v4029_v52  ;;  %v4026_v24 = vpop.xlane.xlu1 %4025  ;;  %v7207_v39 = vld [vmem:[%s12782_s25 + $0x38] sm:$0xff] }
0x15b0   : > { %9671 = vrsqrt.f32 %v4042_v44  ;;  %v4036_v4 = vmul.f32 0.03125, %v4026_v24  ;;  %v4054_v61 = vmul.f32 %v9664_v5, %v11730_v1  ;;  %v8850_v28 = vpack.c.bf16 %v7207_v39, %v7206_v31 }
0x15b1   : > { %v4069_v27 = vmul.f32 %v7189_v13, %v4055_v14  ;;  %v4045_v18 = vadd.f32 1e-05, %v4037_v10 }
0x15b2   : > { %v4044_v30 = vadd.f32 1e-05, %v4036_v4  ;;  %v4068_v35 = vmul.f32 %v7189_v13, %v4054_v61 }
0x15b3   : > { %9673 = vrsqrt.f32 %v4045_v18  ;;  %v4083_v58 = vadd.f32 %v7190_v17, %v4069_v27 }
0x15b4   : > { %9675 = vrsqrt.f32 %v4044_v30  ;;  %v4082_v51 = vadd.f32 %v7190_v17, %v4068_v35 }
0x15b5   : > { %v9666_v1 = vpop.eup %9665 }
0x15b6   : > { %v9668_v11 = vpop.eup %9667  ;;  %8234 = vmatprep.mubr.msk.f32.mxu0 %vm995_vm1, %v4082_v51  ;;  %8274 = vmatprep.mubr.msk.f32.mxu1 %vm995_vm1, %v4082_v51  ;;  %v4057_v50 = vmul.f32 %v9666_v1, %v11739_v49 }
0x15b7   : > { %8235 = vmatmul.mubr.msk.f32.vlgmr.msra.gmra.mrb[56].mxu0 %vm995_vm1, %v4083_v58  ;;  %8275 = vmatmul.mubr.msk.f32.vlgmr.msra.gmra.mrb[72].mxu1 %vm995_vm1, %v4083_v58  ;;  %v4056_v33 = vmul.f32 %v9668_v11, %v11742_v47 }
0x15b8   : > { %8849 = vmatpush3.bf16.msra.mxu0 %v8846_v9  ;;  %v4071_v32 = vmul.f32 %v7189_v13, %v4057_v50 }
0x15b9   : > { %v9670_v42 = vpop.eup %9669  ;;  %v4070_v16 = vmul.f32 %v7189_v13, %v4056_v33  ;;  %8851 = vmatprep.subr.bf16.mxu0 %v8850_v28  ;;  %v7208_v33 = vld [vmem:[#allocation13 + $0x1] ss:$0 sm:$0xff] }
0x15ba   : > { %v9672_v2 = vpop.eup %9671  ;;  %v4059_v8 = vmul.f32 %v9670_v42, %v11749_v57  ;;  %v4085_v41 = vadd.f32 %v7190_v17, %v4071_v32 }
0x15bb   : > { %v4084_v15 = vadd.f32 %v7190_v17, %v4070_v16  ;;  %v4058_v26 = vmul.f32 %v9672_v2, %v11753_v29 }
0x15bc   : > { %v4073_v53 = vmul.f32 %v7189_v13, %v4059_v8  ;;  %8853 = vmatpush3.bf16.msra.mxu0 %v8850_v28 }
0x15bd   : > { %v9674_v49 = vpop.eup %9673  ;;  %8237 = vmatprep.mubr.msk.f32.mxu0 %vm995_vm1, %v4084_v15  ;;  %8277 = vmatprep.mubr.msk.f32.mxu1 %vm995_vm1, %v4084_v15  ;;  %v4072_v47 = vmul.f32 %v7189_v13, %v4058_v26 }
0x15be   : > { %v9676_v9 = vpop.eup %9675  ;;  %8238 = vmatmul.mubr.msk.f32.gmra.mrb[58].mxu0 %vm995_vm1, %v4085_v41  ;;  %8278 = vmatmul.mubr.msk.f32.gmra.mrb[74].mxu1 %vm995_vm1, %v4085_v41  ;;  %v4061_v12 = vmul.f32 %v9674_v49, %v11761_v0  ;;  %v4087_v29 = vadd.f32 %v7190_v17, %v4073_v53  ;;  %v7221_v0 = vld [vmem:[#allocation14 + $0x1] ss:$0 sm:$0xff] }
0x15bf   : > { %v4086_v57 = vadd.f32 %v7190_v17, %v4072_v47  ;;  %v4060_v38 = vmul.f32 %v9676_v9, %v11765_v23  ;;  %v11848_v23 = vld [vmem:[#allocation11 + $0x1] ss:$0 sm:$0xff] }
0x15c0   : > { %v4075_v34 = vmul.f32 %v7189_v13, %v4061_v12 }
0x15c1   : > { %8240 = vmatprep.mubr.msk.f32.mxu0 %vm995_vm1, %v4086_v57  ;;  %8280 = vmatprep.mubr.msk.f32.mxu1 %vm995_vm1, %v4086_v57  ;;  %v4074_v37 = vmul.f32 %v7189_v13, %v4060_v38 }
0x15c2   : > { %8241 = vmatmul.mubr.msk.f32.gmra.mrb[60].mxu0 %vm995_vm1, %v4087_v29  ;;  %8281 = vmatmul.mubr.msk.f32.gmra.mrb[76].mxu1 %vm995_vm1, %v4087_v29  ;;  %v4089_v22 = vadd.f32 %v7190_v17, %v4075_v34 }
0x15c3   : > { %v4088_v45 = vadd.f32 %v7190_v17, %v4074_v37 }
0x15c5   : > { %8243 = vmatprep.mubr.msk.f32.mxu0 %vm995_vm1, %v4088_v45  ;;  %8283 = vmatprep.mubr.msk.f32.mxu1 %vm995_vm1, %v4088_v45 }
0x15c6   : > { %8244 = vmatmul.mubr.msk.f32.gmra.mrb[62].mxu0 %vm995_vm1, %v4089_v22  ;;  %8284 = vmatmul.mubr.msk.f32.gmra.mrb[78].mxu1 %vm995_vm1, %v4089_v22 }
0x15c7   : > { %8254 = vmatprep.mubr.msk.f32.mxu0 %vm995_vm1, %v4082_v51 }
0x15ca   : > { %8255 = vmatmul.mubr.msk.f32.vlgmr.msra.gmra.mrb[64].mxu0 %vm995_vm1, %v4083_v58 }
0x15cb   : > { %8257 = vmatprep.mubr.msk.f32.mxu0 %vm995_vm1, %v4084_v15 }
0x15ce   : > { %8258 = vmatmul.mubr.msk.f32.gmra.mrb[66].mxu0 %vm995_vm1, %v4085_v41 }
0x15cf   : > { %8260 = vmatprep.mubr.msk.f32.mxu0 %vm995_vm1, %v4086_v57 }
0x15d2   : > { %8261 = vmatmul.mubr.msk.f32.gmra.mrb[68].mxu0 %vm995_vm1, %v4087_v29 }
0x15d3   : > { %8263 = vmatprep.mubr.msk.f32.mxu0 %vm995_vm1, %v4088_v45 }
0x15d6   : > { %8264 = vmatmul.mubr.msk.f32.gmra.mrb[70].mxu0 %vm995_vm1, %v4089_v22 }
0x168a   : > { %v11850_v55 = vpop.f32.mrb[56].mxu0  ;;  %v8276_v63 = vpop.f32.mrb[72].mxu1 }
0x168b   : > { %v4435_v54 = vadd.f32 %v8276_v63, %v7221_v0  ;;  %v4193_v7 = vpop.f32.mrb[57].mxu0  ;;  %v4429_v48 = vpop.f32.mrb[73].mxu1 }
0x168c   : > { %v4194_v56 = vadd.f32 %v11848_v23, %v4193_v7  ;;  %v4430_v60 = vadd.f32 %v7221_v0, %v4429_v48 }
0x168e   : > { %v11853_v3 = vmul.f32 0.35355338, %v4194_v56  ;;  %v8886_v19 = vpack.c.bf16 %v4435_v54, %v4430_v60  ;;  %v11855_v46 = vpack.i.bf16 %v4435_v54, %v4430_v60  ;;  %v4199_v60 = vadd.f32 %v11850_v55, %v11848_v23 }
0x1690   : > { %8302 = vmatprep.mubr.msk.f32.mxu0 %vm1663_vm2, %v11853_v3  ;;  %8887 = vmatprep.subr.bf16.mxu1 %v8886_v19 }
0x1691   : > { %v11859_v13 = vpop.f32.mrb[58].mxu0  ;;  %v8279_v44 = vpop.f32.mrb[74].mxu1  ;;  %8889 = vmatpush3.bf16.msra.mxu1 %v8886_v19 }
0x1692   : > { %v4445_v52 = vadd.f32 %v8279_v44, %v7221_v0  ;;  %v4203_v5 = vpop.f32.mrb[59].mxu0  ;;  %v4439_v14 = vpop.f32.mrb[75].mxu1  ;;  %v11896_v44 = vmul.f32 0.35355338, %v4199_v60 }
0x1693   : > { %v4440_v10 = vadd.f32 %v7221_v0, %v4439_v14  ;;  %v4204_v19 = vadd.f32 %v11848_v23, %v4203_v5 }
0x1695   : > { %v11861_v24 = vpop.f32.mrb[60].mxu0  ;;  %v8282_v4 = vpop.f32.mrb[76].mxu1  ;;  %v8890_v61 = vpack.c.bf16 %v4445_v52, %v4440_v10  ;;  %v11863_v27 = vpack.i.bf16 %v4445_v52, %v4440_v10  ;;  %v4209_v52 = vadd.f32 %v11859_v13, %v11848_v23  ;;  %v11900_v14 = vmul.f32 0.35355338, %v4204_v19 }
0x1696   : > { %v4455_v18 = vadd.f32 %v8282_v4, %v7221_v0  ;;  %v4213_v17 = vpop.f32.mrb[61].mxu0  ;;  %v4449_v30 = vpop.f32.mrb[77].mxu1  ;;  %v4219_v55 = vadd.f32 %v11861_v24, %v11848_v23 }
0x1697   : > { %v4450_v35 = vadd.f32 %v7221_v0, %v4449_v30  ;;  %8891 = vmatprep.subr.bf16.mxu1 %v8890_v61  ;;  %v4214_v10 = vadd.f32 %v11848_v23, %v4213_v17  ;;  %v11907_v4 = vmul.f32 0.35355338, %v4209_v52 }
0x1698   : > { %8893 = vmatpush3.bf16.msra.mxu1 %v8890_v61  ;;  %v11918_v13 = vmul.f32 0.35355338, %v4219_v55 }
0x1699   : > { %v8245_v31 = vpop.f32.mrb[62].mxu0  ;;  %v8285_v39 = vpop.f32.mrb[78].mxu1  ;;  %v8894_v51 = vpack.c.bf16 %v4455_v18, %v4450_v35  ;;  %v11865_v1 = vpack.i.bf16 %v4455_v18, %v4450_v35  ;;  %v11911_v5 = vmul.f32 0.35355338, %v4214_v10 }
0x169a   : > { %v4465_v58 = vadd.f32 %v8285_v39, %v7221_v0  ;;  %v4223_v28 = vpop.f32.mrb[63].mxu0  ;;  %v4459_v11 = vpop.f32.mrb[79].mxu1  ;;  %v4229_v18 = vadd.f32 %v8245_v31, %v11848_v23 }
0x169b   : > { %v4460_v50 = vadd.f32 %v7221_v0, %v4459_v11  ;;  %8895 = vmatprep.subr.bf16.mxu1 %v8894_v51  ;;  %v4224_v61 = vadd.f32 %v11848_v23, %v4223_v28 }
0x169c   : > { %8897 = vmatpush3.bf16.msra.mxu1 %v8894_v51  ;;  %v11927_v24 = vmul.f32 0.35355338, %v4229_v18 }
0x169d   : > { %v8256_v32 = vpop.f32.mrb[64].mxu0  ;;  %v8898_v42 = vpack.c.bf16 %v4465_v58, %v4460_v50  ;;  %v11867_v16 = vpack.i.bf16 %v4465_v58, %v4460_v50  ;;  %v11921_v17 = vmul.f32 0.35355338, %v4224_v61 }
0x169e   : > { %v4317_v2 = vadd.f32 %v8256_v32, %v7208_v33  ;;  %v4311_v8 = vpop.f32.mrb[65].mxu0 }
0x169f   : > { %v4312_v15 = vadd.f32 %v7208_v33, %v4311_v8  ;;  %8899 = vmatprep.subr.bf16.mxu1 %v8898_v42 }
0x16a0   : > { %8901 = vmatpush3.bf16.msra.mxu1 %v8898_v42 }
0x16a1   : > { %v8259_v26 = vpop.f32.mrb[66].mxu0  ;;  %v8862_v41 = vpack.c.bf16 %v4317_v2, %v4312_v15  ;;  %v11869_v53 = vpack.i.bf16 %v4317_v2, %v4312_v15 }
0x16a2   : > { %v4327_v49 = vadd.f32 %v8259_v26, %v7208_v33  ;;  %v4321_v47 = vpop.f32.mrb[67].mxu0 }
0x16a3   : > { %v4322_v9 = vadd.f32 %v7208_v33, %v4321_v47  ;;  %8864 = vmatprep.subr.msk.bf16.mxu0 %vm10919_vm3, %v8862_v41 }
0x16a4   : > { %8867 = vmatpush3.bf16.xpose.msk.msra.mxu0 %vm10919_vm3, %v8862_v41 }
0x16a5   : > { %v8262_v12 = vpop.f32.mrb[68].mxu0  ;;  %v8868_v57 = vpack.c.bf16 %v4327_v49, %v4322_v9  ;;  %v11875_v38 = vpack.i.bf16 %v4327_v49, %v4322_v9 }
0x16a6   : > { %v4337_v29 = vadd.f32 %v8262_v12, %v7208_v33  ;;  %v4331_v34 = vpop.f32.mrb[69].mxu0 }
0x16a7   : > { %v4332_v37 = vadd.f32 %v7208_v33, %v4331_v34  ;;  %8870 = vmatprep.subr.msk.bf16.mxu0 %vm10919_vm3, %v8868_v57 }
0x16a9   : > { %v8265_v45 = vpop.f32.mrb[70].mxu0  ;;  %v8874_v22 = vpack.c.bf16 %v4337_v29, %v4332_v37  ;;  %v11879_v0 = vpack.i.bf16 %v4337_v29, %v4332_v37 }
0x16aa   : > { %v4347_v63 = vadd.f32 %v8265_v45, %v7208_v33  ;;  %v4341_v54 = vpop.f32.mrb[71].mxu0 }
0x16ab   : > { %v4342_v7 = vadd.f32 %v7208_v33, %v4341_v54 }
0x16ac   : > { %8873 = vmatpush3.bf16.xpose.msk.msra.mxu0 %vm10919_vm3, %v8868_v57 }
0x16ad   : > { %8876 = vmatprep.subr.msk.bf16.mxu0 %vm10919_vm3, %v8874_v22  ;;  %v8880_v48 = vpack.c.bf16 %v4347_v63, %v4342_v7  ;;  %v11885_v56 = vpack.i.bf16 %v4347_v63, %v4342_v7 }
0x16b4   : > { %8879 = vmatpush3.bf16.xpose.msk.msra.mxu0 %vm10919_vm3, %v8874_v22 }
0x16b5   : > { %8882 = vmatprep.subr.msk.bf16.mxu0 %vm10919_vm3, %v8880_v48 }
0x16bc   : > { %8885 = vmatpush3.bf16.xpose.msk.msra.mxu0 %vm10919_vm3, %v8880_v48 }
0x16c3   : > { %8303 = vmatmul.mubr.msk.f32.vlgmr.msra.gmra.mrb[72].mxu0 %vm1663_vm2, %v11896_v44 }
0x16c4   : > { %8305 = vmatprep.mubr.msk.f32.mxu0 %vm1663_vm2, %v11900_v14 }
0x16c7   : > { %8306 = vmatmul.mubr.msk.f32.gmra.mrb[74].mxu0 %vm1663_vm2, %v11907_v4 }
0x16c8   : > { %8308 = vmatprep.mubr.msk.f32.mxu0 %vm1663_vm2, %v11911_v5 }
0x16cb   : > { %8309 = vmatmul.mubr.msk.f32.gmra.mrb[76].mxu0 %vm1663_vm2, %v11918_v13 }
0x16cc   : > { %8311 = vmatprep.mubr.msk.f32.mxu0 %vm1663_vm2, %v11921_v17 }
0x16cf   : > { %8312 = vmatmul.mubr.msk.f32.gmra.mrb[78].mxu0 %vm1663_vm2, %v11927_v24 }
0x1796   : > { %v8304_v30 = vpop.f32.mrb[72].mxu0 }
0x1797   : > { %v4590_v35 = vpop.f32.mrb[73].mxu0  ;;  %v4632_v39 = vsel %vm1817_vm4, %v8304_v30, -inf }
0x1798   : > { %4633 = vmax.xlane.f32.xlu0 %v4632_v39  ;;  %v4629_v23 = vsel %vm1817_vm4, %v4590_v35, -inf }
0x1799   : > { %4630 = vmax.xlane.f32.xlu1 %v4629_v23 }
0x179a   : > { %v8307_v31 = vpop.f32.mrb[74].mxu0 }
0x179b   : > { %v4600_v51 = vpop.f32.mrb[75].mxu0  ;;  %v4638_v58 = vsel %vm1817_vm4, %v8307_v31, -inf }
0x179c   : > { %4639 = vmax.xlane.f32.xlu0 %v4638_v58  ;;  %v4635_v28 = vsel %vm1817_vm4, %v4600_v51, -inf }
0x179d   : > { %4636 = vmax.xlane.f32.xlu1 %v4635_v28 }
0x179e   : > { %v8310_v11 = vpop.f32.mrb[76].mxu0 }
0x179f   : > { %v4610_v50 = vpop.f32.mrb[77].mxu0  ;;  %v4644_v33 = vsel %vm1817_vm4, %v8310_v11, -inf }
0x17a0   : > { %4645 = vmax.xlane.f32.xlu0 %v4644_v33  ;;  %v4641_v32 = vsel %vm1817_vm4, %v4610_v50, -inf }
0x17a1   : > { %4642 = vmax.xlane.f32.xlu1 %v4641_v32 }
0x17a2   : > { %v8313_v42 = vpop.f32.mrb[78].mxu0 }
0x17a3   : > { %v4620_v2 = vpop.f32.mrb[79].mxu0  ;;  %v4650_v8 = vsel %vm1817_vm4, %v8313_v42, -inf }
0x17a4   : > { %4651 = vmax.xlane.f32.xlu0 %v4650_v8  ;;  %v4647_v15 = vsel %vm1817_vm4, %v4620_v2, -inf }
0x17a5   : > { %4648 = vmax.xlane.f32.xlu1 %v4647_v15 }
0x17b6   : > { %9350 = vrot.lane.b32.xlu1 %v11869_v53, %s12794_s4 }
0x1825   : > { %v4634_v26 = vpop.xlane.xlu0 %4633 }
0x1826   : > { %v4654_v41 = vsub.f32 %v8304_v30, %v4634_v26  ;;  %v4631_v49 = vpop.xlane.xlu1 %4630 }
0x1827   : > { %v4653_v47 = vsub.f32 %v4590_v35, %v4631_v49 }
0x1828   : > { %v4663_v9 = vmul.f32 1.442695, %v4654_v41 }
0x1829   : > { %v4661_v12 = vmul.f32 1.442695, %v4653_v47  ;;  %v4640_v57 = vpop.xlane.xlu0 %4639 }
0x182a   : > { %9677 = vpow2.f32 %v4663_v9  ;;  %v4656_v29 = vsub.f32 %v8307_v31, %v4640_v57  ;;  %v4637_v34 = vpop.xlane.xlu1 %4636 }
0x182b   : > { %9679 = vpow2.f32 %v4661_v12  ;;  %v4655_v37 = vsub.f32 %v4600_v51, %v4637_v34 }
0x182c   : > { %v4667_v45 = vmul.f32 1.442695, %v4656_v29 }
0x182d   : > { %v4665_v22 = vmul.f32 1.442695, %v4655_v37  ;;  %v4646_v63 = vpop.xlane.xlu0 %4645 }
0x182e   : > { %9681 = vpow2.f32 %v4667_v45  ;;  %v4658_v54 = vsub.f32 %v8310_v11, %v4646_v63  ;;  %v4643_v7 = vpop.xlane.xlu1 %4642 }
0x182f   : > { %9683 = vpow2.f32 %v4665_v22  ;;  %v4657_v48 = vsub.f32 %v4610_v50, %v4643_v7 }
0x1830   : > { %v4671_v60 = vmul.f32 1.442695, %v4658_v54 }
0x1831   : > { %v4669_v19 = vmul.f32 1.442695, %v4657_v48  ;;  %v4652_v52 = vpop.xlane.xlu0 %4651 }
0x1832   : > { %9685 = vpow2.f32 %v4671_v60  ;;  %v4660_v10 = vsub.f32 %v8313_v42, %v4652_v52  ;;  %v4649_v55 = vpop.xlane.xlu1 %4648 }
0x1833   : > { %9687 = vpow2.f32 %v4669_v19  ;;  %v4659_v61 = vsub.f32 %v4620_v2, %v4649_v55 }
0x1834   : > { %v9678_v18 = vpop.eup %9677  ;;  %v4675_v30 = vmul.f32 1.442695, %v4660_v10 }
0x1835   : > { %v9680_v35 = vpop.eup %9679  ;;  %v4673_v39 = vmul.f32 1.442695, %v4659_v61  ;;  %v4680_v23 = vsel %vm1817_vm4, %v9678_v18, 0.0 }
0x1836   : > { %9689 = vpow2.f32 %v4675_v30  ;;  %4681 = vadd.xlane.f32.xlu0 %v4680_v23  ;;  %v9351_v31 = vpop.permute.xlu1 %9350  ;;  %v4677_v51 = vsel %vm1817_vm4, %v9680_v35, 0.0 }
0x1837   : > { %v9353_v58 = vunpack.i.h.bf16 %v9351_v31  ;;  %v9352_v28 = vunpack.i.l.bf16 %v9351_v31  ;;  %4678 = vadd.xlane.f32.xlu1 %v4677_v51  ;;  %9691 = vpow2.f32 %v4673_v39 }
0x1838   : > { %v9682_v11 = vpop.eup %9681 }
0x1839   : > { %v9684_v50 = vpop.eup %9683  ;;  %v8902_v33 = vpack.c.bf16 %v9353_v58, %v9352_v28  ;;  %v4686_v32 = vsel %vm1817_vm4, %v9682_v11, 0.0 }
0x183a   : > { %4687 = vadd.xlane.f32.xlu0 %v4686_v32  ;;  %v4683_v42 = vsel %vm1817_vm4, %v9684_v50, 0.0 }
0x183b   : > { %4684 = vadd.xlane.f32.xlu1 %v4683_v42  ;;  %8904 = vmatprep.subr.msk.bf16.mxu1 %vm10919_vm3, %v8902_v33 }
0x183c   : > { %v9686_v2 = vpop.eup %9685 }
0x183d   : > { %v9688_v8 = vpop.eup %9687  ;;  %v4692_v15 = vsel %vm1817_vm4, %v9686_v2, 0.0 }
0x183e   : > { %4693 = vadd.xlane.f32.xlu0 %v4692_v15  ;;  %v4689_v26 = vsel %vm1817_vm4, %v9688_v8, 0.0 }
0x183f   : > { %4690 = vadd.xlane.f32.xlu1 %v4689_v26 }
0x1840   : > { %v11949_v41 = vpop.eup %9689 }
0x1841   : > { %v4698_v49 = vsel %vm1817_vm4, %v11949_v41, 0.0  ;;  %v11953_v47 = vpop.eup %9691 }
0x1842   : > { %4699 = vadd.xlane.f32.xlu0 %v4698_v49  ;;  %v4695_v9 = vsel %vm1817_vm4, %v11953_v47, 0.0 }
0x1846   : > { %4696 = vadd.xlane.f32.xlu0 %v4695_v9 }
0x1850   : > { %9360 = vrot.lane.b32.xlu1 %v11879_v0, %s12794_s4 }
0x1854   : > { %9365 = vrot.lane.b32.xlu1 %v11885_v56, %s12794_s4 }
0x1858   : > { %4846 = vrot.lane.b32.xlu1 %v11853_v3, %s12794_s4 }
0x185c   : > { %4848 = vrot.lane.b32.xlu1 %v11896_v44, %s12794_s4  ;;  %9355 = vrot.lane.b32.xlu0 %v11875_v38, %s12794_s4 }
0x1860   : > { %4852 = vrot.lane.b32.xlu1 %v11907_v4, %s12794_s4  ;;  %4850 = vrot.lane.b32.xlu0 %v11900_v14, %s12794_s4 }
0x1864   : > { %4856 = vrot.lane.b32.xlu1 %v11918_v13, %s12794_s4  ;;  %4854 = vrot.lane.b32.xlu0 %v11911_v5, %s12794_s4 }
0x1868   : > { %4860 = vrot.lane.b32.xlu1 %v11927_v24, %s12794_s4  ;;  %4858 = vrot.lane.b32.xlu0 %v11921_v17, %s12794_s4 }
0x18c3   : > { %v4682_v12 = vpop.xlane.xlu0 %4681 }
0x18c4   : > { %9693 = vrcp.f32 %v4682_v12  ;;  %v4679_v57 = vpop.xlane.xlu1 %4678 }
0x18c5   : > { %9695 = vrcp.f32 %v4679_v57 }
0x18c7   : > { %v4688_v29 = vpop.xlane.xlu0 %4687 }
0x18c8   : > { %9697 = vrcp.f32 %v4688_v29  ;;  %v4685_v34 = vpop.xlane.xlu1 %4684 }
0x18c9   : > { %9699 = vrcp.f32 %v4685_v34 }
0x18cb   : > { %v4694_v37 = vpop.xlane.xlu0 %4693 }
0x18cc   : > { %9701 = vrcp.f32 %v4694_v37  ;;  %v4691_v45 = vpop.xlane.xlu1 %4690 }
0x18cd   : > { %9703 = vrcp.f32 %v4691_v45 }
0x18ce   : > { %v9694_v22 = vpop.eup %9693 }
0x18cf   : > { %v9696_v63 = vpop.eup %9695  ;;  %v4700_v54 = vpop.xlane.xlu0 %4699  ;;  %v4704_v48 = vmul.f32 %v9694_v22, %v9678_v18 }
0x18d0   : > { %v4702_v7 = vmul.f32 %v9696_v63, %v9680_v35  ;;  %9705 = vrcp.f32 %v4700_v54  ;;  %v9361_v10 = vpop.permute.xlu1 %9360 }
0x18d1   : > { %v9363_v18 = vunpack.i.h.bf16 %v9361_v10  ;;  %v9362_v23 = vunpack.i.l.bf16 %v9361_v10 }
0x18d2   : > { %v9698_v60 = vpop.eup %9697  ;;  %8330 = vmatprep.mubr.msk.f32.mxu1 %vm1817_vm4, %v4702_v7 }
0x18d3   : > { %v9700_v19 = vpop.eup %9699  ;;  %v4697_v52 = vpop.xlane.xlu0 %4696  ;;  %8331 = vmatmul.mubr.msk.f32.vlgmr.msra.gmra.mrb[80].mxu1 %vm1817_vm4, %v4704_v48  ;;  %v4708_v61 = vmul.f32 %v9698_v60, %v9682_v11 }
0x18d4   : > { %9707 = vrcp.f32 %v4697_v52  ;;  %8907 = vmatpush3.bf16.xpose.msk.msra.mxu1 %vm10919_vm3, %v8902_v33  ;;  %v4706_v55 = vmul.f32 %v9700_v19, %v9684_v50  ;;  %v8914_v50 = vpack.c.bf16 %v9363_v18, %v9362_v23  ;;  %v9366_v11 = vpop.permute.xlu1 %9365 }
0x18d5   : > { %v9367_v15 = vunpack.i.l.bf16 %v9366_v11 }
0x18d6   : > { %v9702_v30 = vpop.eup %9701  ;;  %8333 = vmatprep.mubr.msk.f32.mxu1 %vm1817_vm4, %v4706_v55 }
0x18d7   : > { %v9704_v35 = vpop.eup %9703  ;;  %v9356_v39 = vpop.permute.xlu0 %9355  ;;  %8334 = vmatmul.mubr.msk.f32.gmra.mrb[82].mxu1 %vm1817_vm4, %v4708_v61  ;;  %v4712_v28 = vmul.f32 %v9702_v30, %v9686_v2 }
0x18d8   : > { %v9358_v31 = vunpack.i.h.bf16 %v9356_v39  ;;  %v9357_v51 = vunpack.i.l.bf16 %v9356_v39  ;;  %v4710_v58 = vmul.f32 %v9704_v35, %v9688_v8  ;;  %v9368_v8 = vunpack.i.h.bf16 %v9366_v11  ;;  %v4847_v49 = vpop.permute.xlu1 %4846 }
0x18da   : > { %v8908_v32 = vpack.c.bf16 %v9358_v31, %v9357_v51  ;;  %8336 = vmatprep.mubr.msk.f32.mxu1 %vm1817_vm4, %v4710_v58  ;;  %v9706_v33 = vpop.eup %9705  ;;  %v8920_v9 = vpack.c.bf16 %v9368_v8, %v9367_v15 }
0x18db   : > { %8337 = vmatmul.mubr.msk.f32.gmra.mrb[84].mxu1 %vm1817_vm4, %v4712_v28  ;;  %v4716_v26 = vmul.f32 %v9706_v33, %v11949_v41 }
0x18dc   : > { %8910 = vmatprep.subr.msk.bf16.mxu1 %vm10919_vm3, %v8908_v32  ;;  %v4849_v12 = vpop.permute.xlu1 %4848 }
0x18dd   : > { %8913 = vmatpush3.bf16.xpose.msk.msra.mxu1 %vm10919_vm3, %v8908_v32 }
0x18de   : > { %v9708_v42 = vpop.eup %9707  ;;  %8916 = vmatprep.subr.msk.bf16.mxu1 %vm10919_vm3, %v8914_v50 }
0x18df   : > { %v4714_v2 = vmul.f32 %v9708_v42, %v11953_v47  ;;  %v4851_v47 = vpop.permute.xlu0 %4850 }
0x18e0   : > { %v4853_v41 = vpop.permute.xlu1 %4852 }
0x18e1   : > { %8339 = vmatprep.mubr.msk.f32.mxu1 %vm1817_vm4, %v4714_v2 }
0x18e2   : > { %8340 = vmatmul.mubr.msk.f32.gmra.mrb[86].mxu1 %vm1817_vm4, %v4716_v26 }
0x18e3   : > { %8358 = vmatprep.mubr.msk.f32.mxu1 %vm1663_vm2, %v4847_v49  ;;  %v4855_v57 = vpop.permute.xlu0 %4854 }
0x18e4   : > { %v4857_v29 = vpop.permute.xlu1 %4856 }
0x18e5   : > { %8919 = vmatpush3.bf16.xpose.msk.msra.mxu1 %vm10919_vm3, %v8914_v50 }
0x18e6   : > { %8922 = vmatprep.subr.msk.bf16.mxu1 %vm10919_vm3, %v8920_v9 }
0x18e7   : > { %v4859_v34 = vpop.permute.xlu0 %4858 }
0x18e8   : > { %v4861_v37 = vpop.permute.xlu1 %4860 }
0x18ed   : > { %8925 = vmatpush3.bf16.xpose.msk.msra.mxu1 %vm10919_vm3, %v8920_v9 }
0x18f4   : > { %8359 = vmatmul.mubr.msk.f32.vlgmr.msra.gmra.mrb[88].mxu1 %vm1663_vm2, %v4849_v12 }
0x18f5   : > { %8361 = vmatprep.mubr.msk.f32.mxu1 %vm1663_vm2, %v4851_v47 }
0x18f8   : > { %8362 = vmatmul.mubr.msk.f32.gmra.mrb[90].mxu1 %vm1663_vm2, %v4853_v41 }
0x18f9   : > { %8364 = vmatprep.mubr.msk.f32.mxu1 %vm1663_vm2, %v4855_v57 }
0x18fc   : > { %8365 = vmatmul.mubr.msk.f32.gmra.mrb[92].mxu1 %vm1663_vm2, %v4857_v29 }
0x18fd   : > { %8367 = vmatprep.mubr.msk.f32.mxu1 %vm1663_vm2, %v4859_v34 }
0x1900   : > { %8368 = vmatmul.mubr.msk.f32.gmra.mrb[94].mxu1 %vm1663_vm2, %v4861_v37 }
0x19a6   : > { %v12011_v45 = vpop.f32.mrb[80].mxu1 }
0x19a7   : > { %v12013_v22 = vpop.f32.mrb[81].mxu1 }
0x19aa   : > { %v12015_v63 = vpop.f32.mrb[82].mxu1 }
0x19ab   : > { %v12017_v54 = vpop.f32.mrb[83].mxu1 }
0x19ae   : > { %v12019_v7 = vpop.f32.mrb[84].mxu1 }
0x19af   : > { %v12021_v48 = vpop.f32.mrb[85].mxu1 }
0x19b5   : > { %v12023_v60 = vpop.f32.mrb[86].mxu1 }
0x19b6   : > { %v12025_v19 = vpop.f32.mrb[87].mxu1 }
0x19c7   : > { %v8360_v52 = vpop.f32.mrb[88].mxu1 }
0x19c8   : > { %v4976_v10 = vpop.f32.mrb[89].mxu1  ;;  %v5018_v55 = vsel %vm1817_vm4, %v8360_v52, -inf }
0x19c9   : > { %5019 = vmax.xlane.f32.xlu1 %v5018_v55  ;;  %v5015_v61 = vsel %vm1817_vm4, %v4976_v10, -inf }
0x19ca   : > { %5016 = vmax.xlane.f32.xlu0 %v5015_v61 }
0x19cb   : > { %v12029_v30 = vpop.f32.mrb[90].mxu1 }
0x19cc   : > { %v4986_v35 = vpop.f32.mrb[91].mxu1  ;;  %v5024_v18 = vsel %vm1817_vm4, %v12029_v30, -inf }
0x19cd   : > { %v5021_v31 = vsel %vm1817_vm4, %v4986_v35, -inf }
0x19ce   : > { %5025 = vmax.xlane.f32.xlu0 %v5024_v18 }
0x19cf   : > { %v8366_v39 = vpop.f32.mrb[92].mxu1 }
0x19d0   : > { %v12033_v23 = vpop.f32.mrb[93].mxu1  ;;  %v5030_v28 = vsel %vm1817_vm4, %v8366_v39, -inf }
0x19d1   : > { %v5027_v50 = vsel %vm1817_vm4, %v12033_v23, -inf }
0x19d2   : > { %5022 = vmax.xlane.f32.xlu0 %v5021_v31 }
0x19d3   : > { %v8369_v51 = vpop.f32.mrb[94].mxu1 }
0x19d4   : > { %v12036_v58 = vpop.f32.mrb[95].mxu1  ;;  %v5036_v32 = vsel %vm1817_vm4, %v8369_v51, -inf }
0x19d5   : > { %v5033_v11 = vsel %vm1817_vm4, %v12036_v58, -inf }
0x19d6   : > { %5031 = vmax.xlane.f32.xlu0 %v5030_v28 }
0x19da   : > { %9370 = vrot.lane.b32.xlu1 %v11855_v46, %s12794_s4  ;;  %5037 = vmax.xlane.f32.xlu0 %v5036_v32 }
0x19f0   : > { %9375 = vrot.lane.b32.xlu0 %v11863_v27, %s12794_s4 }
0x19fe   : > { %5028 = vmax.xlane.f32.xlu1 %v5027_v50 }
0x1a0f   : > { %9380 = vrot.lane.b32.xlu1 %v11865_v1, %s12794_s4 }
0x1a33   : > { %5034 = vmax.xlane.f32.xlu1 %v5033_v11 }
0x1a44   : > { %9385 = vrot.lane.b32.xlu1 %v11867_v16, %s12794_s4 }
0x1a56   : > { %v5020_v33 = vpop.xlane.xlu1 %5019 }
0x1a57   : > { %v5040_v42 = vsub.f32 %v8360_v52, %v5020_v33  ;;  %v5017_v2 = vpop.xlane.xlu0 %5016 }
0x1a58   : > { %v5039_v8 = vsub.f32 %v4976_v10, %v5017_v2 }
0x1a59   : > { %v5049_v15 = vmul.f32 1.442695, %v5040_v42 }
0x1a5a   : > { %v5047_v26 = vmul.f32 1.442695, %v5039_v8  ;;  %v9371_v49 = vpop.permute.xlu1 %9370 }
0x1a5b   : > { %9709 = vpow2.f32 %v5049_v15  ;;  %v9373_v9 = vunpack.i.h.bf16 %v9371_v49  ;;  %v9372_v12 = vunpack.i.l.bf16 %v9371_v49  ;;  %v5026_v47 = vpop.xlane.xlu0 %5025 }
0x1a5c   : > { %9711 = vpow2.f32 %v5047_v26  ;;  %v5042_v8 = vsub.f32 %v12029_v30, %v5026_v47 }
0x1a5d   : > { %v8926_v41 = vpack.c.bf16 %v9373_v9, %v9372_v12 }
0x1a5e   : > { %v5053_v26 = vmul.f32 1.442695, %v5042_v8 }
0x1a5f   : > { %8927 = vmatprep.subr.bf16.mxu0 %v8926_v41  ;;  %v5023_v57 = vpop.xlane.xlu0 %5022 }
0x1a60   : > { %v5041_v29 = vsub.f32 %v4986_v35, %v5023_v57  ;;  %8929 = vmatpush3.bf16.msra.mxu0 %v8926_v41 }
0x1a62   : > { %v5051_v34 = vmul.f32 1.442695, %v5041_v29 }
0x1a63   : > { %v5032_v37 = vpop.xlane.xlu0 %5031 }
0x1a64   : > { %9713 = vpow2.f32 %v5051_v34  ;;  %v5044_v55 = vsub.f32 %v8366_v39, %v5032_v37 }
0x1a65   : > { %v12052_v52 = vpop.eup %9709 }
0x1a66   : > { %v12054_v10 = vpop.eup %9711  ;;  %v5057_v61 = vmul.f32 1.442695, %v5044_v55  ;;  %v5066_v18 = vsel %vm1817_vm4, %v12052_v52, 0.0 }
0x1a67   : > { %5067 = vadd.xlane.f32.xlu0 %v5066_v18  ;;  %v5038_v31 = vpop.xlane.xlu0 %5037  ;;  %v5063_v28 = vsel %vm1817_vm4, %v12054_v10, 0.0 }
0x1a68   : > { %9715 = vpow2.f32 %v5057_v61  ;;  %5064 = vadd.xlane.f32.xlu1 %v5063_v28  ;;  %v5046_v15 = vsub.f32 %v8369_v51, %v5038_v31 }
0x1a69   : > { %9717 = vpow2.f32 %v5053_v26 }
0x1a6a   : > { %v5061_v12 = vmul.f32 1.442695, %v5046_v15 }
0x1a6b   : > { %v9376_v35 = vpop.permute.xlu0 %9375 }
0x1a6c   : > { %v9378_v32 = vunpack.i.h.bf16 %v9376_v35  ;;  %v9377_v50 = vunpack.i.l.bf16 %v9376_v35 }
0x1a6e   : > { %v12060_v11 = vpop.eup %9713  ;;  %v8930_v39 = vpack.c.bf16 %v9378_v32, %v9377_v50 }
0x1a6f   : > { %v5069_v33 = vsel %vm1817_vm4, %v12060_v11, 0.0 }
0x1a70   : > { %5070 = vadd.xlane.f32.xlu0 %v5069_v33  ;;  %8931 = vmatprep.subr.bf16.mxu0 %v8930_v39 }
0x1a71   : > { %8933 = vmatpush3.bf16.msra.mxu0 %v8930_v39 }
0x1a72   : > { %v12064_v42 = vpop.eup %9715 }
0x1a73   : > { %v5078_v2 = vsel %vm1817_vm4, %v12064_v42, 0.0  ;;  %v9718_v55 = vpop.eup %9717 }
0x1a74   : > { %5079 = vadd.xlane.f32.xlu0 %v5078_v2 }
0x1a79   : > { %9390 = vrot.lane.b32.xlu1 %v11869_v53, %s12795_s8 }
0x1a8b   : > { %v5029_v49 = vpop.xlane.xlu1 %5028 }
0x1a8c   : > { %v5043_v9 = vsub.f32 %v12033_v23, %v5029_v49  ;;  %v5072_v23 = vsel %vm1817_vm4, %v9718_v55, 0.0 }
0x1a8e   : > { %v5055_v41 = vmul.f32 1.442695, %v5043_v9 }
0x1a8f   : > { %v9381_v57 = vpop.permute.xlu1 %9380 }
0x1a90   : > { %9719 = vpow2.f32 %v5055_v41  ;;  %v9383_v29 = vunpack.i.h.bf16 %v9381_v57  ;;  %v9382_v34 = vunpack.i.l.bf16 %v9381_v57 }
0x1a91   : > { %9721 = vpow2.f32 %v5061_v12 }
0x1a92   : > { %v8934_v37 = vpack.c.bf16 %v9383_v29, %v9382_v34 }
0x1a94   : > { %8935 = vmatprep.subr.bf16.mxu0 %v8934_v37 }
0x1a95   : > { %8937 = vmatpush3.bf16.msra.mxu0 %v8934_v37 }
0x1a9a   : > { %v12072_v61 = vpop.eup %9719 }
0x1a9b   : > { %v5075_v30 = vsel %vm1817_vm4, %v12072_v61, 0.0  ;;  %v12076_v51 = vpop.eup %9721 }
0x1a9c   : > { %5076 = vadd.xlane.f32.xlu0 %v5075_v30  ;;  %v5084_v47 = vsel %vm1817_vm4, %v12076_v51, 0.0 }
0x1a9d   : > { %5073 = vadd.xlane.f32.xlu1 %v5072_v23 }
0x1aa0   : > { %5085 = vadd.xlane.f32.xlu0 %v5084_v47 }
0x1aae   : > { %9400 = vrot.lane.b32.xlu1 %v11879_v0, %s12795_s8 }
0x1ab2   : > { %9405 = vrot.lane.b32.xlu1 %v11885_v56, %s12795_s8 }
0x1ab6   : > { %5264 = vrot.lane.b32.xlu1 %v11853_v3, %s12795_s8 }
0x1aba   : > { %5266 = vrot.lane.b32.xlu1 %v11896_v44, %s12795_s8 }
0x1abe   : > { %5270 = vrot.lane.b32.xlu1 %v11907_v4, %s12795_s8 }
0x1ac0   : > { %v5035_v18 = vpop.xlane.xlu1 %5034 }
0x1ac1   : > { %v5045_v31 = vsub.f32 %v12036_v58, %v5035_v18 }
0x1ac2   : > { %5274 = vrot.lane.b32.xlu1 %v11918_v13, %s12795_s8 }
0x1ac3   : > { %v5059_v28 = vmul.f32 1.442695, %v5045_v31 }
0x1ac4   : > { %v9386_v35 = vpop.permute.xlu1 %9385 }
0x1ac5   : > { %9723 = vpow2.f32 %v5059_v28  ;;  %v9388_v32 = vunpack.i.h.bf16 %v9386_v35  ;;  %v9387_v50 = vunpack.i.l.bf16 %v9386_v35 }
0x1ac6   : > { %5278 = vrot.lane.b32.xlu1 %v11927_v24, %s12795_s8 }
0x1ac7   : > { %v8938_v39 = vpack.c.bf16 %v9388_v32, %v9387_v50 }
0x1ac9   : > { %8939 = vmatprep.subr.bf16.mxu0 %v8938_v39 }
0x1aca   : > { %8941 = vmatpush3.bf16.msra.mxu0 %v8938_v39 }
0x1acf   : > { %v9724_v33 = vpop.eup %9723 }
0x1ad0   : > { %v5081_v2 = vsel %vm1817_vm4, %v9724_v33, 0.0 }
0x1ad1   : > { %5082 = vadd.xlane.f32.xlu0 %v5081_v2 }
0x1ae7   : > { %9395 = vrot.lane.b32.xlu0 %v11875_v38, %s12795_s8 }
0x1aeb   : > { %5268 = vrot.lane.b32.xlu0 %v11900_v14, %s12795_s8 }
0x1aef   : > { %5272 = vrot.lane.b32.xlu0 %v11911_v5, %s12795_s8 }
0x1af3   : > { %5276 = vrot.lane.b32.xlu0 %v11921_v17, %s12795_s8 }
0x1af4   : > { %v5068_v58 = vpop.xlane.xlu0 %5067 }
0x1af5   : > { %9725 = vrcp.f32 %v5068_v58  ;;  %v5065_v8 = vpop.xlane.xlu1 %5064 }
0x1af6   : > { %9727 = vrcp.f32 %v5065_v8 }
0x1af9   : > { %v9391_v15 = vpop.permute.xlu1 %9390 }
0x1afa   : > { %v9393_v26 = vunpack.i.h.bf16 %v9391_v15  ;;  %v9392_v49 = vunpack.i.l.bf16 %v9391_v15 }
0x1afc   : > { %v8942_v9 = vpack.c.bf16 %v9393_v26, %v9392_v49 }
0x1afd   : > { %v5071_v12 = vpop.xlane.xlu0 %5070 }
0x1afe   : > { %9729 = vrcp.f32 %v5071_v12  ;;  %8944 = vmatprep.subr.msk.bf16.mxu0 %vm10919_vm3, %v8942_v9 }
0x1aff   : > { %v9726_v41 = vpop.eup %9725 }
0x1b00   : > { %v9728_v57 = vpop.eup %9727  ;;  %v5090_v34 = vmul.f32 %v9726_v41, %v12052_v52 }
0x1b01   : > { %v5088_v29 = vmul.f32 %v9728_v57, %v12054_v10  ;;  %v5080_v23 = vpop.xlane.xlu0 %5079 }
0x1b03   : > { %8386 = vmatprep.mubr.msk.f32.mxu0 %vm1817_vm4, %v5088_v29 }
0x1b04   : > { %8387 = vmatmul.mubr.msk.f32.vlgmr.msra.gmra.mrb[80].mxu0 %vm1817_vm4, %v5090_v34 }
0x1b05   : > { %8947 = vmatpush3.bf16.xpose.msk.msra.mxu0 %vm10919_vm3, %v8942_v9 }
0x1b08   : > { %v9730_v37 = vpop.eup %9729 }
0x1b09   : > { %v5092_v30 = vmul.f32 %v9730_v37, %v12060_v11 }
0x1b0b   : > { %8389 = vmatprep.mubr.msk.f32.mxu0 %vm1817_vm4, %v5092_v30 }
0x1b29   : > { %v5077_v47 = vpop.xlane.xlu0 %5076 }
0x1b2a   : > { %9731 = vrcp.f32 %v5077_v47  ;;  %v5074_v18 = vpop.xlane.xlu1 %5073 }
0x1b2b   : > { %9733 = vrcp.f32 %v5074_v18 }
0x1b2c   : > { %9735 = vrcp.f32 %v5080_v23 }
0x1b2d   : > { %v5086_v32 = vpop.xlane.xlu0 %5085 }
0x1b2e   : > { %9737 = vrcp.f32 %v5086_v32  ;;  %v9401_v39 = vpop.permute.xlu1 %9400 }
0x1b2f   : > { %v9403_v58 = vunpack.i.h.bf16 %v9401_v39  ;;  %v9402_v8 = vunpack.i.l.bf16 %v9401_v39 }
0x1b32   : > { %v9406_v49 = vpop.permute.xlu1 %9405 }
0x1b33   : > { %v9408_v41 = vunpack.i.h.bf16 %v9406_v49  ;;  %v9407_v57 = vunpack.i.l.bf16 %v9406_v49 }
0x1b34   : > { %v9732_v10 = vpop.eup %9731 }
0x1b35   : > { %v9734_v52 = vpop.eup %9733  ;;  %v5096_v35 = vmul.f32 %v9732_v10, %v12072_v61  ;;  %v8954_v61 = vpack.c.bf16 %v9403_v58, %v9402_v8  ;;  %v8960_v37 = vpack.c.bf16 %v9408_v41, %v9407_v57 }
0x1b36   : > { %v5094_v31 = vmul.f32 %v9734_v52, %v9718_v55  ;;  %v9736_v28 = vpop.eup %9735  ;;  %v5265_v34 = vpop.permute.xlu1 %5264 }
0x1b37   : > { %v5098_v11 = vmul.f32 %v9736_v28, %v12064_v42 }
0x1b38   : > { %8390 = vmatmul.mubr.msk.f32.gmra.mrb[82].mxu0 %vm1817_vm4, %v5094_v31  ;;  %v9738_v9 = vpop.eup %9737 }
0x1b39   : > { %8392 = vmatprep.mubr.msk.f32.mxu0 %vm1817_vm4, %v5096_v35  ;;  %v5102_v29 = vmul.f32 %v9738_v9, %v12076_v51 }
0x1b3a   : > { %v5267_v30 = vpop.permute.xlu1 %5266 }
0x1b3c   : > { %8393 = vmatmul.mubr.msk.f32.gmra.mrb[84].mxu0 %vm1817_vm4, %v5098_v11 }
0x1b3e   : > { %v5271_v51 = vpop.permute.xlu1 %5270 }
0x1b42   : > { %v5275_v47 = vpop.permute.xlu1 %5274 }
0x1b46   : > { %v5279_v10 = vpop.permute.xlu1 %5278 }
0x1b5e   : > { %v5083_v50 = vpop.xlane.xlu0 %5082 }
0x1b5f   : > { %9739 = vrcp.f32 %v5083_v50 }
0x1b62   : > { %v9396_v2 = vpop.permute.xlu0 %9395 }
0x1b63   : > { %v9398_v55 = vunpack.i.h.bf16 %v9396_v2  ;;  %v9397_v15 = vunpack.i.l.bf16 %v9396_v2 }
0x1b65   : > { %v8948_v26 = vpack.c.bf16 %v9398_v55, %v9397_v15 }
0x1b67   : > { %8950 = vmatprep.subr.msk.bf16.mxu0 %vm10919_vm3, %v8948_v26 }
0x1b68   : > { %8953 = vmatpush3.bf16.xpose.msk.msra.mxu0 %vm10919_vm3, %v8948_v26 }
0x1b69   : > { %v9740_v42 = vpop.eup %9739  ;;  %8956 = vmatprep.subr.msk.bf16.mxu0 %vm10919_vm3, %v8954_v61 }
0x1b6a   : > { %v5100_v12 = vmul.f32 %v9740_v42, %v9724_v33  ;;  %v5269_v33 = vpop.permute.xlu0 %5268 }
0x1b6c   : > { %8395 = vmatprep.mubr.msk.f32.mxu0 %vm1817_vm4, %v5100_v12 }
0x1b6d   : > { %8396 = vmatmul.mubr.msk.f32.gmra.mrb[86].mxu0 %vm1817_vm4, %v5102_v29 }
0x1b6e   : > { %8414 = vmatprep.mubr.msk.f32.mxu0 %vm1663_vm2, %v5265_v34  ;;  %v5273_v23 = vpop.permute.xlu0 %5272 }
0x1b70   : > { %8959 = vmatpush3.bf16.xpose.msk.msra.mxu0 %vm10919_vm3, %v8954_v61 }
0x1b71   : > { %8962 = vmatprep.subr.msk.bf16.mxu0 %vm10919_vm3, %v8960_v37 }
0x1b72   : > { %v5277_v18 = vpop.permute.xlu0 %5276 }
0x1b78   : > { %8965 = vmatpush3.bf16.xpose.msk.msra.mxu0 %vm10919_vm3, %v8960_v37 }
0x1b7f   : > { %8415 = vmatmul.mubr.msk.f32.vlgmr.msra.gmra.mrb[88].mxu0 %vm1663_vm2, %v5267_v30 }
0x1b80   : > { %8417 = vmatprep.mubr.msk.f32.mxu0 %vm1663_vm2, %v5269_v33 }
0x1b83   : > { %8418 = vmatmul.mubr.msk.f32.gmra.mrb[90].mxu0 %vm1663_vm2, %v5271_v51 }
0x1b84   : > { %8420 = vmatprep.mubr.msk.f32.mxu0 %vm1663_vm2, %v5273_v23 }
0x1b87   : > { %8421 = vmatmul.mubr.msk.f32.gmra.mrb[92].mxu0 %vm1663_vm2, %v5275_v47 }
0x1b88   : > { %8423 = vmatprep.mubr.msk.f32.mxu0 %vm1663_vm2, %v5277_v18 }
0x1b8b   : > { %8424 = vmatmul.mubr.msk.f32.gmra.mrb[94].mxu0 %vm1663_vm2, %v5279_v10 }
0x1bd7   : > { %v12143_v52 = vpop.f32.mrb[80].mxu0 }
0x1bd8   : > { %v12145_v31 = vpop.f32.mrb[81].mxu0 }
0x1c0b   : > { %v12147_v28 = vpop.f32.mrb[82].mxu0 }
0x1c0c   : > { %v12149_v35 = vpop.f32.mrb[83].mxu0 }
0x1c0f   : > { %v12151_v11 = vpop.f32.mrb[84].mxu0 }
0x1c10   : > { %v12153_v32 = vpop.f32.mrb[85].mxu0 }
0x1c40   : > { %v12155_v50 = vpop.f32.mrb[86].mxu0 }
0x1c41   : > { %v12157_v39 = vpop.f32.mrb[87].mxu0 }
0x1c52   : > { %v8416_v2 = vpop.f32.mrb[88].mxu0 }
0x1c53   : > { %v5394_v58 = vpop.f32.mrb[89].mxu0  ;;  %v5436_v8 = vsel %vm1817_vm4, %v8416_v2, -inf }
0x1c54   : > { %5437 = vmax.xlane.f32.xlu1 %v5436_v8  ;;  %v5433_v55 = vsel %vm1817_vm4, %v5394_v58, -inf }
0x1c55   : > { %5434 = vmax.xlane.f32.xlu0 %v5433_v55 }
0x1c56   : > { %v12161_v15 = vpop.f32.mrb[90].mxu0 }
0x1c57   : > { %v5404_v26 = vpop.f32.mrb[91].mxu0  ;;  %v5442_v61 = vsel %vm1817_vm4, %v12161_v15, -inf }
0x1c58   : > { %v5439_v42 = vsel %vm1817_vm4, %v5404_v26, -inf }
0x1c59   : > { %5443 = vmax.xlane.f32.xlu0 %v5442_v61 }
0x1c5a   : > { %v8422_v49 = vpop.f32.mrb[92].mxu0 }
0x1c5b   : > { %v12165_v9 = vpop.f32.mrb[93].mxu0  ;;  %v5448_v57 = vsel %vm1817_vm4, %v8422_v49, -inf }
0x1c5c   : > { %v5445_v34 = vsel %vm1817_vm4, %v12165_v9, -inf }
0x1c5d   : > { %5440 = vmax.xlane.f32.xlu0 %v5439_v42 }
0x1c5e   : > { %v8425_v12 = vpop.f32.mrb[94].mxu0 }
0x1c5f   : > { %v12168_v41 = vpop.f32.mrb[95].mxu0  ;;  %v5454_v29 = vsel %vm1817_vm4, %v8425_v12, -inf }
0x1c60   : > { %v5451_v37 = vsel %vm1817_vm4, %v12168_v41, -inf }
0x1c61   : > { %5449 = vmax.xlane.f32.xlu0 %v5448_v57 }
0x1c65   : > { %9410 = vrot.lane.b32.xlu1 %v11855_v46, %s12795_s8  ;;  %5455 = vmax.xlane.f32.xlu0 %v5454_v29 }
0x1c7b   : > { %9415 = vrot.lane.b32.xlu0 %v11863_v27, %s12795_s8 }
0x1c89   : > { %5446 = vmax.xlane.f32.xlu1 %v5445_v34 }
0x1c9a   : > { %9420 = vrot.lane.b32.xlu1 %v11865_v1, %s12795_s8 }
0x1cbe   : > { %5452 = vmax.xlane.f32.xlu1 %v5451_v37 }
0x1ccf   : > { %9425 = vrot.lane.b32.xlu1 %v11867_v16, %s12795_s8  ;;  %s12801_s8 = sld [smem:[#allocation46_spill]] }
0x1ce1   : > { %v5438_v30 = vpop.xlane.xlu1 %5437 }
0x1ce2   : > { %v5458_v33 = vsub.f32 %v8416_v2, %v5438_v30  ;;  %v5435_v51 = vpop.xlane.xlu0 %5434 }
0x1ce3   : > { %v5457_v23 = vsub.f32 %v5394_v58, %v5435_v51 }
0x1ce4   : > { %v5467_v47 = vmul.f32 1.442695, %v5458_v33 }
0x1ce5   : > { %v5465_v18 = vmul.f32 1.442695, %v5457_v23  ;;  %v9411_v10 = vpop.permute.xlu1 %9410 }
0x1ce6   : > { %9741 = vpow2.f32 %v5467_v47  ;;  %v9413_v8 = vunpack.i.h.bf16 %v9411_v10  ;;  %v9412_v55 = vunpack.i.l.bf16 %v9411_v10  ;;  %v5444_v61 = vpop.xlane.xlu0 %5443 }
0x1ce7   : > { %9743 = vpow2.f32 %v5465_v18 }
0x1ce8   : > { %v8966_v42 = vpack.c.bf16 %v9413_v8, %v9412_v55 }
0x1cea   : > { %8967 = vmatprep.subr.bf16.mxu1 %v8966_v42  ;;  %v5441_v57 = vpop.xlane.xlu0 %5440 }
0x1ceb   : > { %v5459_v29 = vsub.f32 %v5404_v26, %v5441_v57  ;;  %8969 = vmatpush3.bf16.msra.mxu1 %v8966_v42  ;;  %v5460_v42 = vsub.f32 %v12161_v15, %v5444_v61 }
0x1ced   : > { %v5469_v34 = vmul.f32 1.442695, %v5459_v29  ;;  %v5471_v29 = vmul.f32 1.442695, %v5460_v42 }
0x1cee   : > { %v5450_v37 = vpop.xlane.xlu0 %5449 }
0x1cef   : > { %9745 = vpow2.f32 %v5469_v34  ;;  %v5462_v43 = vsub.f32 %v8422_v49, %v5450_v37 }
0x1cf0   : > { %v12184_v2 = vpop.eup %9741 }
0x1cf1   : > { %v12186_v58 = vpop.eup %9743  ;;  %v5475_v30 = vmul.f32 1.442695, %v5462_v43  ;;  %v5484_v33 = vsel %vm1817_vm4, %v12184_v2, 0.0 }
0x1cf2   : > { %5485 = vadd.xlane.f32.xlu0 %v5484_v33  ;;  %v5456_v51 = vpop.xlane.xlu0 %5455  ;;  %v5481_v23 = vsel %vm1817_vm4, %v12186_v58, 0.0 }
0x1cf3   : > { %9747 = vpow2.f32 %v5475_v30  ;;  %5482 = vadd.xlane.f32.xlu1 %v5481_v23  ;;  %v5464_v57 = vsub.f32 %v8425_v12, %v5456_v51 }
0x1cf4   : > { %9749 = vpow2.f32 %v5471_v29 }
0x1cf5   : > { %v5479_v30 = vmul.f32 1.442695, %v5464_v57 }
0x1cf6   : > { %v9416_v26 = vpop.permute.xlu0 %9415 }
0x1cf7   : > { %v9418_v47 = vunpack.i.h.bf16 %v9416_v26  ;;  %v9417_v18 = vunpack.i.l.bf16 %v9416_v26 }
0x1cf9   : > { %v12192_v10 = vpop.eup %9745  ;;  %v8970_v49 = vpack.c.bf16 %v9418_v47, %v9417_v18 }
0x1cfa   : > { %v5487_v8 = vsel %vm1817_vm4, %v12192_v10, 0.0 }
0x1cfb   : > { %5488 = vadd.xlane.f32.xlu0 %v5487_v8  ;;  %8971 = vmatprep.subr.bf16.mxu1 %v8970_v49 }
0x1cfc   : > { %8973 = vmatpush3.bf16.msra.mxu1 %v8970_v49 }
0x1cfd   : > { %v12196_v43 = vpop.eup %9747 }
0x1cfe   : > { %v5496_v55 = vsel %vm1817_vm4, %v12196_v43, 0.0  ;;  %v9750_v49 = vpop.eup %9749 }
0x1cff   : > { %5497 = vadd.xlane.f32.xlu0 %v5496_v55 }
0x1d04   : > { %9430 = vrot.lane.b32.xlu1 %v11869_v53, %s12796_s12 }
0x1d16   : > { %v5447_v34 = vpop.xlane.xlu1 %5446 }
0x1d17   : > { %v5461_v37 = vsub.f32 %v12165_v9, %v5447_v34  ;;  %v5490_v9 = vsel %vm1817_vm4, %v9750_v49, 0.0 }
0x1d19   : > { %v5473_v33 = vmul.f32 1.442695, %v5461_v37 }
0x1d1a   : > { %v9421_v23 = vpop.permute.xlu1 %9420 }
0x1d1b   : > { %9751 = vpow2.f32 %v5473_v33  ;;  %v9423_v26 = vunpack.i.h.bf16 %v9421_v23  ;;  %v9422_v47 = vunpack.i.l.bf16 %v9421_v23 }
0x1d1c   : > { %9753 = vpow2.f32 %v5479_v30 }
0x1d1d   : > { %v8974_v18 = vpack.c.bf16 %v9423_v26, %v9422_v47 }
0x1d1f   : > { %8975 = vmatprep.subr.bf16.mxu1 %v8974_v18 }
0x1d20   : > { %8977 = vmatpush3.bf16.msra.mxu1 %v8974_v18 }
0x1d25   : > { %v12204_v53 = vpop.eup %9751 }
0x1d26   : > { %v5493_v15 = vsel %vm1817_vm4, %v12204_v53, 0.0  ;;  %v12208_v12 = vpop.eup %9753 }
0x1d27   : > { %5494 = vadd.xlane.f32.xlu0 %v5493_v15  ;;  %v5502_v61 = vsel %vm1817_vm4, %v12208_v12, 0.0 }
0x1d28   : > { %5491 = vadd.xlane.f32.xlu1 %v5490_v9 }
0x1d2b   : > { %5503 = vadd.xlane.f32.xlu0 %v5502_v61 }
0x1d39   : > { %9440 = vrot.lane.b32.xlu1 %v11879_v0, %s12796_s12 }
0x1d3d   : > { %9445 = vrot.lane.b32.xlu1 %v11885_v56, %s12796_s12 }
0x1d41   : > { %5674 = vrot.lane.b32.xlu1 %v11853_v3, %s12796_s12 }
0x1d45   : > { %5676 = vrot.lane.b32.xlu1 %v11896_v44, %s12796_s12 }
0x1d49   : > { %5680 = vrot.lane.b32.xlu1 %v11907_v4, %s12796_s12 }
0x1d4b   : > { %v5453_v51 = vpop.xlane.xlu1 %5452 }
0x1d4c   : > { %v5463_v8 = vsub.f32 %v12168_v41, %v5453_v51 }
0x1d4d   : > { %5684 = vrot.lane.b32.xlu1 %v11918_v13, %s12796_s12 }
0x1d4e   : > { %v5477_v55 = vmul.f32 1.442695, %v5463_v8 }
0x1d4f   : > { %v9426_v0 = vpop.permute.xlu1 %9425 }
0x1d50   : > { %9755 = vpow2.f32 %v5477_v55  ;;  %v9428_v42 = vunpack.i.h.bf16 %v9426_v0  ;;  %v9427_v56 = vunpack.i.l.bf16 %v9426_v0 }
0x1d51   : > { %5688 = vrot.lane.b32.xlu1 %v11927_v24, %s12796_s12 }
0x1d52   : > { %v8978_v3 = vpack.c.bf16 %v9428_v42, %v9427_v56 }
0x1d54   : > { %8979 = vmatprep.subr.bf16.mxu1 %v8978_v3 }
0x1d55   : > { %8981 = vmatpush3.bf16.msra.mxu1 %v8978_v3 }
0x1d5a   : > { %v9756_v44 = vpop.eup %9755 }
0x1d5b   : > { %v5499_v4 = vsel %vm1817_vm4, %v9756_v44, 0.0 }
0x1d5c   : > { %5500 = vadd.xlane.f32.xlu0 %v5499_v4 }
0x1d72   : > { %9435 = vrot.lane.b32.xlu0 %v11875_v38, %s12796_s12 }
0x1d76   : > { %5678 = vrot.lane.b32.xlu0 %v11900_v14, %s12796_s12 }
0x1d7a   : > { %5682 = vrot.lane.b32.xlu0 %v11911_v5, %s12796_s12 }
0x1d7e   : > { %5686 = vrot.lane.b32.xlu0 %v11921_v17, %s12796_s12 }
0x1d7f   : > { %v5486_v13 = vpop.xlane.xlu0 %5485 }
0x1d80   : > { %9757 = vrcp.f32 %v5486_v13  ;;  %v5483_v24 = vpop.xlane.xlu1 %5482 }
0x1d81   : > { %9759 = vrcp.f32 %v5483_v24 }
0x1d84   : > { %v9431_v41 = vpop.permute.xlu1 %9430 }
0x1d85   : > { %v9433_v57 = vunpack.i.h.bf16 %v9431_v41  ;;  %v9432_v29 = vunpack.i.l.bf16 %v9431_v41 }
0x1d87   : > { %v8982_v34 = vpack.c.bf16 %v9433_v57, %v9432_v29 }
0x1d88   : > { %v5489_v37 = vpop.xlane.xlu0 %5488 }
0x1d89   : > { %9761 = vrcp.f32 %v5489_v37  ;;  %8984 = vmatprep.subr.msk.bf16.mxu1 %vm10919_vm3, %v8982_v34 }
0x1d8a   : > { %v9758_v38 = vpop.eup %9757 }
0x1d8b   : > { %v9760_v14 = vpop.eup %9759  ;;  %v5508_v30 = vmul.f32 %v9758_v38, %v12184_v2 }
0x1d8c   : > { %v5506_v5 = vmul.f32 %v9760_v14, %v12186_v58  ;;  %v5498_v23 = vpop.xlane.xlu0 %5497 }
0x1d8e   : > { %8442 = vmatprep.mubr.msk.f32.mxu1 %vm1817_vm4, %v5506_v5 }
0x1d8f   : > { %8443 = vmatmul.mubr.msk.f32.vlgmr.msra.gmra.mrb[96].mxu1 %vm1817_vm4, %v5508_v30 }
0x1d90   : > { %8987 = vmatpush3.bf16.xpose.msk.msra.mxu1 %vm10919_vm3, %v8982_v34 }
0x1d93   : > { %v9762_v17 = vpop.eup %9761 }
0x1d94   : > { %v5510_v33 = vmul.f32 %v9762_v17, %v12192_v10 }
0x1d96   : > { %8445 = vmatprep.mubr.msk.f32.mxu1 %vm1817_vm4, %v5510_v33 }
0x1db4   : > { %v5495_v26 = vpop.xlane.xlu0 %5494 }
0x1db5   : > { %9763 = vrcp.f32 %v5495_v26  ;;  %v5492_v47 = vpop.xlane.xlu1 %5491 }
0x1db6   : > { %9765 = vrcp.f32 %v5492_v47 }
0x1db7   : > { %9767 = vrcp.f32 %v5498_v23 }
0x1db8   : > { %v5504_v61 = vpop.xlane.xlu0 %5503 }
0x1db9   : > { %9769 = vrcp.f32 %v5504_v61  ;;  %v9441_v8 = vpop.permute.xlu1 %9440 }
0x1dba   : > { %v9443_v0 = vunpack.i.h.bf16 %v9441_v8  ;;  %v9442_v42 = vunpack.i.l.bf16 %v9441_v8 }
0x1dbd   : > { %v9446_v4 = vpop.permute.xlu1 %9445 }
0x1dbe   : > { %v9448_v41 = vunpack.i.h.bf16 %v9446_v4  ;;  %v9447_v57 = vunpack.i.l.bf16 %v9446_v4 }
0x1dbf   : > { %v9764_v58 = vpop.eup %9763 }
0x1dc0   : > { %v9766_v2 = vpop.eup %9765  ;;  %v5514_v9 = vmul.f32 %v9764_v58, %v12204_v53  ;;  %v8994_v53 = vpack.c.bf16 %v9443_v0, %v9442_v42  ;;  %v9000_v37 = vpack.c.bf16 %v9448_v41, %v9447_v57 }
0x1dc1   : > { %v5512_v18 = vmul.f32 %v9766_v2, %v9750_v49  ;;  %v9768_v15 = vpop.eup %9767  ;;  %v5675_v34 = vpop.permute.xlu1 %5674 }
0x1dc2   : > { %v5516_v10 = vmul.f32 %v9768_v15, %v12196_v43 }
0x1dc3   : > { %8446 = vmatmul.mubr.msk.f32.gmra.mrb[98].mxu1 %vm1817_vm4, %v5512_v18  ;;  %v9770_v13 = vpop.eup %9769 }
0x1dc4   : > { %8448 = vmatprep.mubr.msk.f32.mxu1 %vm1817_vm4, %v5514_v9  ;;  %v5520_v29 = vmul.f32 %v9770_v13, %v12208_v12 }
0x1dc5   : > { %v5677_v38 = vpop.permute.xlu1 %5676 }
0x1dc7   : > { %8449 = vmatmul.mubr.msk.f32.gmra.mrb[100].mxu1 %vm1817_vm4, %v5516_v10 }
0x1dc9   : > { %v5681_v12 = vpop.permute.xlu1 %5680 }
0x1dcd   : > { %v5685_v5 = vpop.permute.xlu1 %5684 }
0x1dd1   : > { %v5689_v17 = vpop.permute.xlu1 %5688 }
0x1de9   : > { %v5501_v51 = vpop.xlane.xlu0 %5500 }
0x1dea   : > { %9771 = vrcp.f32 %v5501_v51 }
0x1ded   : > { %v9436_v55 = vpop.permute.xlu0 %9435 }
0x1dee   : > { %v9438_v49 = vunpack.i.h.bf16 %v9436_v55  ;;  %v9437_v56 = vunpack.i.l.bf16 %v9436_v55 }
0x1df0   : > { %v8988_v3 = vpack.c.bf16 %v9438_v49, %v9437_v56 }
0x1df2   : > { %8990 = vmatprep.subr.msk.bf16.mxu1 %vm10919_vm3, %v8988_v3 }
0x1df3   : > { %8993 = vmatpush3.bf16.xpose.msk.msra.mxu1 %vm10919_vm3, %v8988_v3 }
0x1df4   : > { %v9772_v43 = vpop.eup %9771  ;;  %8996 = vmatprep.subr.msk.bf16.mxu1 %vm10919_vm3, %v8994_v53 }
0x1df5   : > { %v5518_v24 = vmul.f32 %v9772_v43, %v9756_v44  ;;  %v5679_v44 = vpop.permute.xlu0 %5678 }
0x1df7   : > { %8451 = vmatprep.mubr.msk.f32.mxu1 %vm1817_vm4, %v5518_v24 }
0x1df8   : > { %8452 = vmatmul.mubr.msk.f32.gmra.mrb[102].mxu1 %vm1817_vm4, %v5520_v29 }
0x1df9   : > { %8470 = vmatprep.mubr.msk.f32.mxu1 %vm1663_vm2, %v5675_v34  ;;  %v5683_v14 = vpop.permute.xlu0 %5682 }
0x1dfb   : > { %8999 = vmatpush3.bf16.xpose.msk.msra.mxu1 %vm10919_vm3, %v8994_v53 }
0x1dfc   : > { %9002 = vmatprep.subr.msk.bf16.mxu1 %vm10919_vm3, %v9000_v37 }
0x1dfd   : > { %v5687_v30 = vpop.permute.xlu0 %5686 }
0x1e03   : > { %9005 = vmatpush3.bf16.xpose.msk.msra.mxu1 %vm10919_vm3, %v9000_v37 }
0x1e0a   : > { %8471 = vmatmul.mubr.msk.f32.vlgmr.msra.gmra.mrb[104].mxu1 %vm1663_vm2, %v5677_v38 }
0x1e0b   : > { %8473 = vmatprep.mubr.msk.f32.mxu1 %vm1663_vm2, %v5679_v44 }
0x1e0e   : > { %8474 = vmatmul.mubr.msk.f32.gmra.mrb[106].mxu1 %vm1663_vm2, %v5681_v12 }
0x1e0f   : > { %8476 = vmatprep.mubr.msk.f32.mxu1 %vm1663_vm2, %v5683_v14 }
0x1e12   : > { %8477 = vmatmul.mubr.msk.f32.gmra.mrb[108].mxu1 %vm1663_vm2, %v5685_v5 }
0x1e13   : > { %8479 = vmatprep.mubr.msk.f32.mxu1 %vm1663_vm2, %v5687_v30 }
0x1e16   : > { %8480 = vmatmul.mubr.msk.f32.gmra.mrb[110].mxu1 %vm1663_vm2, %v5689_v17 }
0x1e62   : > { %v12275_v62 = vpop.f32.mrb[96].mxu1 }
0x1e63   : > { %v12277_v33 = vpop.f32.mrb[97].mxu1 }
0x1e96   : > { %v12279_v23 = vpop.f32.mrb[98].mxu1 }
0x1e97   : > { %v12281_v26 = vpop.f32.mrb[99].mxu1 }
0x1e9a   : > { %v12283_v47 = vpop.f32.mrb[100].mxu1 }
0x1e9b   : > { %v12285_v58 = vpop.f32.mrb[101].mxu1 }
0x1ecb   : > { %v12287_v2 = vpop.f32.mrb[102].mxu1 }
0x1ecc   : > { %v12289_v18 = vpop.f32.mrb[103].mxu1 }
0x1edd   : > { %v8472_v15 = vpop.f32.mrb[104].mxu1 }
0x1ede   : > { %v5804_v9 = vpop.f32.mrb[105].mxu1  ;;  %v5846_v10 = vsel %vm1817_vm4, %v8472_v15, -inf }
0x1edf   : > { %5847 = vmax.xlane.f32.xlu1 %v5846_v10  ;;  %v5843_v61 = vsel %vm1817_vm4, %v5804_v9, -inf }
0x1ee0   : > { %5844 = vmax.xlane.f32.xlu0 %v5843_v61 }
0x1ee1   : > { %v8475_v51 = vpop.f32.mrb[106].mxu1 }
0x1ee2   : > { %v5814_v8 = vpop.f32.mrb[107].mxu1  ;;  %v5852_v49 = vsel %vm1817_vm4, %v8475_v51, -inf }
0x1ee3   : > { %v5849_v55 = vsel %vm1817_vm4, %v5814_v8, -inf }
0x1ee4   : > { %5850 = vmax.xlane.f32.xlu0 %v5849_v55 }
0x1ee5   : > { %v8478_v0 = vpop.f32.mrb[108].mxu1 }
0x1ee6   : > { %v5824_v42 = vpop.f32.mrb[109].mxu1  ;;  %v5858_v4 = vsel %vm1817_vm4, %v8478_v0, -inf }
0x1ee7   : > { %v5855_v56 = vsel %vm1817_vm4, %v5824_v42, -inf }
0x1ee8   : > { %5853 = vmax.xlane.f32.xlu0 %v5852_v49  ;;  %5856 = vmax.xlane.f32.xlu1 %v5855_v56 }
0x1ee9   : > { %v8481_v3 = vpop.f32.mrb[110].mxu1 }
0x1eea   : > { %v5834_v53 = vpop.f32.mrb[111].mxu1  ;;  %v5864_v43 = vsel %vm1817_vm4, %v8481_v3, -inf }
0x1eeb   : > { %v5861_v13 = vsel %vm1817_vm4, %v5834_v53, -inf }
0x1eec   : > { %5859 = vmax.xlane.f32.xlu0 %v5858_v4  ;;  %5862 = vmax.xlane.f32.xlu1 %v5861_v13 }
0x1ef0   : > { %5865 = vmax.xlane.f32.xlu0 %v5864_v43 }
0x1efd   : > { %9450 = vrot.lane.b32.xlu1 %v11855_v46, %s12796_s12 }
0x1f6c   : > { %v5848_v24 = vpop.xlane.xlu1 %5847 }
0x1f6d   : > { %v5868_v41 = vsub.f32 %v8472_v15, %v5848_v24  ;;  %v5845_v57 = vpop.xlane.xlu0 %5844 }
0x1f6e   : > { %v5867_v29 = vsub.f32 %v5804_v9, %v5845_v57 }
0x1f6f   : > { %v5877_v34 = vmul.f32 1.442695, %v5868_v41 }
0x1f70   : > { %v5875_v37 = vmul.f32 1.442695, %v5867_v29 }
0x1f71   : > { %9773 = vpow2.f32 %v5877_v34  ;;  %v5851_v38 = vpop.xlane.xlu0 %5850 }
0x1f72   : > { %9775 = vpow2.f32 %v5875_v37  ;;  %v5869_v44 = vsub.f32 %v5814_v8, %v5851_v38 }
0x1f74   : > { %v5879_v12 = vmul.f32 1.442695, %v5869_v44 }
0x1f75   : > { %v5854_v14 = vpop.xlane.xlu0 %5853  ;;  %v5857_v5 = vpop.xlane.xlu1 %5856 }
0x1f76   : > { %9777 = vpow2.f32 %v5879_v12  ;;  %v5870_v30 = vsub.f32 %v8475_v51, %v5854_v14  ;;  %v5871_v17 = vsub.f32 %v5824_v42, %v5857_v5 }
0x1f78   : > { %v5881_v10 = vmul.f32 1.442695, %v5870_v30  ;;  %v5883_v61 = vmul.f32 1.442695, %v5871_v17 }
0x1f79   : > { %v5860_v55 = vpop.xlane.xlu0 %5859  ;;  %v5863_v46 = vpop.xlane.xlu1 %5862 }
0x1f7a   : > { %9779 = vpow2.f32 %v5881_v10  ;;  %v5872_v15 = vsub.f32 %v8478_v0, %v5860_v55  ;;  %v5873_v4 = vsub.f32 %v5834_v53, %v5863_v46 }
0x1f7b   : > { %v12301_v49 = vpop.eup %9773  ;;  %9781 = vpow2.f32 %v5883_v61 }
0x1f7c   : > { %v12303_v9 = vpop.eup %9775  ;;  %v5885_v56 = vmul.f32 1.442695, %v5872_v15  ;;  %v5894_v8 = vsel %vm1817_vm4, %v12301_v49, 0.0  ;;  %v5887_v57 = vmul.f32 1.442695, %v5873_v4 }
0x1f7d   : > { %5895 = vadd.xlane.f32.xlu0 %v5894_v8  ;;  %v5866_v13 = vpop.xlane.xlu0 %5865  ;;  %v9451_v51 = vpop.permute.xlu1 %9450  ;;  %v5891_v42 = vsel %vm1817_vm4, %v12303_v9, 0.0 }
0x1f7e   : > { %9783 = vpow2.f32 %v5885_v56  ;;  %v5874_v43 = vsub.f32 %v8481_v3, %v5866_v13  ;;  %v9453_v24 = vunpack.i.h.bf16 %v9451_v51  ;;  %v9452_v0 = vunpack.i.l.bf16 %v9451_v51  ;;  %5892 = vadd.xlane.f32.xlu1 %v5891_v42 }
0x1f80   : > { %v12309_v41 = vpop.eup %9777  ;;  %v5889_v29 = vmul.f32 1.442695, %v5874_v43  ;;  %v9006_v34 = vpack.c.bf16 %v9453_v24, %v9452_v0 }
0x1f81   : > { %v5897_v53 = vsel %vm1817_vm4, %v12309_v41, 0.0 }
0x1f82   : > { %9785 = vpow2.f32 %v5889_v29  ;;  %5898 = vadd.xlane.f32.xlu1 %v5897_v53  ;;  %9007 = vmatprep.subr.bf16.mxu0 %v9006_v34  ;;  %v7326_v29 = vld [vmem:[%s12789_s19 + $0x20] sm:$0xff]  ;;  %v7328_v53 = vld [vmem:[%s12789_s19 + $0x30] sm:$0xff] }
0x1f83   : > { %9009 = vmatpush3.bf16.msra.mxu0 %v9006_v34  ;;  %9787 = vpow2.f32 %v5887_v57  ;;  %v7327_v34 = vld [vmem:[%s12789_s19 + $0x28] sm:$0xff] }
0x1f84   : > { %v12313_v37 = vpop.eup %9779 }
0x1f85   : > { %v12315_v38 = vpop.eup %9781  ;;  %v5900_v3 = vsel %vm1817_vm4, %v12313_v37, 0.0 }
0x1f86   : > { %5901 = vadd.xlane.f32.xlu0 %v5900_v3  ;;  %v5903_v44 = vsel %vm1817_vm4, %v12315_v38, 0.0 }
0x1f87   : > { %5904 = vadd.xlane.f32.xlu1 %v5903_v44 }
0x1f88   : > { %v12321_v12 = vpop.eup %9783 }
0x1f89   : > { %v5906_v14 = vsel %vm1817_vm4, %v12321_v12, 0.0 }
0x1f8a   : > { %5907 = vadd.xlane.f32.xlu0 %v5906_v14 }
0x1f8c   : > { %v12325_v5 = vpop.eup %9785 }
0x1f8d   : > { %v5912_v30 = vsel %vm1817_vm4, %v12325_v5, 0.0  ;;  %v12329_v17 = vpop.eup %9787 }
0x1f8e   : > { %5913 = vadd.xlane.f32.xlu0 %v5912_v30  ;;  %v5909_v10 = vsel %vm1817_vm4, %v12329_v17, 0.0 }
0x1f92   : > { %5910 = vadd.xlane.f32.xlu0 %v5909_v10 }
0x1f98   : > { %9460 = vrot.lane.b32.xlu1 %v11865_v1, %s12796_s12 }
0x1f9c   : > { %9465 = vrot.lane.b32.xlu1 %v11867_v16, %s12796_s12 }
0x1fa0   : > { %6092 = vrot.lane.b32.xlu1 %v12145_v31, %s12797_s11 }
0x1fa4   : > { %6094 = vrot.lane.b32.xlu1 %v12143_v52, %s12797_s11 }
0x1fa8   : > { %6126 = vrot.lane.b32.xlu1 %v12275_v62, %s12798_s27  ;;  %9455 = vrot.lane.b32.xlu0 %v11863_v27, %s12796_s12  ;;  %s12629_s12 = scalar_lea.hbm %s12801_s8, %s7375_s9 }
0x1fac   : > { %6098 = vrot.lane.b32.xlu1 %v12147_v28, %s12797_s11  ;;  %6124 = vrot.lane.b32.xlu0 %v12277_v33, %s12798_s27 }
0x1fb0   : > { %6130 = vrot.lane.b32.xlu1 %v12279_v23, %s12798_s27  ;;  %6096 = vrot.lane.b32.xlu0 %v12149_v35, %s12797_s11 }
0x1fb4   : > { %6102 = vrot.lane.b32.xlu1 %v12151_v11, %s12797_s11  ;;  %6128 = vrot.lane.b32.xlu0 %v12281_v26, %s12798_s27 }
0x1fb8   : > { %6134 = vrot.lane.b32.xlu1 %v12283_v47, %s12798_s27  ;;  %6100 = vrot.lane.b32.xlu0 %v12153_v32, %s12797_s11 }
0x1fbc   : > { %6106 = vrot.lane.b32.xlu1 %v12155_v50, %s12797_s11  ;;  %6132 = vrot.lane.b32.xlu0 %v12285_v58, %s12798_s27 }
0x1fc0   : > { %6138 = vrot.lane.b32.xlu1 %v12287_v2, %s12798_s27  ;;  %6104 = vrot.lane.b32.xlu0 %v12157_v39, %s12797_s11 }
0x1fc4   : > { %6136 = vrot.lane.b32.xlu0 %v12289_v18, %s12798_s27  ;;  %s12799_s27 = smov 24  }
0x200a   : > { %v5896_v1 = vpop.xlane.xlu0 %5895 }
0x200b   : > { %v5893_v27 = vpop.xlane.xlu1 %5892 }
0x200c   : > { %9789 = vrcp.f32 %v5893_v27 }
0x200d   : > { %9791 = vrcp.f32 %v5896_v1 }
0x200f   : > { %v5899_v16 = vpop.xlane.xlu1 %5898 }
0x2010   : > { %9793 = vrcp.f32 %v5899_v16 }
0x2013   : > { %v5902_v52 = vpop.xlane.xlu0 %5901 }
0x2014   : > { %v5905_v11 = vpop.xlane.xlu1 %5904  ;;  %9795 = vrcp.f32 %v5902_v52 }
0x2015   : > { %9797 = vrcp.f32 %v5905_v11 }
0x2016   : > { %v9790_v31 = vpop.eup %9789 }
0x2017   : > { %v5908_v28 = vpop.xlane.xlu0 %5907  ;;  %v5916_v35 = vmul.f32 %v9790_v31, %v12303_v9  ;;  %v9792_v15 = vpop.eup %9791 }
0x2018   : > { %v9461_v50 = vpop.permute.xlu1 %9460  ;;  %9799 = vrcp.f32 %v5908_v28  ;;  %v5918_v56 = vmul.f32 %v9792_v15, %v12301_v49 }
0x2019   : > { %8498 = vmatprep.mubr.msk.f32.mxu0 %vm1817_vm4, %v5916_v35  ;;  %v9463_v39 = vunpack.i.h.bf16 %v9461_v50  ;;  %v9462_v23 = vunpack.i.l.bf16 %v9461_v50 }
0x201a   : > { %v9794_v9 = vpop.eup %9793 }
0x201b   : > { %v5914_v32 = vpop.xlane.xlu0 %5913  ;;  %v9014_v18 = vpack.c.bf16 %v9463_v39, %v9462_v23  ;;  %v5920_v8 = vmul.f32 %v9794_v9, %v12309_v41 }
0x201c   : > { %v9466_v58 = vpop.permute.xlu1 %9465 }
0x201d   : > { %v9468_v61 = vunpack.i.h.bf16 %v9466_v58  ;;  %v9467_v55 = vunpack.i.l.bf16 %v9466_v58 }
0x201e   : > { %v9796_v4 = vpop.eup %9795 }
0x201f   : > { %v5911_v62 = vpop.xlane.xlu0 %5910  ;;  %v9018_v46 = vpack.c.bf16 %v9468_v61, %v9467_v55  ;;  %v9798_v13 = vpop.eup %9797  ;;  %v5922_v51 = vmul.f32 %v9796_v4, %v12313_v37  ;;  %v9022_v37 = vpack.c.bf16 %v7327_v34, %v7326_v29 }
0x2020   : > { %9801 = vrcp.f32 %v5911_v62  ;;  %v5924_v43 = vmul.f32 %v9798_v13, %v12315_v38  ;;  %v7329_v38 = vld [vmem:[%s12789_s19 + $0x38] sm:$0xff]  ;;  %v6093_v1 = vpop.permute.xlu1 %6092 }
0x2021   : > { %9803 = vrcp.f32 %v5914_v32  ;;  %v9026_v3 = vpack.c.bf16 %v7329_v38, %v7328_v53 }
0x2022   : > { %v9800_v42 = vpop.eup %9799 }
0x2023   : > { %v9456_v33 = vpop.permute.xlu0 %9455  ;;  %v5926_v49 = vmul.f32 %v9800_v42, %v12321_v12 }
0x2024   : > { %v9458_v26 = vunpack.i.h.bf16 %v9456_v33  ;;  %v9457_v47 = vunpack.i.l.bf16 %v9456_v33  ;;  %v6095_v16 = vpop.permute.xlu1 %6094 }
0x2025   : > { %v6181_v61 = vsel %vm1663_vm2, %v12011_v45, %v6095_v16 }
0x2026   : > { %v9010_v2 = vpack.c.bf16 %v9458_v26, %v9457_v47 }
0x2027   : > { %v6125_v31 = vpop.permute.xlu0 %6124 }
0x2028   : > { %9011 = vmatprep.subr.bf16.mxu0 %v9010_v2  ;;  %v6127_v52 = vpop.permute.xlu1 %6126 }
0x2029   : > { %9013 = vmatpush3.bf16.msra.mxu0 %v9010_v2  ;;  %v6180_v2 = vsel %vm1663_vm2, %v12013_v22, %v6093_v1  ;;  %v6189_v15 = vsel %vm805_vm0, %v6181_v61, %v6127_v52 }
0x202a   : > { %9015 = vmatprep.subr.bf16.mxu0 %v9014_v18  ;;  %v9802_v24 = vpop.eup %9801  ;;  %v6188_v55 = vsel %vm805_vm0, %v6180_v2, %v6125_v31 }
0x202b   : > { %v9804_v0 = vpop.eup %9803  ;;  %v5928_v41 = vmul.f32 %v9802_v24, %v12329_v17  ;;  %v6097_v35 = vpop.permute.xlu0 %6096 }
0x202c   : > { %v5930_v57 = vmul.f32 %v9804_v0, %v12325_v5  ;;  %v6099_v28 = vpop.permute.xlu1 %6098  ;;  %v6182_v4 = vsel %vm1663_vm2, %v12017_v54, %v6097_v35 }
0x202d   : > { %9017 = vmatpush3.bf16.msra.mxu0 %v9014_v18  ;;  %v6183_v45 = vsel %vm1663_vm2, %v12015_v63, %v6099_v28 }
0x202e   : > { %9019 = vmatprep.subr.bf16.mxu0 %v9018_v46 }
0x202f   : > { %v6129_v32 = vpop.permute.xlu0 %6128 }
0x2030   : > { %v6131_v11 = vpop.permute.xlu1 %6130 }
0x2031   : > { %9021 = vmatpush3.bf16.msra.mxu0 %v9018_v46 }
0x2032   : > { %9023 = vmatprep.subr.bf16.mxu0 %v9022_v37 }
0x2033   : > { %v6101_v62 = vpop.permute.xlu0 %6100 }
0x2034   : > { %8499 = vmatmul.mubr.msk.f32.vlgmr.msra.gmra.mrb[96].mxu0 %vm1817_vm4, %v5918_v56  ;;  %v6103_v50 = vpop.permute.xlu1 %6102  ;;  %v6184_v54 = vsel %vm1663_vm2, %v12021_v48, %v6101_v62 }
0x2035   : > { %8501 = vmatprep.mubr.msk.f32.mxu0 %vm1817_vm4, %v5920_v8  ;;  %9025 = vmatpush3.bf16.msra.mxu0 %v9022_v37  ;;  %v6190_v8 = vsel %vm805_vm0, %v6182_v4, %v6129_v32  ;;  %v6185_v63 = vsel %vm1663_vm2, %v12019_v7, %v6103_v50 }
0x2036   : > { %9027 = vmatprep.subr.bf16.mxu0 %v9026_v3 }
0x2037   : > { %v6133_v39 = vpop.permute.xlu0 %6132 }
0x2038   : > { %8502 = vmatmul.mubr.msk.f32.gmra.mrb[98].mxu0 %vm1817_vm4, %v5922_v51  ;;  %v6135_v33 = vpop.permute.xlu1 %6134  ;;  %v6191_v51 = vsel %vm805_vm0, %v6183_v45, %v6131_v11 }
0x2039   : > { %8504 = vmatprep.mubr.msk.f32.mxu0 %vm1817_vm4, %v5924_v43  ;;  %9029 = vmatpush3.bf16.msra.mxu0 %v9026_v3 }
0x203b   : > { %v6105_v26 = vpop.permute.xlu0 %6104 }
0x203c   : > { %8505 = vmatmul.mubr.msk.f32.gmra.mrb[100].mxu0 %vm1817_vm4, %v5926_v49  ;;  %v6107_v23 = vpop.permute.xlu1 %6106  ;;  %v6192_v49 = vsel %vm805_vm0, %v6184_v54, %v6133_v39  ;;  %v6186_v48 = vsel %vm1663_vm2, %v12025_v19, %v6105_v26  ;;  %v12800_v26 = vld [vmem:[#allocation28_spill] sm:$0xff] }
0x203d   : > { %8507 = vmatprep.mubr.msk.f32.mxu0 %vm1817_vm4, %v5928_v41  ;;  %v6193_v41 = vsel %vm805_vm0, %v6185_v63, %v6135_v33  ;;  %v6187_v7 = vsel %vm1663_vm2, %v12023_v60, %v6107_v23 }
0x203f   : > { %v6137_v58 = vpop.permute.xlu0 %6136 }
0x2040   : > { %8508 = vmatmul.mubr.msk.f32.gmra.mrb[102].mxu0 %vm1817_vm4, %v5930_v57  ;;  %v6139_v47 = vpop.permute.xlu1 %6138  ;;  %v6194_v53 = vsel %vm805_vm0, %v6186_v48, %v6137_v58 }
0x2041   : > { %v6195_v38 = vsel %vm805_vm0, %v6187_v7, %v6139_v47 }
0x2107   : > { %v8500_v44 = vpop.f32.mrb[96].mxu0 }
0x2108   : > { %6158 = vrot.lane.b32.xlu1 %v8500_v44, %s12799_s27  ;;  %v6045_v12 = vpop.f32.mrb[97].mxu0 }
0x2109   : > { %6156 = vrot.lane.b32.xlu0 %v6045_v12, %s12799_s27  ;;  %v7338_v12 = vld [vmem:[#allocation16 + $0x1] ss:$0 sm:$0xff] }
0x210b   : > { %v8503_v14 = vpop.f32.mrb[98].mxu0 }
0x210c   : > { %6162 = vrot.lane.b32.xlu1 %v8503_v14, %s12799_s27  ;;  %v6055_v5 = vpop.f32.mrb[99].mxu0 }
0x210d   : > { %6160 = vrot.lane.b32.xlu0 %v6055_v5, %s12799_s27 }
0x210f   : > { %v8506_v30 = vpop.f32.mrb[100].mxu0 }
0x2110   : > { %6166 = vrot.lane.b32.xlu1 %v8506_v30, %s12799_s27  ;;  %v6065_v17 = vpop.f32.mrb[101].mxu0 }
0x2111   : > { %6164 = vrot.lane.b32.xlu0 %v6065_v17, %s12799_s27 }
0x2113   : > { %v8509_v10 = vpop.f32.mrb[102].mxu0 }
0x2114   : > { %6170 = vrot.lane.b32.xlu1 %v8509_v10, %s12799_s27  ;;  %v6075_v27 = vpop.f32.mrb[103].mxu0 }
0x2115   : > { %6168 = vrot.lane.b32.xlu0 %v6075_v27, %s12799_s27  ;;  %s6807_s27 = scalar_lea.sflag [#allocation4], %s10696_s13 }
0x217a   : > { %v6159_v18 = vpop.permute.xlu1 %6158 }
0x217b   : > { %v6157_v46 = vpop.permute.xlu0 %6156  ;;  %v6197_v56 = vsel %vm3385_vm5, %v6189_v15, %v6159_v18 }
0x217c   : > { %v6196_v9 = vsel %vm3385_vm5, %v6188_v55, %v6157_v46 }
0x217d   : > { %8518 = vmatprep.mubr.msk.f32.mxu0 %vm995_vm1, %v6196_v9 }
0x217e   : > { %8519 = vmatmul.mubr.msk.f32.vlgmr.msra.gmra.mrb[104].mxu0 %vm995_vm1, %v6197_v56  ;;  %v6163_v22 = vpop.permute.xlu1 %6162 }
0x217f   : > { %v6161_v13 = vpop.permute.xlu0 %6160  ;;  %v6199_v43 = vsel %vm3385_vm5, %v6191_v51, %v6163_v22 }
0x2180   : > { %v6198_v42 = vsel %vm3385_vm5, %v6190_v8, %v6161_v13 }
0x2181   : > { %8521 = vmatprep.mubr.msk.f32.mxu0 %vm995_vm1, %v6198_v42 }
0x2182   : > { %8522 = vmatmul.mubr.msk.f32.gmra.mrb[106].mxu0 %vm995_vm1, %v6199_v43  ;;  %v6167_v24 = vpop.permute.xlu1 %6166 }
0x2183   : > { %v6165_v0 = vpop.permute.xlu0 %6164  ;;  %v6201_v29 = vsel %vm3385_vm5, %v6193_v41, %v6167_v24 }
0x2184   : > { %v6200_v57 = vsel %vm3385_vm5, %v6192_v49, %v6165_v0 }
0x2185   : > { %8524 = vmatprep.mubr.msk.f32.mxu0 %vm995_vm1, %v6200_v57 }
0x2186   : > { %8525 = vmatmul.mubr.msk.f32.gmra.mrb[108].mxu0 %vm995_vm1, %v6201_v29  ;;  %v6171_v34 = vpop.permute.xlu1 %6170 }
0x2187   : > { %v6169_v37 = vpop.permute.xlu0 %6168  ;;  %v6203_v44 = vsel %vm3385_vm5, %v6195_v38, %v6171_v34 }
0x2188   : > { %v6202_v3 = vsel %vm3385_vm5, %v6194_v53, %v6169_v37 }
0x2189   : > { %8527 = vmatprep.mubr.msk.f32.mxu0 %vm995_vm1, %v6202_v3 }
0x218a   : > { %8528 = vmatmul.mubr.msk.f32.gmra.mrb[110].mxu0 %vm995_vm1, %v6203_v44 }
0x2251   : > { %v8520_v19 = vpop.f32.mrb[104].mxu0 }
0x2252   : > { %v6339_v14 = vadd.f32 %v8520_v19, %v11687_v25  ;;  %v6299_v5 = vpop.f32.mrb[105].mxu0 }
0x2253   : > { %v6338_v60 = vadd.f32 %v6299_v5, %v11690_v20 }
0x2254   : > { %v12449_v30 = vadd.f32 %v7338_v12, %v6339_v14 }
0x2255   : > { %v12451_v17 = vadd.f32 %v7338_v12, %v6338_v60  ;;  %v8523_v10 = vpop.f32.mrb[106].mxu0 }
0x2256   : > { %v6341_v27 = vadd.f32 %v8523_v10, %v11697_v59  ;;  %v6309_v1 = vpop.f32.mrb[107].mxu0  ;;  %v6369_v16 = vsel %vm995_vm1, %v12449_v30, 0.0 }
0x2257   : > { %v6340_v52 = vadd.f32 %v6309_v1, %v11700_v21  ;;  %6370 = vadd.xlane.f32.xlu1 %v6369_v16  ;;  %v6366_v25 = vsel %vm995_vm1, %v12451_v17, 0.0 }
0x2258   : > { %6367 = vadd.xlane.f32.xlu0 %v6366_v25  ;;  %v12461_v28 = vadd.f32 %v7338_v12, %v6341_v27  ;;  %v7341_v25 = vld [vmem:[%s12791_s3 + $0x20] sm:$0xff] }
0x2259   : > { %v12459_v31 = vadd.f32 %v7338_v12, %v6340_v52  ;;  %v8526_v20 = vpop.f32.mrb[108].mxu0 }
0x225a   : > { %v6319_v35 = vpop.f32.mrb[109].mxu0  ;;  %v6343_v11 = vadd.f32 %v8526_v20, %v11707_v40  ;;  %v6375_v33 = vsel %vm995_vm1, %v12461_v28, 0.0  ;;  %v7342_v20 = vld [vmem:[%s12791_s3 + $0x28] sm:$0xff] }
0x225b   : > { %v6342_v59 = vadd.f32 %v6319_v35, %v11710_v36  ;;  %v6372_v32 = vsel %vm995_vm1, %v12459_v31, 0.0  ;;  %v9030_v35 = vpack.c.bf16 %v7342_v20, %v7341_v25 }
0x225c   : > { %6373 = vadd.xlane.f32.xlu0 %v6372_v32  ;;  %v12471_v39 = vadd.f32 %v7338_v12, %v6343_v11  ;;  %v7343_v11 = vld [vmem:[%s12791_s3 + $0x30] sm:$0xff] }
0x225d   : > { %v12467_v21 = vadd.f32 %v7338_v12, %v6342_v59  ;;  %v8529_v50 = vpop.f32.mrb[110].mxu0  ;;  %9031 = vmatprep.subr.bf16.mxu1 %v9030_v35  ;;  %v7344_v59 = vld [vmem:[%s12791_s3 + $0x38] sm:$0xff]  ;;  %s10137_s3 = scalar_lea.vmem %s10136_s14, 1024 }
0x225e   : > { %v6329_v62 = vpop.f32.mrb[111].mxu0  ;;  %v6345_v23 = vadd.f32 %v8529_v50, %v11717_v6  ;;  %v6381_v2 = vsel %vm995_vm1, %v12471_v39, 0.0  ;;  %9033 = vmatpush3.bf16.msra.mxu1 %v9030_v35  ;;  %v9034_v32 = vpack.c.bf16 %v7344_v59, %v7343_v11  ;;  %v7353_v50 = vld [vmem:[%s12792_s10 + $0x80] sm:$0xff]  ;;  %p10139_p10 = scmp.lt.s32.totalorder %s10137_s3, %s10131_s6 }
0x225f   : > { %v6344_v47 = vadd.f32 %v6329_v62, %v12800_v26  ;;  %v6378_v40 = vsel %vm995_vm1, %v12467_v21, 0.0  ;;  %v7354_v62 = vld [vmem:[%s12792_s10 + $0x88] sm:$0xff]  ;;  %v7356_v26 = vld [vmem:[%s12792_s10 + $0x98] sm:$0xff] }
0x2260   : > { %6376 = vadd.xlane.f32.xlu0 %v6375_v33  ;;  %6379 = vadd.xlane.f32.xlu1 %v6378_v40  ;;  %v12479_v58 = vadd.f32 %v7338_v12, %v6345_v23  ;;  %v7355_v33 = vld [vmem:[%s12792_s10 + $0x90] sm:$0xff]  ;;  %v9038_v23 = vpack.c.bf16 %v7354_v62, %v7353_v50  ;;  %v7357_v40 = vld [vmem:[%s12792_s10 + $0xa0] sm:$0xff]  ;;  %v7340_v50 = vld [vmem:[#allocation19 + $0x1] ss:$0 sm:$0xff]  ;;  %p10140_p11 = por %p10139_p10, %p10138_p4 }
0x2261   : > { %v12477_v36 = vadd.f32 %v7338_v12, %v6344_v47  ;;  %9035 = vmatprep.subr.bf16.mxu1 %v9034_v32  ;;  %v9042_v47 = vpack.c.bf16 %v7356_v26, %v7355_v33 }
0x2262   : > { %v6387_v6 = vsel %vm995_vm1, %v12479_v58, 0.0  ;;  %9037 = vmatpush3.bf16.msra.mxu1 %v9034_v32  ;;  %9039 = vmatprep.subr.bf16.mxu0 %v9038_v23  ;;  %p10141_p3 = pnand %p10140_p11, %p10134_p8 }
0x2263   : > { %v6384_v18 = vsel %vm995_vm1, %v12477_v36, 0.0  ;;  %9041 = vmatpush3.bf16.msra.mxu0 %v9038_v23 }
0x2264   : > { %6382 = vadd.xlane.f32.xlu0 %v6381_v2  ;;  %6385 = vadd.xlane.f32.xlu1 %v6384_v18  ;;  %v7358_v2 = vld [vmem:[%s12792_s10 + $0xa8] sm:$0xff] }
0x2265   : > { %9043 = vmatprep.subr.bf16.mxu0 %v9042_v47  ;;  %v9046_v18 = vpack.c.bf16 %v7358_v2, %v7357_v40 }
0x2267   : > { %9045 = vmatpush3.bf16.msra.mxu0 %v9042_v47 }
0x2268   : > { %6388 = vadd.xlane.f32.xlu0 %v6387_v6  ;;  %v7359_v6 = vld [vmem:[%s12792_s10 + $0xb0] sm:$0xff]  ;;  %9047 = vmatprep.subr.bf16.mxu0 %v9046_v18 }
0x226b   : > { %9049 = vmatpush3.bf16.msra.mxu0 %v9046_v18 }
0x22e4   : > { %v6371_v61 = vpop.xlane.xlu1 %6370 }
0x22e5   : > { %v6391_v55 = vmul.f32 0.03125, %v6371_v61  ;;  %v6368_v46 = vpop.xlane.xlu0 %6367  ;;  %v7360_v61 = vld [vmem:[%s12792_s10 + $0xb8] sm:$0xff] }
0x22e6   : > { %v6390_v15 = vmul.f32 0.03125, %v6368_v46  ;;  %v7361_v46 = vld [vmem:[%s12792_s10 + $0xc0] sm:$0xff] }
0x22e7   : > { %v12488_v9 = vsub.f32 %v12449_v30, %v6391_v55  ;;  %v9050_v55 = vpack.c.bf16 %v7360_v61, %v7359_v6 }
0x22e8   : > { %v12491_v56 = vsub.f32 %v12451_v17, %v6390_v15  ;;  %v7362_v15 = vld [vmem:[%s12792_s10 + $0xc8] sm:$0xff] }
0x22e9   : > { %v6374_v4 = vpop.xlane.xlu0 %6373  ;;  %v6407_v22 = vmul.f32 %v12488_v9, %v12488_v9  ;;  %9051 = vmatprep.subr.bf16.mxu0 %v9050_v55 }
0x22ea   : > { %v6392_v45 = vmul.f32 0.03125, %v6374_v4  ;;  %v6406_v8 = vmul.f32 %v12491_v56, %v12491_v56  ;;  %v9054_v4 = vpack.c.bf16 %v7362_v15, %v7361_v46  ;;  %9053 = vmatpush3.bf16.msra.mxu0 %v9050_v55 }
0x22eb   : > { %v6417_v13 = vsel %vm995_vm1, %v6407_v22, 0.0  ;;  %v7363_v22 = vld [vmem:[%s12792_s10 + $0xd0] sm:$0xff] }
0x22ec   : > { %v12499_v51 = vsub.f32 %v12459_v31, %v6392_v45  ;;  %6418 = vadd.xlane.f32.xlu0 %v6417_v13  ;;  %v6414_v42 = vsel %vm995_vm1, %v6406_v8, 0.0  ;;  %v7364_v45 = vld [vmem:[%s12792_s10 + $0xd8] sm:$0xff]  ;;  %9055 = vmatprep.subr.bf16.mxu0 %v9054_v4  ;;  %v7365_v13 = vld [vmem:[%s12792_s10 + $0xe0] sm:$0xff] }
0x22ed   : > { %v6377_v43 = vpop.xlane.xlu0 %6376  ;;  %v6380_v54 = vpop.xlane.xlu1 %6379  ;;  %6415 = vadd.xlane.f32.xlu1 %v6414_v42  ;;  %v9058_v8 = vpack.c.bf16 %v7364_v45, %v7363_v22  ;;  %v7366_v42 = vld [vmem:[%s12792_s10 + $0xe8] sm:$0xff] }
0x22ee   : > { %v6393_v24 = vmul.f32 0.03125, %v6377_v43  ;;  %v6394_v63 = vmul.f32 0.03125, %v6380_v54  ;;  %v6408_v49 = vmul.f32 %v12499_v51, %v12499_v51  ;;  %9057 = vmatpush3.bf16.msra.mxu0 %v9054_v4  ;;  %v9062_v43 = vpack.c.bf16 %v7366_v42, %v7365_v13 }
0x22ef   : > { %9059 = vmatprep.subr.bf16.mxu0 %v9058_v8 }
0x22f0   : > { %v12505_v0 = vsub.f32 %v12461_v28, %v6393_v24  ;;  %v12508_v41 = vsub.f32 %v12467_v21, %v6394_v63  ;;  %v6420_v57 = vsel %vm995_vm1, %v6408_v49, 0.0 }
0x22f1   : > { %v6383_v29 = vpop.xlane.xlu0 %6382  ;;  %6421 = vadd.xlane.f32.xlu1 %v6420_v57  ;;  %v6386_v48 = vpop.xlane.xlu1 %6385 }
0x22f2   : > { %v6395_v34 = vmul.f32 0.03125, %v6383_v29  ;;  %v6396_v7 = vmul.f32 0.03125, %v6386_v48  ;;  %v6409_v53 = vmul.f32 %v12505_v0, %v12505_v0  ;;  %v6410_v37 = vmul.f32 %v12508_v41, %v12508_v41  ;;  %9061 = vmatpush3.bf16.msra.mxu0 %v9058_v8 }
0x22f3   : > { %9063 = vmatprep.subr.bf16.mxu0 %v9062_v43 }
0x22f4   : > { %v12516_v38 = vsub.f32 %v12471_v39, %v6395_v34  ;;  %v12519_v3 = vsub.f32 %v12477_v36, %v6396_v7  ;;  %v6423_v44 = vsel %vm995_vm1, %v6409_v53, 0.0  ;;  %v6426_v19 = vsel %vm995_vm1, %v6410_v37, 0.0 }
0x22f5   : > { %6424 = vadd.xlane.f32.xlu0 %v6423_v44  ;;  %v6389_v12 = vpop.xlane.xlu0 %6388  ;;  %6427 = vadd.xlane.f32.xlu1 %v6426_v19 }
0x22f6   : > { %v6397_v14 = vmul.f32 0.03125, %v6389_v12  ;;  %v6411_v5 = vmul.f32 %v12516_v38, %v12516_v38  ;;  %v6412_v60 = vmul.f32 %v12519_v3, %v12519_v3  ;;  %9065 = vmatpush3.bf16.msra.mxu0 %v9062_v43 }
0x22f8   : > { %v12528_v10 = vsub.f32 %v12479_v58, %v6397_v14  ;;  %v6429_v27 = vsel %vm995_vm1, %v6411_v5, 0.0  ;;  %v6432_v1 = vsel %vm995_vm1, %v6412_v60, 0.0 }
0x22f9   : > { %6430 = vadd.xlane.f32.xlu0 %v6429_v27  ;;  %6433 = vadd.xlane.f32.xlu1 %v6432_v1 }
0x22fa   : > { %v6413_v16 = vmul.f32 %v12528_v10, %v12528_v10 }
0x22fc   : > { %v6435_v52 = vsel %vm995_vm1, %v6413_v16, 0.0 }
0x22fd   : > { %6436 = vadd.xlane.f32.xlu0 %v6435_v52  ;;  %v7339_v52 = vld [vmem:[#allocation17 + $0x1] ss:$0 sm:$0xff] }
0x2379   : > { %v6419_v54 = vpop.xlane.xlu0 %6418 }
0x237a   : > { %v6439_v24 = vmul.f32 0.03125, %v6419_v54  ;;  %v6416_v63 = vpop.xlane.xlu1 %6415 }
0x237b   : > { %v6438_v49 = vmul.f32 0.03125, %v6416_v63 }
0x237c   : > { %v6447_v57 = vadd.f32 1e-05, %v6439_v24 }
0x237d   : > { %v6446_v29 = vadd.f32 1e-05, %v6438_v49 }
0x237e   : > { %9805 = vrsqrt.f32 %v6447_v57  ;;  %v6422_v48 = vpop.xlane.xlu1 %6421  ;;  %v7368_v57 = vld [vmem:[%s12792_s10 + $0xf8] sm:$0xff] }
0x237f   : > { %9807 = vrsqrt.f32 %v6446_v29  ;;  %v6440_v34 = vmul.f32 0.03125, %v6422_v48 }
0x2381   : > { %v6448_v7 = vadd.f32 1e-05, %v6440_v34 }
0x2382   : > { %v6425_v53 = vpop.xlane.xlu0 %6424  ;;  %v6428_v37 = vpop.xlane.xlu1 %6427 }
0x2383   : > { %9809 = vrsqrt.f32 %v6448_v7  ;;  %v6441_v44 = vmul.f32 0.03125, %v6425_v53  ;;  %v6442_v19 = vmul.f32 0.03125, %v6428_v37 }
0x2385   : > { %v6449_v12 = vadd.f32 1e-05, %v6441_v44  ;;  %v6450_v14 = vadd.f32 1e-05, %v6442_v19 }
0x2386   : > { %v6431_v5 = vpop.xlane.xlu0 %6430  ;;  %v6434_v60 = vpop.xlane.xlu1 %6433 }
0x2387   : > { %9811 = vrsqrt.f32 %v6449_v12  ;;  %v6443_v27 = vmul.f32 0.03125, %v6431_v5  ;;  %v6444_v1 = vmul.f32 0.03125, %v6434_v60 }
0x2388   : > { %v9806_v16 = vpop.eup %9805  ;;  %9813 = vrsqrt.f32 %v6450_v14 }
0x2389   : > { %v9808_v25 = vpop.eup %9807  ;;  %v6463_v20 = vmul.f32 %v9806_v16, %v12488_v9  ;;  %v6451_v35 = vadd.f32 1e-05, %v6443_v27  ;;  %v6452_v11 = vadd.f32 1e-05, %v6444_v1 }
0x238a   : > { %v6437_v59 = vpop.xlane.xlu0 %6436  ;;  %v6462_v32 = vmul.f32 %v9808_v25, %v12491_v56 }
0x238b   : > { %v6477_v62 = vmul.f32 %v7339_v52, %v6463_v20  ;;  %9815 = vrsqrt.f32 %v6451_v35  ;;  %v6445_v33 = vmul.f32 0.03125, %v6437_v59 }
0x238c   : > { %9817 = vrsqrt.f32 %v6452_v11  ;;  %v6476_v23 = vmul.f32 %v7339_v52, %v6462_v32 }
0x238d   : > { %v9810_v26 = vpop.eup %9809  ;;  %v6453_v47 = vadd.f32 1e-05, %v6445_v33  ;;  %v6491_v18 = vadd.f32 %v7340_v50, %v6477_v62 }
0x238e   : > { %v6490_v40 = vadd.f32 %v7340_v50, %v6476_v23  ;;  %v6464_v2 = vmul.f32 %v9810_v26, %v12499_v51 }
0x238f   : > { %9819 = vrsqrt.f32 %v6453_v47 }
0x2390   : > { %8538 = vmatprep.mubr.msk.f32.mxu1 %vm995_vm1, %v6490_v40  ;;  %v6478_v9 = vmul.f32 %v7339_v52, %v6464_v2 }
0x2391   : > { %v9812_v6 = vpop.eup %9811  ;;  %8539 = vmatmul.mubr.msk.f32.vlgmr.msra.gmra.mrb[112].mxu1 %vm995_vm1, %v6491_v18 }
0x2392   : > { %v9814_v56 = vpop.eup %9813  ;;  %v6492_v61 = vadd.f32 %v7340_v50, %v6478_v9  ;;  %v6465_v55 = vmul.f32 %v9812_v6, %v12505_v0 }
0x2393   : > { %v6466_v46 = vmul.f32 %v9814_v56, %v12508_v41 }
0x2394   : > { %8541 = vmatprep.mubr.msk.f32.mxu1 %vm995_vm1, %v6492_v61  ;;  %v6479_v15 = vmul.f32 %v7339_v52, %v6465_v55 }
0x2395   : > { %v9816_v4 = vpop.eup %9815  ;;  %v6480_v22 = vmul.f32 %v7339_v52, %v6466_v46 }
0x2396   : > { %v9818_v51 = vpop.eup %9817  ;;  %v6493_v45 = vadd.f32 %v7340_v50, %v6479_v15  ;;  %v6467_v8 = vmul.f32 %v9816_v4, %v12516_v38 }
0x2397   : > { %v6494_v13 = vadd.f32 %v7340_v50, %v6480_v22  ;;  %v6468_v42 = vmul.f32 %v9818_v51, %v12519_v3  ;;  %v7367_v3 = vld [vmem:[%s12792_s10 + $0xf0] sm:$0xff] }
0x2398   : > { %8542 = vmatmul.mubr.msk.f32.gmra.mrb[114].mxu1 %vm995_vm1, %v6493_v45  ;;  %v6481_v43 = vmul.f32 %v7339_v52, %v6467_v8  ;;  %v9066_v29 = vpack.c.bf16 %v7368_v57, %v7367_v3 }
0x2399   : > { %v9820_v54 = vpop.eup %9819  ;;  %8544 = vmatprep.mubr.msk.f32.mxu1 %vm995_vm1, %v6494_v13  ;;  %v6482_v0 = vmul.f32 %v7339_v52, %v6468_v42 }
0x239a   : > { %v6495_v41 = vadd.f32 %v7340_v50, %v6481_v43  ;;  %v6469_v24 = vmul.f32 %v9820_v54, %v12528_v10  ;;  %9067 = vmatprep.subr.bf16.mxu0 %v9066_v29 }
0x239b   : > { %v6496_v63 = vadd.f32 %v7340_v50, %v6482_v0  ;;  %9069 = vmatpush3.bf16.msra.mxu0 %v9066_v29 }
0x239c   : > { %8545 = vmatmul.mubr.msk.f32.gmra.mrb[116].mxu1 %vm995_vm1, %v6495_v41  ;;  %v6483_v49 = vmul.f32 %v7339_v52, %v6469_v24 }
0x239d   : > { %8547 = vmatprep.mubr.msk.f32.mxu1 %vm995_vm1, %v6496_v63 }
0x239e   : > { %v6497_v38 = vadd.f32 %v7340_v50, %v6483_v49 }
0x23a0   : > { %8548 = vmatmul.mubr.msk.f32.gmra.mrb[118].mxu1 %vm995_vm1, %v6497_v38 }
0x2464   : > { %v8540_v10 = vpop.f32.mrb[112].mxu1 }
0x2465   : > { %v6593_v48 = vpop.f32.mrb[113].mxu1  ;;  %v6633_v7 = vmax.f32 %v8540_v10, 0.0 }
0x2466   : > { %v6632_v34 = vmax.f32 %v6593_v48, 0.0 }
0x2468   : > { %8582 = vmatprep.mubr.f32.mxu0 %v6632_v34 }
0x2469   : > { %8583 = vmatmul.mubr.f32.vlgmr.msra.gmra.mrb[112].mxu0 %v6633_v7 }
0x246b   : > { %v8543_v53 = vpop.f32.mrb[114].mxu1 }
0x246c   : > { %v6603_v37 = vpop.f32.mrb[115].mxu1  ;;  %v6635_v19 = vmax.f32 %v8543_v53, 0.0 }
0x246d   : > { %v6634_v44 = vmax.f32 %v6603_v37, 0.0 }
0x246f   : > { %v8546_v12 = vpop.f32.mrb[116].mxu1  ;;  %8585 = vmatprep.mubr.f32.mxu0 %v6634_v44 }
0x2470   : > { %v6613_v14 = vpop.f32.mrb[117].mxu1  ;;  %8586 = vmatmul.mubr.f32.gmra.mrb[114].mxu0 %v6635_v19  ;;  %v6637_v60 = vmax.f32 %v8546_v12, 0.0 }
0x2471   : > { %v6636_v5 = vmax.f32 %v6613_v14, 0.0 }
0x2473   : > { %v8549_v27 = vpop.f32.mrb[118].mxu1  ;;  %8588 = vmatprep.mubr.f32.mxu0 %v6636_v5 }
0x2474   : > { %v6623_v1 = vpop.f32.mrb[119].mxu1  ;;  %8589 = vmatmul.mubr.f32.gmra.mrb[116].mxu0 %v6637_v60  ;;  %v6639_v52 = vmax.f32 %v8549_v27, 0.0 }
0x2475   : > { %v6638_v16 = vmax.f32 %v6623_v1, 0.0 }
0x2477   : > { %8591 = vmatprep.mubr.f32.mxu0 %v6638_v16 }
0x2478   : > { %8592 = vmatmul.mubr.f32.gmra.mrb[118].mxu0 %v6639_v52 }
0x253c   : > { %v8584_v25 = vpop.f32.mrb[112].mxu0 }
0x253d   : > { %v6723_v20 = vpop.f32.mrb[113].mxu0  ;;  %v6763_v11 = vadd.f32 %v8584_v25, %v12449_v30 }
0x253e   : > { %v6762_v35 = vadd.f32 %v6723_v20, %v12451_v17 }
0x2540   : > { %6770 = vxpose.xlu1.b32.start [1/8] (short) (narrow) %v6762_v35, 32 }
0x2543   : > { %v8587_v59 = vpop.f32.mrb[114].mxu0 }
0x2544   : > { %6771 = vxpose.xlu1.b32.cont [2/8] (short) (narrow) %v6763_v11, 32  ;;  %v6733_v32 = vpop.f32.mrb[115].mxu0  ;;  %v6765_v23 = vadd.f32 %v8587_v59, %v12461_v28 }
0x2545   : > { %v6764_v50 = vadd.f32 %v6733_v32, %v12459_v31 }
0x2547   : > { %v8590_v62 = vpop.f32.mrb[116].mxu0 }
0x2548   : > { %6772 = vxpose.xlu1.b32.cont [3/8] (short) (narrow) %v6764_v50, 32  ;;  %v6743_v33 = vpop.f32.mrb[117].mxu0  ;;  %v6767_v30 = vadd.f32 %v8590_v62, %v12471_v39 }
0x2549   : > { %v6766_v40 = vadd.f32 %v6743_v33, %v12467_v21 }
0x254b   : > { %v8593_v26 = vpop.f32.mrb[118].mxu0 }
0x254c   : > { %6773 = vxpose.xlu1.b32.cont [4/8] (short) (narrow) %v6765_v23, 32  ;;  %v6753_v47 = vpop.f32.mrb[119].mxu0  ;;  %v6769_v31 = vadd.f32 %v8593_v26, %v12479_v58 }
0x254d   : > { %v6768_v17 = vadd.f32 %v6753_v47, %v12477_v36 }
0x2550   : > { %6774 = vxpose.xlu1.b32.cont [5/8] (short) (narrow) %v6766_v40, 32 }
0x2554   : > { %6775 = vxpose.xlu1.b32.cont [6/8] (short) (narrow) %v6767_v30, 32 }
0x2558   : > { %6776 = vxpose.xlu1.b32.cont [7/8] (short) (narrow) %v6768_v17, 32 }
0x255c   : > { %6777 = vxpose.xlu1.b32.end [8/8] (short) (narrow) %v6769_v31, 32 }
0x25c0   : > { %v6786_v2 = vpop.trf.xlu1 }
0x25c1   : > { %6802 = vst.msk [vmem:[%s761_s5] sm:$0xff] %vm1817_vm4, %v6786_v2 }
0x25c4   : > { %v6787_v28 = vpop.trf.xlu1 }
0x25c5   : > { %6803 = vst.msk [vmem:[%s761_s5 + $0x8] sm:$0xff] %vm1817_vm4, %v6787_v28 }
0x25c8   : > { %v6788_v21 = vpop.trf.xlu1 }
0x25c9   : > { %6804 = vst.msk [vmem:[%s761_s5 + $0x10] sm:$0xff] %vm1817_vm4, %v6788_v21 }
0x25cc   : > { %v6789_v39 = vpop.trf.xlu1 }
0x25cd   : > { %6805 = vst.msk [vmem:[%s761_s5 + $0x18] sm:$0xff] %vm1817_vm4, %v6789_v39 }
0x25ce   : > { %10144 = shalt.err (!%p10141_p3)
}
0x25cf   : > { %s10145_s5 = scalar_lea.hbm %s12629_s12, 512  ;;  %s10149_s4 = scalar_lea.hbm %s12801_s8, 1024 }
0x25d0   : > { %p10146_p5 = scmp.ne.s32.totalorder %s12629_s12, %s10145_s5  ;;  %p10150_p9 = scmp.lt.u32.totalorder %s12629_s12, %s12801_s8 }
0x25d1   : > { %p10151_p12 = scmp.lt.u32.totalorder %s10149_s4, %s10145_s5  ;;  %p10153_p13 = scmp.lt.u32.totalorder %s10145_s5, %s12629_s12 }
0x25d2   : > { %p10147_p7 = pnand %p10146_p5, %p12802_p0 }
0x25d3   : > { %p10152_p1 = por %p10151_p12, %p10150_p9 }
0x25d4   : > { %p10148_p6 = pneg %p10147_p7 }
0x25d5   : > { %p10154_p2 = por %p10153_p13, %p10152_p1 }
0x25d7   : > { %p10155_p8 = pnand %p10154_p2, %p10148_p6 }
0x25d9   : > { %10158 = shalt.err (!%p10155_p8)
}
0x25da   : > { %s10241_s3 = smov 128  }
0x25db   : > { %9112 = dma.vmem_to_hbm [thread:$0]  (%p12802_p0), %s12624_s22, 512, %s12629_s12, %s6807_s27, %s10241_s3, %s10241_s3, %s12797_s11  }
0x25dc PF: > { %s6835_s6 = sand.u32 1, %s10205_s0   ;;  %p12803_p4 = scmp.ne.s32.totalorder %s12765_s26, 0 }
0x25dd   : > { %p12804_p10 = scmp.ge.s32.totalorder %s10217_s21, 2  ;;  %s6836_s5 = scalar_lea.sflag [#allocation4], %s6835_s6 }
0x25df   : > { %p9150_p11 = pnand %p12804_p10, %p12803_p4 }
0x25e1   : > { %10200 = dma.done.wait (!%p9150_p11), %s6836_s5, 512  }
0x25e2   : > { %10202 = vsyncadd (!%p9150_p11), %s6836_s5, 4294966784  ;;  %p37_p3 = scmp.ge.s32.totalorder %s10614_s24, 4   ;;  %s12805_s0 = smov %s10209_s30 }
0x25e3   : > { %s12806_s30 = smov %s10213_s20  ;;  %s12807_s20 = smov %s10625_s7 }
0x25e4   : > { %s12808_s21 = smov %s10614_s24  ;;  %39 = sbr.rel (!%p37_p3) target bundleno = 29 (0x1d), region = 195 }
0x25eb   :  { %6841 = vsyncpa [#allocation3], 1 }
0x25ec   :  { %6843 = vsyncpa [#allocation3 + $0x1], 1 }
0x25ed   :  { %6844 = vsyncpa [#allocation6], 1 }
0x25ee   :  { %6845 = vsyncpa [#allocation9], 1 }
0x25ef   :  { %6846 = vsyncpa [#allocation12], 1 }
0x25f0   :  { %6847 = vsyncpa [#allocation15], 1 }
0x25f1   :  { %6848 = vsyncpa [#allocation18], 1 }
0x25f2   :  { %6849 = vsyncpa [#allocation4], 1 }
0x25f3   :  { %6851 = vsyncpa [#allocation4 + $0x1], 1 }

</bundles_post_ra>
